<compile_context>
chip_gen: v6e
topology: v6e:2x2x1
jax: 0.10.0
libtpu: 0.0.40
codegen_flags: <defaults>
</compile_context>

<pallas_src>
import functools

import jax
import jax.numpy as jnp
from jax.experimental import pallas as pl
from jax.experimental.pallas import tpu as pltpu

EPS = 1e-3                 # matches nn.BatchNorm2d(eps=0.001)
_LANE = 128
_VMEM_LIMIT = 48 << 20     # <= v7x scoped budget; raise on v5e/v6e if desired


def _pad_to_lane(c):
    return max(_LANE, ((c + _LANE - 1) // _LANE) * _LANE)


def _stats_rows(y):
    """(rows, C) f32 -> (1, 8, C) partial block: row0 = sum, row1 = sumsq."""
    c = y.shape[-1]
    return jnp.concatenate(
        [jnp.sum(y, axis=0, keepdims=True),
         jnp.sum(y * y, axis=0, keepdims=True),
         jnp.zeros((6, c), jnp.float32)], axis=0).reshape(1, 8, c)


# --------------------------------------------------------------------------- #
# Kernels
# --------------------------------------------------------------------------- #
def _mm_stats_kernel(*refs, bn_relu_input):
    """[optional BN+ReLU on input ->] 1x1 conv (matmul) + per-tile channel stats."""
    if bn_relu_input:
        scale_ref, shift_ref, x_ref, w_ref, y_ref, st_ref = refs
        x = jnp.maximum(x_ref[...] * scale_ref[...] + shift_ref[...], 0.0)
    else:
        x_ref, w_ref, y_ref, st_ref = refs
        x = x_ref[...]
    y = jnp.dot(x.astype(jnp.bfloat16), w_ref[...],
                preferred_element_type=jnp.float32)
    y_ref[...] = y
    st_ref[...] = _stats_rows(y)


def _bn_relu_conv3x3_stats_kernel(scale_ref, shift_ref, y1_ref, w2_ref,
                                  y2_ref, st_ref):
    """BN1+ReLU fused into bf16 taps, 3x3 conv (pad=1) as 9 accumulating
    matmuls (no im2col concat), plus per-tile channel stats of the raw output."""
    _, H, W, P = y1_ref.shape

    a = y1_ref[...].reshape(H * W, P)
    a = jnp.maximum(a * scale_ref[...] + shift_ref[...], 0.0)
    a = a.astype(jnp.bfloat16).reshape(1, H, W, P)        # bf16 halo taps

    hs = jax.lax.broadcasted_iota(jnp.int32, (1, H, W, 1), 1)
    ws = jax.lax.broadcasted_iota(jnp.int32, (1, H, W, 1), 2)

    acc = jnp.zeros((H * W, P), jnp.float32)
    for kh in range(3):
        for kw in range(3):
            dh, dw = kh - 1, kw - 1
            t = a
            if dh != 0:
                t = jnp.roll(t, -dh, axis=1)              # t[h] = a[h + dh]
            if dw != 0:
                t = jnp.roll(t, -dw, axis=2)              # t[w] = a[w + dw]
            if dh != 0 or dw != 0:
                valid = ((hs + dh >= 0) & (hs + dh < H) &
                         (ws + dw >= 0) & (ws + dw < W))
                t = jnp.where(valid, t, jnp.zeros_like(t))  # zero the halo
            acc = acc + jnp.dot(t.reshape(H * W, P), w2_ref[kh * 3 + kw],
                                preferred_element_type=jnp.float32)
    y2_ref[...] = acc.reshape(1, H, W, P)
    st_ref[...] = _stats_rows(acc)


def _bn_add_relu_kernel(scale_ref, shift_ref, y3_ref, res_ref, o_ref):
    """BN3 + residual add + ReLU."""
    o_ref[...] = jnp.maximum(
        y3_ref[...] * scale_ref[...] + shift_ref[...] + res_ref[...],
        0.0).astype(o_ref.dtype)


# --------------------------------------------------------------------------- #
# Stage wrappers (pallas_call plumbing)
# --------------------------------------------------------------------------- #
def _conv1x1_stage(x2d, w, *, row_tile, scale=None, shift=None):
    R, Cin = x2d.shape
    Cout = w.shape[1]
    nt = R // row_tile
    bn_in = scale is not None

    in_specs, args = [], []
    if bn_in:
        in_specs += [pl.BlockSpec((1, Cin), lambda i: (0, 0)),
                     pl.BlockSpec((1, Cin), lambda i: (0, 0))]
        args += [scale, shift]
    in_specs += [pl.BlockSpec((row_tile, Cin), lambda i: (i, 0)),
                 pl.BlockSpec((Cin, Cout), lambda i: (0, 0))]
    args += [x2d, w]

    cost = pl.CostEstimate(
        flops=int(2 * R * Cin * Cout), transcendentals=0,
        bytes_accessed=int(4 * R * (Cin + Cout) + 2 * Cin * Cout))

    y, st = pl.pallas_call(
        functools.partial(_mm_stats_kernel, bn_relu_input=bn_in),
        grid=(nt,),
        in_specs=in_specs,
        out_specs=[pl.BlockSpec((row_tile, Cout), lambda i: (i, 0)),
                   pl.BlockSpec((1, 8, Cout), lambda i: (i, 0, 0))],
        out_shape=[jax.ShapeDtypeStruct((R, Cout), jnp.float32),
                   jax.ShapeDtypeStruct((nt, 8, Cout), jnp.float32)],
        compiler_params=pltpu.CompilerParams(
            dimension_semantics=("parallel",),
            vmem_limit_bytes=_VMEM_LIMIT),
        cost_estimate=cost,
    )(*args)
    return y, st


def _conv3x3_stage(y1_4d, w2, scale, shift):
    N, H, W, P = y1_4d.shape
    cost = pl.CostEstimate(
        flops=int(2 * N * H * W * 9 * P * P), transcendentals=0,
        bytes_accessed=int(8 * N * H * W * P + 18 * P * P))
    y2, st = pl.pallas_call(
        _bn_relu_conv3x3_stats_kernel,
        grid=(N,),
        in_specs=[pl.BlockSpec((1, P), lambda n: (0, 0)),
                  pl.BlockSpec((1, P), lambda n: (0, 0)),
                  pl.BlockSpec((1, H, W, P), lambda n: (n, 0, 0, 0)),
                  pl.BlockSpec((9, P, P), lambda n: (0, 0, 0))],
        out_specs=[pl.BlockSpec((1, H, W, P), lambda n: (n, 0, 0, 0)),
                   pl.BlockSpec((1, 8, P), lambda n: (n, 0, 0))],
        out_shape=[jax.ShapeDtypeStruct((N, H, W, P), jnp.float32),
                   jax.ShapeDtypeStruct((N, 8, P), jnp.float32)],
        compiler_params=pltpu.CompilerParams(
            dimension_semantics=("parallel",),
            vmem_limit_bytes=_VMEM_LIMIT),
        cost_estimate=cost,
    )(scale, shift, y1_4d, w2)
    return y2, st


def _bn_add_relu_stage(y3, res, scale, shift, *, row_tile):
    R, C = y3.shape
    nt = R // row_tile
    cost = pl.CostEstimate(flops=int(3 * R * C), transcendentals=0,
                           bytes_accessed=int(12 * R * C))
    return pl.pallas_call(
        _bn_add_relu_kernel,
        grid=(nt,),
        in_specs=[pl.BlockSpec((1, C), lambda i: (0, 0)),
                  pl.BlockSpec((1, C), lambda i: (0, 0)),
                  pl.BlockSpec((row_tile, C), lambda i: (i, 0)),
                  pl.BlockSpec((row_tile, C), lambda i: (i, 0))],
        out_specs=pl.BlockSpec((row_tile, C), lambda i: (i, 0)),
        out_shape=jax.ShapeDtypeStruct((R, C), jnp.float32),
        compiler_params=pltpu.CompilerParams(
            dimension_semantics=("parallel",),
            vmem_limit_bytes=_VMEM_LIMIT),
        cost_estimate=cost,
    )(scale, shift, y3, res)


def _fold_bn(st_partials, gamma, beta, count):
    """Fold accumulated sum/sumsq into per-channel BN scale/shift (f32)."""
    s = jnp.sum(st_partials, axis=0)                       # (8, C)
    mu = s[0:1, :] / count
    var = jnp.maximum(s[1:2, :] / count - mu * mu, 0.0)    # clamp: rsqrt-safe
    scale = gamma * jax.lax.rsqrt(var + EPS)
    shift = beta - mu * scale
    return scale, shift


# --------------------------------------------------------------------------- #
# Full Bottleneck forward
# --------------------------------------------------------------------------- #
def bottleneck_forward(x_nchw, params, *, row_tile=512):
    """x_nchw: (N, Cin, H, W) f32, Cin == planes*4 (stride=1, downsample=None)."""
    x = jnp.transpose(x_nchw, (0, 2, 3, 1)).astype(jnp.float32)    # -> NHWC
    N, H, W, Cin = x.shape
    P = params["w1"].shape[1]
    Cout = params["w3"].shape[1]
    assert Cin == Cout, "downsample=None requires inplanes == planes * 4"

    Cip, Pp, Cop = _pad_to_lane(Cin), _pad_to_lane(P), _pad_to_lane(Cout)
    R = N * H * W
    tr = min(row_tile, R)
    while tr > 8 and R % tr != 0:
        tr //= 2
    if R % tr != 0:
        tr = R   # TODO(synk): pad rows + mask stats for awkward row counts

    # Lane-dense padding; padded channels stay exactly zero through the block
    # (zero weights, gamma_pad=1, beta_pad=0).
    dI, dP, dO = Cip - Cin, Pp - P, Cop - Cout
    x2d = jnp.pad(x, ((0, 0), (0, 0), (0, 0), (0, dI))).reshape(R, Cip)

    w1 = jnp.pad(params["w1"], ((0, dI), (0, dP))).astype(jnp.bfloat16)
    g1 = jnp.pad(params["g1"], ((0, 0), (0, dP)), constant_values=1.0)
    be1 = jnp.pad(params["be1"], ((0, 0), (0, dP)))

    w2 = jnp.pad(params["w2"], ((0, 0), (0, 0), (0, dP), (0, dP)))
    w2 = w2.reshape(9, Pp, Pp).astype(jnp.bfloat16)
    g2 = jnp.pad(params["g2"], ((0, 0), (0, dP)), constant_values=1.0)
    be2 = jnp.pad(params["be2"], ((0, 0), (0, dP)))

    w3 = jnp.pad(params["w3"], ((0, dP), (0, dO))).astype(jnp.bfloat16)
    g3 = jnp.pad(params["g3"], ((0, 0), (0, dO)), constant_values=1.0)
    be3 = jnp.pad(params["be3"], ((0, 0), (0, dO)))

    # conv biases b1/b2/b3 are intentionally not passed: a per-channel constant
    # before a train-mode BatchNorm is exactly cancelled by the mean sub.

    cnt = float(R)

    y1, st1 = _conv1x1_stage(x2d, w1, row_tile=tr)                  # conv1
    s1, t1 = _fold_bn(st1, g1, be1, cnt)

    y2, st2 = _conv3x3_stage(y1.reshape(N, H, W, Pp), w2, s1, t1)   # bn1+relu+conv2
    s2, t2 = _fold_bn(st2, g2, be2, cnt)

    y3, st3 = _conv1x1_stage(y2.reshape(R, Pp), w3, row_tile=tr,
                             scale=s2, shift=t2)                    # bn2+relu+conv3
    s3, t3 = _fold_bn(st3, g3, be3, cnt)

    out2d = _bn_add_relu_stage(y3, x2d, s3, t3, row_tile=tr)        # bn3+res+relu
    out = out2d.reshape(N, H, W, Cop)[..., :Cout]
    return jnp.transpose(out, (0, 3, 1, 2))                         # -> NCHW


# --------------------------------------------------------------------------- #
# Params + pure-JAX reference (self-contained correctness check)
# --------------------------------------------------------------------------- #
def init_params(key, inplanes, planes):
    exp = 4
    ks = jax.random.split(key, 12)
    f32 = jnp.float32

    def u(k, shape, scale=0.1):
        return (scale * jax.random.normal(k, shape)).astype(f32)

    return {
        # conv weights stored matmul-ready: (Cin, Cout) / (kh, kw, Cin, Cout)
        "w1": u(ks[0], (inplanes, planes)),
        "b1": u(ks[1], (1, planes)),          # bias=True in the module; BN cancels it
        "g1": 1.0 + u(ks[2], (1, planes), 0.05),
        "be1": u(ks[3], (1, planes), 0.05),
        "w2": u(ks[4], (3, 3, planes, planes)),
        "b2": u(ks[5], (1, planes)),
        "g2": 1.0 + u(ks[6], (1, planes), 0.05),
        "be2": u(ks[7], (1, planes), 0.05),
        "w3": u(ks[8], (planes, planes * exp)),
        "b3": u(ks[9], (1, planes * exp)),
        "g3": 1.0 + u(ks[10], (1, planes * exp), 0.05),
        "be3": u(ks[11], (1, planes * exp), 0.05),
    }


def bottleneck_ref(x_nchw, params):
    """Plain-JAX reference (includes conv biases, matched bf16 matmul operands)."""
    x = jnp.transpose(x_nchw, (0, 2, 3, 1)).astype(jnp.float32)
    N, H, W, _ = x.shape
    bf = jnp.bfloat16

    def bn(y, g, b):
        mu = jnp.mean(y, axis=(0, 1, 2), keepdims=True)
        var = jnp.mean(jnp.square(y - mu), axis=(0, 1, 2), keepdims=True)
        return g * (y - mu) * jax.lax.rsqrt(var + EPS) + b

    y = jnp.einsum("nhwc,cp->nhwp", x.astype(bf), params["w1"].astype(bf),
                   preferred_element_type=jnp.float32) + params["b1"]
    y = jax.nn.relu(bn(y, params["g1"], params["be1"]))

    yp = jnp.pad(y, ((0, 0), (1, 1), (1, 1), (0, 0)))
    acc = jnp.zeros_like(y)
    for kh in range(3):
        for kw in range(3):
            acc = acc + jnp.einsum(
                "nhwc,cp->nhwp",
                yp[:, kh:kh + H, kw:kw + W].astype(bf),
                params["w2"][kh, kw].astype(bf),
                preferred_element_type=jnp.float32)
    y = jax.nn.relu(bn(acc + params["b2"], params["g2"], params["be2"]))

    y = jnp.einsum("nhwp,pc->nhwc", y.astype(bf), params["w3"].astype(bf),
                   preferred_element_type=jnp.float32) + params["b3"]
    y = bn(y, params["g3"], params["be3"])
    out = jax.nn.relu(y + x)
    return jnp.transpose(out, (0, 3, 1, 2))


# --------------------------------------------------------------------------- #
if __name__ == "__main__":
    # stride=1, downsample=None  =>  inplanes must equal planes * expansion
    N, H, W = 2, 16, 16
    planes = 32
    inplanes = planes * 4          # 128

    key = jax.random.PRNGKey(0)
    kx, kp = jax.random.split(key)
    x = jax.random.normal(kx, (N, inplanes, H, W), dtype=jnp.float32)
    params = init_params(kp, inplanes, planes)

    # row_tile=128 -> 4-step grids on the 1x1 stages (exercises the multi-tile
    # BN stats path); use >= 512 rows/step for production shapes.
    fwd = jax.jit(functools.partial(bottleneck_forward, row_tile=128))
    out = jax.block_until_ready(fwd(x, params))
    assert out.shape == (N, inplanes, H, W)
    assert bool(jnp.isfinite(out).all())

    ref = jax.block_until_ready(bottleneck_ref(x, params))
    max_err = float(jnp.max(jnp.abs(out - ref)))
    assert max_err < 2e-2, f"max abs err vs reference: {max_err}"

    print("KERNEL_OK")
</pallas_src>

<mosaic_0001>
module attributes {stable_mosaic.version = 11 : i64} {
  func.func @_mm_stats_kernel(%arg0: i32, %arg1: memref<128x128xf32, #tpu.memory_space<vmem>>, %arg2: memref<128x128xbf16, #tpu.memory_space<vmem>>, %arg3: memref<128x128xf32, #tpu.memory_space<vmem>>, %arg4: memref<1x8x128xf32, #tpu.memory_space<vmem>>) attributes {dimension_semantics = [#tpu.dimension_semantics<parallel>], iteration_bounds = array<i64: 4>, scalar_prefetch = 0 : i64, scratch_operands = 0 : i64, tpu.core_type = #tpu.core_type<tc>, window_params = [{transform_indices = @transform_0, window_bounds = array<i64: 128, 128>}, {pipeline_mode = #tpu.pipeline_mode<synchronous>, transform_indices = @transform_1, window_bounds = array<i64: 128, 128>}, {transform_indices = @transform_2, window_bounds = array<i64: 128, 128>}, {transform_indices = @transform_3, window_bounds = array<i64: 1, 8, 128>}]} {
    %c0 = arith.constant 0 : index
    %c0_0 = arith.constant 0 : index
    %0 = vector.load %arg1[%c0, %c0_0] : memref<128x128xf32, #tpu.memory_space<vmem>>, vector<128x128xf32>
    %1 = arith.truncf %0 : vector<128x128xf32> to vector<128x128xbf16>
    %c0_1 = arith.constant 0 : index
    %c0_2 = arith.constant 0 : index
    %2 = vector.load %arg2[%c0_1, %c0_2] : memref<128x128xbf16, #tpu.memory_space<vmem>>, vector<128x128xbf16>
    %cst = arith.constant dense<0.000000e+00> : vector<128x128xf32>
    %3 = tpu.matmul %1, %2, %cst {dimension_numbers = #tpu.dot_dimension_numbers<[1], [0], [0], [1], [0, 0, 1, 1], [], []>} : vector<128x128xbf16>, vector<128x128xbf16>, vector<128x128xf32> -> vector<128x128xf32>
    %c0_3 = arith.constant 0 : index
    %c0_4 = arith.constant 0 : index
    %4 = vector.load %arg3[%c0_3, %c0_4] : memref<128x128xf32, #tpu.memory_space<vmem>>, vector<128x128xf32>
    tpu.vector_store %arg3[%c0_3, %c0_4], %3 {strides = array<i32>} : memref<128x128xf32, #tpu.memory_space<vmem>>, vector<128x128xf32>,
    %cst_5 = arith.constant dense<0.000000e+00> : vector<128xf32>
    %5 = vector.multi_reduction <add>, %3, %cst_5 [0] : vector<128x128xf32> to vector<128xf32>
    %6 = vector.shape_cast %5 : vector<128xf32> to vector<1x128xf32>
    %7 = arith.mulf %3, %3 : vector<128x128xf32>
    %cst_6 = arith.constant dense<0.000000e+00> : vector<128xf32>
    %8 = vector.multi_reduction <add>, %7, %cst_6 [0] : vector<128x128xf32> to vector<128xf32>
    %9 = vector.shape_cast %8 : vector<128xf32> to vector<1x128xf32>
    %cst_7 = arith.constant 0.000000e+00 : f32
    %10 = vector.broadcast %cst_7 : f32 to vector<6x128xf32>
    %11 = tpu.concatenate %6, %9, %10 in 0 : vector<1x128xf32>, vector<1x128xf32>, vector<6x128xf32> -> vector<8x128xf32>
    %12 = vector.shape_cast %11 : vector<8x128xf32> to vector<1x8x128xf32>
    %c0_8 = arith.constant 0 : index
    %c0_9 = arith.constant 0 : index
    %c0_10 = arith.constant 0 : index
    %13 = vector.load %arg4[%c0_8, %c0_9, %c0_10] : memref<1x8x128xf32, #tpu.memory_space<vmem>>, vector<1x8x128xf32>
    tpu.vector_store %arg4[%c0_8, %c0_9, %c0_10], %12 {strides = array<i32>} : memref<1x8x128xf32, #tpu.memory_space<vmem>>, vector<1x8x128xf32>,
    return
  }
  func.func @transform_0(%arg0: i32) -> (i32, i32) {
    %c0_i32 = arith.constant 0 : i32
    %c0_i32_0 = arith.constant 0 : i32
    return %arg0, %c0_i32 : i32, i32
  }
  func.func @transform_1(%arg0: i32) -> (i32, i32) {
    %c0_i32 = arith.constant 0 : i32
    %c0_i32_0 = arith.constant 0 : i32
    %c0_i32_1 = arith.constant 0 : i32
    return %c0_i32, %c0_i32_0 : i32, i32
  }
  func.func @transform_2(%arg0: i32) -> (i32, i32) {
    %c0_i32 = arith.constant 0 : i32
    %c0_i32_0 = arith.constant 0 : i32
    return %arg0, %c0_i32 : i32, i32
  }
  func.func @transform_3(%arg0: i32) -> (i32, i32, i32) {
    %c0_i32 = arith.constant 0 : i32
    %c0_i32_0 = arith.constant 0 : i32
    %c0_i32_1 = arith.constant 0 : i32
    return %arg0, %c0_i32, %c0_i32_0 : i32, i32, i32
  }
}

module attributes {stable_mosaic.version = 11 : i64} {
  func.func @_bn_relu_conv3x3_stats_kernel(%arg0: i32, %arg1: memref<1x128xf32, #tpu.memory_space<vmem>>, %arg2: memref<1x128xf32, #tpu.memory_space<vmem>>, %arg3: memref<1x16x16x128xf32, #tpu.memory_space<vmem>>, %arg4: memref<9x128x128xbf16, #tpu.memory_space<vmem>>, %arg5: memref<1x16x16x128xf32, #tpu.memory_space<vmem>>, %arg6: memref<1x8x128xf32, #tpu.memory_space<vmem>>) attributes {dimension_semantics = [#tpu.dimension_semantics<parallel>], iteration_bounds = array<i64: 2>, scalar_prefetch = 0 : i64, scratch_operands = 0 : i64, tpu.core_type = #tpu.core_type<tc>, window_params = [{pipeline_mode = #tpu.pipeline_mode<synchronous>, transform_indices = @transform_0, window_bounds = array<i64: 1, 128>}, {pipeline_mode = #tpu.pipeline_mode<synchronous>, transform_indices = @transform_1, window_bounds = array<i64: 1, 128>}, {transform_indices = @transform_2, window_bounds = array<i64: 1, 16, 16, 128>}, {pipeline_mode = #tpu.pipeline_mode<synchronous>, transform_indices = @transform_3, window_bounds = array<i64: 9, 128, 128>}, {transform_indices = @transform_4, window_bounds = array<i64: 1, 16, 16, 128>}, {transform_indices = @transform_5, window_bounds = array<i64: 1, 8, 128>}]} {
    %c0 = arith.constant 0 : index
    %c0_0 = arith.constant 0 : index
    %c0_1 = arith.constant 0 : index
    %c0_2 = arith.constant 0 : index
    %0 = vector.load %arg3[%c0, %c0_0, %c0_1, %c0_2] : memref<1x16x16x128xf32, #tpu.memory_space<vmem>>, vector<1x16x16x128xf32>
    %1 = vector.shape_cast %0 : vector<1x16x16x128xf32> to vector<256x128xf32>
    %c0_3 = arith.constant 0 : index
    %c0_4 = arith.constant 0 : index
    %2 = vector.load %arg1[%c0_3, %c0_4] : memref<1x128xf32, #tpu.memory_space<vmem>>, vector<1x128xf32>
    %3 = vector.broadcast %2 : vector<1x128xf32> to vector<256x128xf32>
    %4 = arith.mulf %1, %3 : vector<256x128xf32>
    %c0_5 = arith.constant 0 : index
    %c0_6 = arith.constant 0 : index
    %5 = vector.load %arg2[%c0_5, %c0_6] : memref<1x128xf32, #tpu.memory_space<vmem>>, vector<1x128xf32>
    %6 = vector.broadcast %5 : vector<1x128xf32> to vector<256x128xf32>
    %7 = arith.addf %4, %6 : vector<256x128xf32>
    %cst = arith.constant 0.000000e+00 : f32
    %8 = vector.broadcast %cst : f32 to vector<256x128xf32>
    %9 = arith.maximumf %7, %8 : vector<256x128xf32>
    %10 = arith.truncf %9 : vector<256x128xf32> to vector<256x128xbf16>
    %11 = vector.shape_cast %10 : vector<256x128xbf16> to vector<1x16x16x128xbf16>
    %12 = tpu.iota {dimensions = array<i32: 1>} : vector<1x16x16x1xi32>
    %13 = tpu.iota {dimensions = array<i32: 2>} : vector<1x16x16x1xi32>
    %cst_7 = arith.constant 0.000000e+00 : f32
    %14 = vector.broadcast %cst_7 : f32 to vector<256x128xf32>
    %15 = vector.extract_strided_slice %11 {offsets = [0, 15, 0, 0], sizes = [1, 1, 16, 128], strides = [1, 1, 1, 1]} : vector<1x16x16x128xbf16> to vector<1x1x16x128xbf16>
    %16 = vector.extract_strided_slice %11 {offsets = [0, 0, 0, 0], sizes = [1, 15, 16, 128], strides = [1, 1, 1, 1]} : vector<1x16x16x128xbf16> to vector<1x15x16x128xbf16>
    %17 = tpu.concatenate %15, %16 in 1 : vector<1x1x16x128xbf16>, vector<1x15x16x128xbf16> -> vector<1x16x16x128xbf16>
    %18 = vector.extract_strided_slice %17 {offsets = [0, 0, 15, 0], sizes = [1, 16, 1, 128], strides = [1, 1, 1, 1]} : vector<1x16x16x128xbf16> to vector<1x16x1x128xbf16>
    %19 = vector.extract_strided_slice %17 {offsets = [0, 0, 0, 0], sizes = [1, 16, 15, 128], strides = [1, 1, 1, 1]} : vector<1x16x16x128xbf16> to vector<1x16x15x128xbf16>
    %20 = tpu.concatenate %18, %19 in 2 : vector<1x16x1x128xbf16>, vector<1x16x15x128xbf16> -> vector<1x16x16x128xbf16>
    %c-1_i32 = arith.constant -1 : i32
    %21 = vector.broadcast %c-1_i32 : i32 to vector<1x16x16x1xi32>
    %22 = arith.addi %12, %21 : vector<1x16x16x1xi32>
    %c0_i32 = arith.constant 0 : i32
    %23 = vector.broadcast %c0_i32 : i32 to vector<1x16x16x1xi32>
    %24 = arith.cmpi sge, %22, %23 : vector<1x16x16x1xi32>
    %c-1_i32_8 = arith.constant -1 : i32
    %25 = vector.broadcast %c-1_i32_8 : i32 to vector<1x16x16x1xi32>
    %26 = arith.addi %12, %25 : vector<1x16x16x1xi32>
    %c16_i32 = arith.constant 16 : i32
    %27 = vector.broadcast %c16_i32 : i32 to vector<1x16x16x1xi32>
    %28 = arith.cmpi slt, %26, %27 : vector<1x16x16x1xi32>
    %29 = arith.andi %24, %28 : vector<1x16x16x1xi1>
    %c-1_i32_9 = arith.constant -1 : i32
    %30 = vector.broadcast %c-1_i32_9 : i32 to vector<1x16x16x1xi32>
    %31 = arith.addi %13, %30 : vector<1x16x16x1xi32>
    %c0_i32_10 = arith.constant 0 : i32
    %32 = vector.broadcast %c0_i32_10 : i32 to vector<1x16x16x1xi32>
    %33 = arith.cmpi sge, %31, %32 : vector<1x16x16x1xi32>
    %34 = arith.andi %29, %33 : vector<1x16x16x1xi1>
    %c-1_i32_11 = arith.constant -1 : i32
    %35 = vector.broadcast %c-1_i32_11 : i32 to vector<1x16x16x1xi32>
    %36 = arith.addi %13, %35 : vector<1x16x16x1xi32>
    %c16_i32_12 = arith.constant 16 : i32
    %37 = vector.broadcast %c16_i32_12 : i32 to vector<1x16x16x1xi32>
    %38 = arith.cmpi slt, %36, %37 : vector<1x16x16x1xi32>
    %39 = arith.andi %34, %38 : vector<1x16x16x1xi1>
    %cst_13 = arith.constant 0.000000e+00 : bf16
    %40 = vector.broadcast %cst_13 : bf16 to vector<1x16x16x128xbf16>
    %41 = vector.shape_cast %39 : vector<1x16x16x1xi1> to vector<1x16x16x1xi1>
    %42 = vector.broadcast %41 : vector<1x16x16x1xi1> to vector<1x16x16x128xi1>
    %43 = arith.select %42, %20, %40 : vector<1x16x16x128xi1>, vector<1x16x16x128xbf16>
    %44 = vector.shape_cast %43 : vector<1x16x16x128xbf16> to vector<256x128xbf16>
    %c0_14 = arith.constant 0 : index
    %c0_15 = arith.constant 0 : index
    %c0_16 = arith.constant 0 : index
    %45 = vector.load %arg4[%c0_14, %c0_15, %c0_16] : memref<9x128x128xbf16, #tpu.memory_space<vmem>>, vector<1x128x128xbf16>
    %46 = vector.shape_cast %45 : vector<1x128x128xbf16> to vector<128x128xbf16>
    %cst_17 = arith.constant dense<0.000000e+00> : vector<256x128xf32>
    %47 = tpu.matmul %44, %46, %cst_17 {dimension_numbers = #tpu.dot_dimension_numbers<[1], [0], [0], [1], [0, 0, 1, 1], [], []>} : vector<256x128xbf16>, vector<128x128xbf16>, vector<256x128xf32> -> vector<256x128xf32>
    %48 = arith.addf %14, %47 : vector<256x128xf32>
    %49 = vector.extract_strided_slice %11 {offsets = [0, 15, 0, 0], sizes = [1, 1, 16, 128], strides = [1, 1, 1, 1]} : vector<1x16x16x128xbf16> to vector<1x1x16x128xbf16>
    %50 = vector.extract_strided_slice %11 {offsets = [0, 0, 0, 0], sizes = [1, 15, 16, 128], strides = [1, 1, 1, 1]} : vector<1x16x16x128xbf16> to vector<1x15x16x128xbf16>
    %51 = tpu.concatenate %49, %50 in 1 : vector<1x1x16x128xbf16>, vector<1x15x16x128xbf16> -> vector<1x16x16x128xbf16>
    %c-1_i32_18 = arith.constant -1 : i32
    %52 = vector.broadcast %c-1_i32_18 : i32 to vector<1x16x16x1xi32>
    %53 = arith.addi %12, %52 : vector<1x16x16x1xi32>
    %c0_i32_19 = arith.constant 0 : i32
    %54 = vector.broadcast %c0_i32_19 : i32 to vector<1x16x16x1xi32>
    %55 = arith.cmpi sge, %53, %54 : vector<1x16x16x1xi32>
    %c-1_i32_20 = arith.constant -1 : i32
    %56 = vector.broadcast %c-1_i32_20 : i32 to vector<1x16x16x1xi32>
    %57 = arith.addi %12, %56 : vector<1x16x16x1xi32>
    %c16_i32_21 = arith.constant 16 : i32
    %58 = vector.broadcast %c16_i32_21 : i32 to vector<1x16x16x1xi32>
    %59 = arith.cmpi slt, %57, %58 : vector<1x16x16x1xi32>
    %60 = arith.andi %55, %59 : vector<1x16x16x1xi1>
    %c0_i32_22 = arith.constant 0 : i32
    %61 = vector.broadcast %c0_i32_22 : i32 to vector<1x16x16x1xi32>
    %62 = arith.addi %13, %61 : vector<1x16x16x1xi32>
    %c0_i32_23 = arith.constant 0 : i32
    %63 = vector.broadcast %c0_i32_23 : i32 to vector<1x16x16x1xi32>
    %64 = arith.cmpi sge, %62, %63 : vector<1x16x16x1xi32>
    %65 = arith.andi %60, %64 : vector<1x16x16x1xi1>
    %c0_i32_24 = arith.constant 0 : i32
    %66 = vector.broadcast %c0_i32_24 : i32 to vector<1x16x16x1xi32>
    %67 = arith.addi %13, %66 : vector<1x16x16x1xi32>
    %c16_i32_25 = arith.constant 16 : i32
    %68 = vector.broadcast %c16_i32_25 : i32 to vector<1x16x16x1xi32>
    %69 = arith.cmpi slt, %67, %68 : vector<1x16x16x1xi32>
    %70 = arith.andi %65, %69 : vector<1x16x16x1xi1>
    %cst_26 = arith.constant 0.000000e+00 : bf16
    %71 = vector.broadcast %cst_26 : bf16 to vector<1x16x16x128xbf16>
    %72 = vector.shape_cast %70 : vector<1x16x16x1xi1> to vector<1x16x16x1xi1>
    %73 = vector.broadcast %72 : vector<1x16x16x1xi1> to vector<1x16x16x128xi1>
    %74 = arith.select %73, %51, %71 : vector<1x16x16x128xi1>, vector<1x16x16x128xbf16>
    %75 = vector.shape_cast %74 : vector<1x16x16x128xbf16> to vector<256x128xbf16>
    %c1 = arith.constant 1 : index
    %c0_27 = arith.constant 0 : index
    %c0_28 = arith.constant 0 : index
    %76 = vector.load %arg4[%c1, %c0_27, %c0_28] : memref<9x128x128xbf16, #tpu.memory_space<vmem>>, vector<1x128x128xbf16>
    %77 = vector.shape_cast %76 : vector<1x128x128xbf16> to vector<128x128xbf16>
    %cst_29 = arith.constant dense<0.000000e+00> : vector<256x128xf32>
    %78 = tpu.matmul %75, %77, %cst_29 {dimension_numbers = #tpu.dot_dimension_numbers<[1], [0], [0], [1], [0, 0, 1, 1], [], []>} : vector<256x128xbf16>, vector<128x128xbf16>, vector<256x128xf32> -> vector<256x128xf32>
    %79 = arith.addf %48, %78 : vector<256x128xf32>
    %80 = vector.extract_strided_slice %11 {offsets = [0, 15, 0, 0], sizes = [1, 1, 16, 128], strides = [1, 1, 1, 1]} : vector<1x16x16x128xbf16> to vector<1x1x16x128xbf16>
    %81 = vector.extract_strided_slice %11 {offsets = [0, 0, 0, 0], sizes = [1, 15, 16, 128], strides = [1, 1, 1, 1]} : vector<1x16x16x128xbf16> to vector<1x15x16x128xbf16>
    %82 = tpu.concatenate %80, %81 in 1 : vector<1x1x16x128xbf16>, vector<1x15x16x128xbf16> -> vector<1x16x16x128xbf16>
    %83 = vector.extract_strided_slice %82 {offsets = [0, 0, 1, 0], sizes = [1, 16, 15, 128], strides = [1, 1, 1, 1]} : vector<1x16x16x128xbf16> to vector<1x16x15x128xbf16>
    %84 = vector.extract_strided_slice %82 {offsets = [0, 0, 0, 0], sizes = [1, 16, 1, 128], strides = [1, 1, 1, 1]} : vector<1x16x16x128xbf16> to vector<1x16x1x128xbf16>
    %85 = tpu.concatenate %83, %84 in 2 : vector<1x16x15x128xbf16>, vector<1x16x1x128xbf16> -> vector<1x16x16x128xbf16>
    %c-1_i32_30 = arith.constant -1 : i32
    %86 = vector.broadcast %c-1_i32_30 : i32 to vector<1x16x16x1xi32>
    %87 = arith.addi %12, %86 : vector<1x16x16x1xi32>
    %c0_i32_31 = arith.constant 0 : i32
    %88 = vector.broadcast %c0_i32_31 : i32 to vector<1x16x16x1xi32>
    %89 = arith.cmpi sge, %87, %88 : vector<1x16x16x1xi32>
    %c-1_i32_32 = arith.constant -1 : i32
    %90 = vector.broadcast %c-1_i32_32 : i32 to vector<1x16x16x1xi32>
    %91 = arith.addi %12, %90 : vector<1x16x16x1xi32>
    %c16_i32_33 = arith.constant 16 : i32
    %92 = vector.broadcast %c16_i32_33 : i32 to vector<1x16x16x1xi32>
    %93 = arith.cmpi slt, %91, %92 : vector<1x16x16x1xi32>
    %94 = arith.andi %89, %93 : vector<1x16x16x1xi1>
    %c1_i32 = arith.constant 1 : i32
    %95 = vector.broadcast %c1_i32 : i32 to vector<1x16x16x1xi32>
    %96 = arith.addi %13, %95 : vector<1x16x16x1xi32>
    %c0_i32_34 = arith.constant 0 : i32
    %97 = vector.broadcast %c0_i32_34 : i32 to vector<1x16x16x1xi32>
    %98 = arith.cmpi sge, %96, %97 : vector<1x16x16x1xi32>
    %99 = arith.andi %94, %98 : vector<1x16x16x1xi1>
    %c1_i32_35 = arith.constant 1 : i32
    %100 = vector.broadcast %c1_i32_35 : i32 to vector<1x16x16x1xi32>
    %101 = arith.addi %13, %100 : vector<1x16x16x1xi32>
    %c16_i32_36 = arith.constant 16 : i32
    %102 = vector.broadcast %c16_i32_36 : i32 to vector<1x16x16x1xi32>
    %103 = arith.cmpi slt, %101, %102 : vector<1x16x16x1xi32>
    %104 = arith.andi %99, %103 : vector<1x16x16x1xi1>
    %cst_37 = arith.constant 0.000000e+00 : bf16
    %105 = vector.broadcast %cst_37 : bf16 to vector<1x16x16x128xbf16>
    %106 = vector.shape_cast %104 : vector<1x16x16x1xi1> to vector<1x16x16x1xi1>
    %107 = vector.broadcast %106 : vector<1x16x16x1xi1> to vector<1x16x16x128xi1>
    %108 = arith.select %107, %85, %105 : vector<1x16x16x128xi1>, vector<1x16x16x128xbf16>
    %109 = vector.shape_cast %108 : vector<1x16x16x128xbf16> to vector<256x128xbf16>
    %c2 = arith.constant 2 : index
    %c0_38 = arith.constant 0 : index
    %c0_39 = arith.constant 0 : index
    %110 = vector.load %arg4[%c2, %c0_38, %c0_39] : memref<9x128x128xbf16, #tpu.memory_space<vmem>>, vector<1x128x128xbf16>
    %111 = vector.shape_cast %110 : vector<1x128x128xbf16> to vector<128x128xbf16>
    %cst_40 = arith.constant dense<0.000000e+00> : vector<256x128xf32>
    %112 = tpu.matmul %109, %111, %cst_40 {dimension_numbers = #tpu.dot_dimension_numbers<[1], [0], [0], [1], [0, 0, 1, 1], [], []>} : vector<256x128xbf16>, vector<128x128xbf16>, vector<256x128xf32> -> vector<256x128xf32>
    %113 = arith.addf %79, %112 : vector<256x128xf32>
    %114 = vector.extract_strided_slice %11 {offsets = [0, 0, 15, 0], sizes = [1, 16, 1, 128], strides = [1, 1, 1, 1]} : vector<1x16x16x128xbf16> to vector<1x16x1x128xbf16>
    %115 = vector.extract_strided_slice %11 {offsets = [0, 0, 0, 0], sizes = [1, 16, 15, 128], strides = [1, 1, 1, 1]} : vector<1x16x16x128xbf16> to vector<1x16x15x128xbf16>
    %116 = tpu.concatenate %114, %115 in 2 : vector<1x16x1x128xbf16>, vector<1x16x15x128xbf16> -> vector<1x16x16x128xbf16>
    %c0_i32_41 = arith.constant 0 : i32
    %117 = vector.broadcast %c0_i32_41 : i32 to vector<1x16x16x1xi32>
    %118 = arith.addi %12, %117 : vector<1x16x16x1xi32>
    %c0_i32_42 = arith.constant 0 : i32
    %119 = vector.broadcast %c0_i32_42 : i32 to vector<1x16x16x1xi32>
    %120 = arith.cmpi sge, %118, %119 : vector<1x16x16x1xi32>
    %c0_i32_43 = arith.constant 0 : i32
    %121 = vector.broadcast %c0_i32_43 : i32 to vector<1x16x16x1xi32>
    %122 = arith.addi %12, %121 : vector<1x16x16x1xi32>
    %c16_i32_44 = arith.constant 16 : i32
    %123 = vector.broadcast %c16_i32_44 : i32 to vector<1x16x16x1xi32>
    %124 = arith.cmpi slt, %122, %123 : vector<1x16x16x1xi32>
    %125 = arith.andi %120, %124 : vector<1x16x16x1xi1>
    %c-1_i32_45 = arith.constant -1 : i32
    %126 = vector.broadcast %c-1_i32_45 : i32 to vector<1x16x16x1xi32>
    %127 = arith.addi %13, %126 : vector<1x16x16x1xi32>
    %c0_i32_46 = arith.constant 0 : i32
    %128 = vector.broadcast %c0_i32_46 : i32 to vector<1x16x16x1xi32>
    %129 = arith.cmpi sge, %127, %128 : vector<1x16x16x1xi32>
    %130 = arith.andi %125, %129 : vector<1x16x16x1xi1>
    %c-1_i32_47 = arith.constant -1 : i32
    %131 = vector.broadcast %c-1_i32_47 : i32 to vector<1x16x16x1xi32>
    %132 = arith.addi %13, %131 : vector<1x16x16x1xi32>
    %c16_i32_48 = arith.constant 16 : i32
    %133 = vector.broadcast %c16_i32_48 : i32 to vector<1x16x16x1xi32>
    %134 = arith.cmpi slt, %132, %133 : vector<1x16x16x1xi32>
    %135 = arith.andi %130, %134 : vector<1x16x16x1xi1>
    %cst_49 = arith.constant 0.000000e+00 : bf16
    %136 = vector.broadcast %cst_49 : bf16 to vector<1x16x16x128xbf16>
    %137 = vector.shape_cast %135 : vector<1x16x16x1xi1> to vector<1x16x16x1xi1>
    %138 = vector.broadcast %137 : vector<1x16x16x1xi1> to vector<1x16x16x128xi1>
    %139 = arith.select %138, %116, %136 : vector<1x16x16x128xi1>, vector<1x16x16x128xbf16>
    %140 = vector.shape_cast %139 : vector<1x16x16x128xbf16> to vector<256x128xbf16>
    %c3 = arith.constant 3 : index
    %c0_50 = arith.constant 0 : index
    %c0_51 = arith.constant 0 : index
    %141 = vector.load %arg4[%c3, %c0_50, %c0_51] : memref<9x128x128xbf16, #tpu.memory_space<vmem>>, vector<1x128x128xbf16>
    %142 = vector.shape_cast %141 : vector<1x128x128xbf16> to vector<128x128xbf16>
    %cst_52 = arith.constant dense<0.000000e+00> : vector<256x128xf32>
    %143 = tpu.matmul %140, %142, %cst_52 {dimension_numbers = #tpu.dot_dimension_numbers<[1], [0], [0], [1], [0, 0, 1, 1], [], []>} : vector<256x128xbf16>, vector<128x128xbf16>, vector<256x128xf32> -> vector<256x128xf32>
    %144 = arith.addf %113, %143 : vector<256x128xf32>
    %145 = vector.shape_cast %11 : vector<1x16x16x128xbf16> to vector<256x128xbf16>
    %c4 = arith.constant 4 : index
    %c0_53 = arith.constant 0 : index
    %c0_54 = arith.constant 0 : index
    %146 = vector.load %arg4[%c4, %c0_53, %c0_54] : memref<9x128x128xbf16, #tpu.memory_space<vmem>>, vector<1x128x128xbf16>
    %147 = vector.shape_cast %146 : vector<1x128x128xbf16> to vector<128x128xbf16>
    %cst_55 = arith.constant dense<0.000000e+00> : vector<256x128xf32>
    %148 = tpu.matmul %145, %147, %cst_55 {dimension_numbers = #tpu.dot_dimension_numbers<[1], [0], [0], [1], [0, 0, 1, 1], [], []>} : vector<256x128xbf16>, vector<128x128xbf16>, vector<256x128xf32> -> vector<256x128xf32>
    %149 = arith.addf %144, %148 : vector<256x128xf32>
    %150 = vector.extract_strided_slice %11 {offsets = [0, 0, 1, 0], sizes = [1, 16, 15, 128], strides = [1, 1, 1, 1]} : vector<1x16x16x128xbf16> to vector<1x16x15x128xbf16>
    %151 = vector.extract_strided_slice %11 {offsets = [0, 0, 0, 0], sizes = [1, 16, 1, 128], strides = [1, 1, 1, 1]} : vector<1x16x16x128xbf16> to vector<1x16x1x128xbf16>
    %152 = tpu.concatenate %150, %151 in 2 : vector<1x16x15x128xbf16>, vector<1x16x1x128xbf16> -> vector<1x16x16x128xbf16>
    %c0_i32_56 = arith.constant 0 : i32
    %153 = vector.broadcast %c0_i32_56 : i32 to vector<1x16x16x1xi32>
    %154 = arith.addi %12, %153 : vector<1x16x16x1xi32>
    %c0_i32_57 = arith.constant 0 : i32
    %155 = vector.broadcast %c0_i32_57 : i32 to vector<1x16x16x1xi32>
    %156 = arith.cmpi sge, %154, %155 : vector<1x16x16x1xi32>
    %c0_i32_58 = arith.constant 0 : i32
    %157 = vector.broadcast %c0_i32_58 : i32 to vector<1x16x16x1xi32>
    %158 = arith.addi %12, %157 : vector<1x16x16x1xi32>
    %c16_i32_59 = arith.constant 16 : i32
    %159 = vector.broadcast %c16_i32_59 : i32 to vector<1x16x16x1xi32>
    %160 = arith.cmpi slt, %158, %159 : vector<1x16x16x1xi32>
    %161 = arith.andi %156, %160 : vector<1x16x16x1xi1>
    %c1_i32_60 = arith.constant 1 : i32
    %162 = vector.broadcast %c1_i32_60 : i32 to vector<1x16x16x1xi32>
    %163 = arith.addi %13, %162 : vector<1x16x16x1xi32>
    %c0_i32_61 = arith.constant 0 : i32
    %164 = vector.broadcast %c0_i32_61 : i32 to vector<1x16x16x1xi32>
    %165 = arith.cmpi sge, %163, %164 : vector<1x16x16x1xi32>
    %166 = arith.andi %161, %165 : vector<1x16x16x1xi1>
    %c1_i32_62 = arith.constant 1 : i32
    %167 = vector.broadcast %c1_i32_62 : i32 to vector<1x16x16x1xi32>
    %168 = arith.addi %13, %167 : vector<1x16x16x1xi32>
    %c16_i32_63 = arith.constant 16 : i32
    %169 = vector.broadcast %c16_i32_63 : i32 to vector<1x16x16x1xi32>
    %170 = arith.cmpi slt, %168, %169 : vector<1x16x16x1xi32>
    %171 = arith.andi %166, %170 : vector<1x16x16x1xi1>
    %cst_64 = arith.constant 0.000000e+00 : bf16
    %172 = vector.broadcast %cst_64 : bf16 to vector<1x16x16x128xbf16>
    %173 = vector.shape_cast %171 : vector<1x16x16x1xi1> to vector<1x16x16x1xi1>
    %174 = vector.broadcast %173 : vector<1x16x16x1xi1> to vector<1x16x16x128xi1>
    %175 = arith.select %174, %152, %172 : vector<1x16x16x128xi1>, vector<1x16x16x128xbf16>
    %176 = vector.shape_cast %175 : vector<1x16x16x128xbf16> to vector<256x128xbf16>
    %c5 = arith.constant 5 : index
    %c0_65 = arith.constant 0 : index
    %c0_66 = arith.constant 0 : index
    %177 = vector.load %arg4[%c5, %c0_65, %c0_66] : memref<9x128x128xbf16, #tpu.memory_space<vmem>>, vector<1x128x128xbf16>
    %178 = vector.shape_cast %177 : vector<1x128x128xbf16> to vector<128x128xbf16>
    %cst_67 = arith.constant dense<0.000000e+00> : vector<256x128xf32>
    %179 = tpu.matmul %176, %178, %cst_67 {dimension_numbers = #tpu.dot_dimension_numbers<[1], [0], [0], [1], [0, 0, 1, 1], [], []>} : vector<256x128xbf16>, vector<128x128xbf16>, vector<256x128xf32> -> vector<256x128xf32>
    %180 = arith.addf %149, %179 : vector<256x128xf32>
    %181 = vector.extract_strided_slice %11 {offsets = [0, 1, 0, 0], sizes = [1, 15, 16, 128], strides = [1, 1, 1, 1]} : vector<1x16x16x128xbf16> to vector<1x15x16x128xbf16>
    %182 = vector.extract_strided_slice %11 {offsets = [0, 0, 0, 0], sizes = [1, 1, 16, 128], strides = [1, 1, 1, 1]} : vector<1x16x16x128xbf16> to vector<1x1x16x128xbf16>
    %183 = tpu.concatenate %181, %182 in 1 : vector<1x15x16x128xbf16>, vector<1x1x16x128xbf16> -> vector<1x16x16x128xbf16>
    %184 = vector.extract_strided_slice %183 {offsets = [0, 0, 15, 0], sizes = [1, 16, 1, 128], strides = [1, 1, 1, 1]} : vector<1x16x16x128xbf16> to vector<1x16x1x128xbf16>
    %185 = vector.extract_strided_slice %183 {offsets = [0, 0, 0, 0], sizes = [1, 16, 15, 128], strides = [1, 1, 1, 1]} : vector<1x16x16x128xbf16> to vector<1x16x15x128xbf16>
    %186 = tpu.concatenate %184, %185 in 2 : vector<1x16x1x128xbf16>, vector<1x16x15x128xbf16> -> vector<1x16x16x128xbf16>
    %c1_i32_68 = arith.constant 1 : i32
    %187 = vector.broadcast %c1_i32_68 : i32 to vector<1x16x16x1xi32>
    %188 = arith.addi %12, %187 : vector<1x16x16x1xi32>
    %c0_i32_69 = arith.constant 0 : i32
    %189 = vector.broadcast %c0_i32_69 : i32 to vector<1x16x16x1xi32>
    %190 = arith.cmpi sge, %188, %189 : vector<1x16x16x1xi32>
    %c1_i32_70 = arith.constant 1 : i32
    %191 = vector.broadcast %c1_i32_70 : i32 to vector<1x16x16x1xi32>
    %192 = arith.addi %12, %191 : vector<1x16x16x1xi32>
    %c16_i32_71 = arith.constant 16 : i32
    %193 = vector.broadcast %c16_i32_71 : i32 to vector<1x16x16x1xi32>
    %194 = arith.cmpi slt, %192, %193 : vector<1x16x16x1xi32>
    %195 = arith.andi %190, %194 : vector<1x16x16x1xi1>
    %c-1_i32_72 = arith.constant -1 : i32
    %196 = vector.broadcast %c-1_i32_72 : i32 to vector<1x16x16x1xi32>
    %197 = arith.addi %13, %196 : vector<1x16x16x1xi32>
    %c0_i32_73 = arith.constant 0 : i32
    %198 = vector.broadcast %c0_i32_73 : i32 to vector<1x16x16x1xi32>
    %199 = arith.cmpi sge, %197, %198 : vector<1x16x16x1xi32>
    %200 = arith.andi %195, %199 : vector<1x16x16x1xi1>
    %c-1_i32_74 = arith.constant -1 : i32
    %201 = vector.broadcast %c-1_i32_74 : i32 to vector<1x16x16x1xi32>
    %202 = arith.addi %13, %201 : vector<1x16x16x1xi32>
    %c16_i32_75 = arith.constant 16 : i32
    %203 = vector.broadcast %c16_i32_75 : i32 to vector<1x16x16x1xi32>
    %204 = arith.cmpi slt, %202, %203 : vector<1x16x16x1xi32>
    %205 = arith.andi %200, %204 : vector<1x16x16x1xi1>
    %cst_76 = arith.constant 0.000000e+00 : bf16
    %206 = vector.broadcast %cst_76 : bf16 to vector<1x16x16x128xbf16>
    %207 = vector.shape_cast %205 : vector<1x16x16x1xi1> to vector<1x16x16x1xi1>
    %208 = vector.broadcast %207 : vector<1x16x16x1xi1> to vector<1x16x16x128xi1>
    %209 = arith.select %208, %186, %206 : vector<1x16x16x128xi1>, vector<1x16x16x128xbf16>
    %210 = vector.shape_cast %209 : vector<1x16x16x128xbf16> to vector<256x128xbf16>
    %c6 = arith.constant 6 : index
    %c0_77 = arith.constant 0 : index
    %c0_78 = arith.constant 0 : index
    %211 = vector.load %arg4[%c6, %c0_77, %c0_78] : memref<9x128x128xbf16, #tpu.memory_space<vmem>>, vector<1x128x128xbf16>
    %212 = vector.shape_cast %211 : vector<1x128x128xbf16> to vector<128x128xbf16>
    %cst_79 = arith.constant dense<0.000000e+00> : vector<256x128xf32>
    %213 = tpu.matmul %210, %212, %cst_79 {dimension_numbers = #tpu.dot_dimension_numbers<[1], [0], [0], [1], [0, 0, 1, 1], [], []>} : vector<256x128xbf16>, vector<128x128xbf16>, vector<256x128xf32> -> vector<256x128xf32>
    %214 = arith.addf %180, %213 : vector<256x128xf32>
    %215 = vector.extract_strided_slice %11 {offsets = [0, 1, 0, 0], sizes = [1, 15, 16, 128], strides = [1, 1, 1, 1]} : vector<1x16x16x128xbf16> to vector<1x15x16x128xbf16>
    %216 = vector.extract_strided_slice %11 {offsets = [0, 0, 0, 0], sizes = [1, 1, 16, 128], strides = [1, 1, 1, 1]} : vector<1x16x16x128xbf16> to vector<1x1x16x128xbf16>
    %217 = tpu.concatenate %215, %216 in 1 : vector<1x15x16x128xbf16>, vector<1x1x16x128xbf16> -> vector<1x16x16x128xbf16>
    %c1_i32_80 = arith.constant 1 : i32
    %218 = vector.broadcast %c1_i32_80 : i32 to vector<1x16x16x1xi32>
    %219 = arith.addi %12, %218 : vector<1x16x16x1xi32>
    %c0_i32_81 = arith.constant 0 : i32
    %220 = vector.broadcast %c0_i32_81 : i32 to vector<1x16x16x1xi32>
    %221 = arith.cmpi sge, %219, %220 : vector<1x16x16x1xi32>
    %c1_i32_82 = arith.constant 1 : i32
    %222 = vector.broadcast %c1_i32_82 : i32 to vector<1x16x16x1xi32>
    %223 = arith.addi %12, %222 : vector<1x16x16x1xi32>
    %c16_i32_83 = arith.constant 16 : i32
    %224 = vector.broadcast %c16_i32_83 : i32 to vector<1x16x16x1xi32>
    %225 = arith.cmpi slt, %223, %224 : vector<1x16x16x1xi32>
    %226 = arith.andi %221, %225 : vector<1x16x16x1xi1>
    %c0_i32_84 = arith.constant 0 : i32
    %227 = vector.broadcast %c0_i32_84 : i32 to vector<1x16x16x1xi32>
    %228 = arith.addi %13, %227 : vector<1x16x16x1xi32>
    %c0_i32_85 = arith.constant 0 : i32
    %229 = vector.broadcast %c0_i32_85 : i32 to vector<1x16x16x1xi32>
    %230 = arith.cmpi sge, %228, %229 : vector<1x16x16x1xi32>
    %231 = arith.andi %226, %230 : vector<1x16x16x1xi1>
    %c0_i32_86 = arith.constant 0 : i32
    %232 = vector.broadcast %c0_i32_86 : i32 to vector<1x16x16x1xi32>
    %233 = arith.addi %13, %232 : vector<1x16x16x1xi32>
    %c16_i32_87 = arith.constant 16 : i32
    %234 = vector.broadcast %c16_i32_87 : i32 to vector<1x16x16x1xi32>
    %235 = arith.cmpi slt, %233, %234 : vector<1x16x16x1xi32>
    %236 = arith.andi %231, %235 : vector<1x16x16x1xi1>
    %cst_88 = arith.constant 0.000000e+00 : bf16
    %237 = vector.broadcast %cst_88 : bf16 to vector<1x16x16x128xbf16>
    %238 = vector.shape_cast %236 : vector<1x16x16x1xi1> to vector<1x16x16x1xi1>
    %239 = vector.broadcast %238 : vector<1x16x16x1xi1> to vector<1x16x16x128xi1>
    %240 = arith.select %239, %217, %237 : vector<1x16x16x128xi1>, vector<1x16x16x128xbf16>
    %241 = vector.shape_cast %240 : vector<1x16x16x128xbf16> to vector<256x128xbf16>
    %c7 = arith.constant 7 : index
    %c0_89 = arith.constant 0 : index
    %c0_90 = arith.constant 0 : index
    %242 = vector.load %arg4[%c7, %c0_89, %c0_90] : memref<9x128x128xbf16, #tpu.memory_space<vmem>>, vector<1x128x128xbf16>
    %243 = vector.shape_cast %242 : vector<1x128x128xbf16> to vector<128x128xbf16>
    %cst_91 = arith.constant dense<0.000000e+00> : vector<256x128xf32>
    %244 = tpu.matmul %241, %243, %cst_91 {dimension_numbers = #tpu.dot_dimension_numbers<[1], [0], [0], [1], [0, 0, 1, 1], [], []>} : vector<256x128xbf16>, vector<128x128xbf16>, vector<256x128xf32> -> vector<256x128xf32>
    %245 = arith.addf %214, %244 : vector<256x128xf32>
    %246 = vector.extract_strided_slice %11 {offsets = [0, 1, 0, 0], sizes = [1, 15, 16, 128], strides = [1, 1, 1, 1]} : vector<1x16x16x128xbf16> to vector<1x15x16x128xbf16>
    %247 = vector.extract_strided_slice %11 {offsets = [0, 0, 0, 0], sizes = [1, 1, 16, 128], strides = [1, 1, 1, 1]} : vector<1x16x16x128xbf16> to vector<1x1x16x128xbf16>
    %248 = tpu.concatenate %246, %247 in 1 : vector<1x15x16x128xbf16>, vector<1x1x16x128xbf16> -> vector<1x16x16x128xbf16>
    %249 = vector.extract_strided_slice %248 {offsets = [0, 0, 1, 0], sizes = [1, 16, 15, 128], strides = [1, 1, 1, 1]} : vector<1x16x16x128xbf16> to vector<1x16x15x128xbf16>
    %250 = vector.extract_strided_slice %248 {offsets = [0, 0, 0, 0], sizes = [1, 16, 1, 128], strides = [1, 1, 1, 1]} : vector<1x16x16x128xbf16> to vector<1x16x1x128xbf16>
    %251 = tpu.concatenate %249, %250 in 2 : vector<1x16x15x128xbf16>, vector<1x16x1x128xbf16> -> vector<1x16x16x128xbf16>
    %c1_i32_92 = arith.constant 1 : i32
    %252 = vector.broadcast %c1_i32_92 : i32 to vector<1x16x16x1xi32>
    %253 = arith.addi %12, %252 : vector<1x16x16x1xi32>
    %c0_i32_93 = arith.constant 0 : i32
    %254 = vector.broadcast %c0_i32_93 : i32 to vector<1x16x16x1xi32>
    %255 = arith.cmpi sge, %253, %254 : vector<1x16x16x1xi32>
    %c1_i32_94 = arith.constant 1 : i32
    %256 = vector.broadcast %c1_i32_94 : i32 to vector<1x16x16x1xi32>
    %257 = arith.addi %12, %256 : vector<1x16x16x1xi32>
    %c16_i32_95 = arith.constant 16 : i32
    %258 = vector.broadcast %c16_i32_95 : i32 to vector<1x16x16x1xi32>
    %259 = arith.cmpi slt, %257, %258 : vector<1x16x16x1xi32>
    %260 = arith.andi %255, %259 : vector<1x16x16x1xi1>
    %c1_i32_96 = arith.constant 1 : i32
    %261 = vector.broadcast %c1_i32_96 : i32 to vector<1x16x16x1xi32>
    %262 = arith.addi %13, %261 : vector<1x16x16x1xi32>
    %c0_i32_97 = arith.constant 0 : i32
    %263 = vector.broadcast %c0_i32_97 : i32 to vector<1x16x16x1xi32>
    %264 = arith.cmpi sge, %262, %263 : vector<1x16x16x1xi32>
    %265 = arith.andi %260, %264 : vector<1x16x16x1xi1>
    %c1_i32_98 = arith.constant 1 : i32
    %266 = vector.broadcast %c1_i32_98 : i32 to vector<1x16x16x1xi32>
    %267 = arith.addi %13, %266 : vector<1x16x16x1xi32>
    %c16_i32_99 = arith.constant 16 : i32
    %268 = vector.broadcast %c16_i32_99 : i32 to vector<1x16x16x1xi32>
    %269 = arith.cmpi slt, %267, %268 : vector<1x16x16x1xi32>
    %270 = arith.andi %265, %269 : vector<1x16x16x1xi1>
    %cst_100 = arith.constant 0.000000e+00 : bf16
    %271 = vector.broadcast %cst_100 : bf16 to vector<1x16x16x128xbf16>
    %272 = vector.shape_cast %270 : vector<1x16x16x1xi1> to vector<1x16x16x1xi1>
    %273 = vector.broadcast %272 : vector<1x16x16x1xi1> to vector<1x16x16x128xi1>
    %274 = arith.select %273, %251, %271 : vector<1x16x16x128xi1>, vector<1x16x16x128xbf16>
    %275 = vector.shape_cast %274 : vector<1x16x16x128xbf16> to vector<256x128xbf16>
    %c8 = arith.constant 8 : index
    %c0_101 = arith.constant 0 : index
    %c0_102 = arith.constant 0 : index
    %276 = vector.load %arg4[%c8, %c0_101, %c0_102] : memref<9x128x128xbf16, #tpu.memory_space<vmem>>, vector<1x128x128xbf16>
    %277 = vector.shape_cast %276 : vector<1x128x128xbf16> to vector<128x128xbf16>
    %cst_103 = arith.constant dense<0.000000e+00> : vector<256x128xf32>
    %278 = tpu.matmul %275, %277, %cst_103 {dimension_numbers = #tpu.dot_dimension_numbers<[1], [0], [0], [1], [0, 0, 1, 1], [], []>} : vector<256x128xbf16>, vector<128x128xbf16>, vector<256x128xf32> -> vector<256x128xf32>
    %279 = arith.addf %245, %278 : vector<256x128xf32>
    %280 = vector.shape_cast %279 : vector<256x128xf32> to vector<1x16x16x128xf32>
    %c0_104 = arith.constant 0 : index
    %c0_105 = arith.constant 0 : index
    %c0_106 = arith.constant 0 : index
    %c0_107 = arith.constant 0 : index
    %281 = vector.load %arg5[%c0_104, %c0_105, %c0_106, %c0_107] : memref<1x16x16x128xf32, #tpu.memory_space<vmem>>, vector<1x16x16x128xf32>
    tpu.vector_store %arg5[%c0_104, %c0_105, %c0_106, %c0_107], %280 {strides = array<i32>} : memref<1x16x16x128xf32, #tpu.memory_space<vmem>>, vector<1x16x16x128xf32>,
    %cst_108 = arith.constant dense<0.000000e+00> : vector<128xf32>
    %282 = vector.multi_reduction <add>, %279, %cst_108 [0] : vector<256x128xf32> to vector<128xf32>
    %283 = vector.shape_cast %282 : vector<128xf32> to vector<1x128xf32>
    %284 = arith.mulf %279, %279 : vector<256x128xf32>
    %cst_109 = arith.constant dense<0.000000e+00> : vector<128xf32>
    %285 = vector.multi_reduction <add>, %284, %cst_109 [0] : vector<256x128xf32> to vector<128xf32>
    %286 = vector.shape_cast %285 : vector<128xf32> to vector<1x128xf32>
    %cst_110 = arith.constant 0.000000e+00 : f32
    %287 = vector.broadcast %cst_110 : f32 to vector<6x128xf32>
    %288 = tpu.concatenate %283, %286, %287 in 0 : vector<1x128xf32>, vector<1x128xf32>, vector<6x128xf32> -> vector<8x128xf32>
    %289 = vector.shape_cast %288 : vector<8x128xf32> to vector<1x8x128xf32>
    %c0_111 = arith.constant 0 : index
    %c0_112 = arith.constant 0 : index
    %c0_113 = arith.constant 0 : index
    %290 = vector.load %arg6[%c0_111, %c0_112, %c0_113] : memref<1x8x128xf32, #tpu.memory_space<vmem>>, vector<1x8x128xf32>
    tpu.vector_store %arg6[%c0_111, %c0_112, %c0_113], %289 {strides = array<i32>} : memref<1x8x128xf32, #tpu.memory_space<vmem>>, vector<1x8x128xf32>,
    return
  }
  func.func @transform_0(%arg0: i32) -> (i32, i32) {
    %c0_i32 = arith.constant 0 : i32
    %c0_i32_0 = arith.constant 0 : i32
    %c0_i32_1 = arith.constant 0 : i32
    return %c0_i32, %c0_i32_0 : i32, i32
  }
  func.func @transform_1(%arg0: i32) -> (i32, i32) {
    %c0_i32 = arith.constant 0 : i32
    %c0_i32_0 = arith.constant 0 : i32
    %c0_i32_1 = arith.constant 0 : i32
    return %c0_i32, %c0_i32_0 : i32, i32
  }
  func.func @transform_2(%arg0: i32) -> (i32, i32, i32, i32) {
    %c0_i32 = arith.constant 0 : i32
    %c0_i32_0 = arith.constant 0 : i32
    %c0_i32_1 = arith.constant 0 : i32
    %c0_i32_2 = arith.constant 0 : i32
    return %arg0, %c0_i32, %c0_i32_0, %c0_i32_1 : i32, i32, i32, i32
  }
  func.func @transform_3(%arg0: i32) -> (i32, i32, i32) {
    %c0_i32 = arith.constant 0 : i32
    %c0_i32_0 = arith.constant 0 : i32
    %c0_i32_1 = arith.constant 0 : i32
    %c0_i32_2 = arith.constant 0 : i32
    return %c0_i32, %c0_i32_0, %c0_i32_1 : i32, i32, i32
  }
  func.func @transform_4(%arg0: i32) -> (i32, i32, i32, i32) {
    %c0_i32 = arith.constant 0 : i32
    %c0_i32_0 = arith.constant 0 : i32
    %c0_i32_1 = arith.constant 0 : i32
    %c0_i32_2 = arith.constant 0 : i32
    return %arg0, %c0_i32, %c0_i32_0, %c0_i32_1 : i32, i32, i32, i32
  }
  func.func @transform_5(%arg0: i32) -> (i32, i32, i32) {
    %c0_i32 = arith.constant 0 : i32
    %c0_i32_0 = arith.constant 0 : i32
    %c0_i32_1 = arith.constant 0 : i32
    return %arg0, %c0_i32, %c0_i32_0 : i32, i32, i32
  }
}

module attributes {stable_mosaic.version = 11 : i64} {
  func.func @_bn_add_relu_kernel(%arg0: i32, %arg1: memref<1x128xf32, #tpu.memory_space<vmem>>, %arg2: memref<1x128xf32, #tpu.memory_space<vmem>>, %arg3: memref<128x128xf32, #tpu.memory_space<vmem>>, %arg4: memref<128x128xf32, #tpu.memory_space<vmem>>, %arg5: memref<128x128xf32, #tpu.memory_space<vmem>>) attributes {dimension_semantics = [#tpu.dimension_semantics<parallel>], iteration_bounds = array<i64: 4>, scalar_prefetch = 0 : i64, scratch_operands = 0 : i64, tpu.core_type = #tpu.core_type<tc>, window_params = [{pipeline_mode = #tpu.pipeline_mode<synchronous>, transform_indices = @transform_0, window_bounds = array<i64: 1, 128>}, {pipeline_mode = #tpu.pipeline_mode<synchronous>, transform_indices = @transform_1, window_bounds = array<i64: 1, 128>}, {transform_indices = @transform_2, window_bounds = array<i64: 128, 128>}, {transform_indices = @transform_3, window_bounds = array<i64: 128, 128>}, {transform_indices = @transform_4, window_bounds = array<i64: 128, 128>}]} {
    %c0 = arith.constant 0 : index
    %c0_0 = arith.constant 0 : index
    %0 = vector.load %arg3[%c0, %c0_0] : memref<128x128xf32, #tpu.memory_space<vmem>>, vector<128x128xf32>
    %c0_1 = arith.constant 0 : index
    %c0_2 = arith.constant 0 : index
    %1 = vector.load %arg1[%c0_1, %c0_2] : memref<1x128xf32, #tpu.memory_space<vmem>>, vector<1x128xf32>
    %2 = vector.broadcast %1 : vector<1x128xf32> to vector<128x128xf32>
    %3 = arith.mulf %0, %2 : vector<128x128xf32>
    %c0_3 = arith.constant 0 : index
    %c0_4 = arith.constant 0 : index
    %4 = vector.load %arg2[%c0_3, %c0_4] : memref<1x128xf32, #tpu.memory_space<vmem>>, vector<1x128xf32>
    %5 = vector.broadcast %4 : vector<1x128xf32> to vector<128x128xf32>
    %6 = arith.addf %3, %5 : vector<128x128xf32>
    %c0_5 = arith.constant 0 : index
    %c0_6 = arith.constant 0 : index
    %7 = vector.load %arg4[%c0_5, %c0_6] : memref<128x128xf32, #tpu.memory_space<vmem>>, vector<128x128xf32>
    %8 = arith.addf %6, %7 : vector<128x128xf32>
    %cst = arith.constant 0.000000e+00 : f32
    %9 = vector.broadcast %cst : f32 to vector<128x128xf32>
    %10 = arith.maximumf %8, %9 : vector<128x128xf32>
    %c0_7 = arith.constant 0 : index
    %c0_8 = arith.constant 0 : index
    %11 = vector.load %arg5[%c0_7, %c0_8] : memref<128x128xf32, #tpu.memory_space<vmem>>, vector<128x128xf32>
    tpu.vector_store %arg5[%c0_7, %c0_8], %10 {strides = array<i32>} : memref<128x128xf32, #tpu.memory_space<vmem>>, vector<128x128xf32>,
    return
  }
  func.func @transform_0(%arg0: i32) -> (i32, i32) {
    %c0_i32 = arith.constant 0 : i32
    %c0_i32_0 = arith.constant 0 : i32
    %c0_i32_1 = arith.constant 0 : i32
    return %c0_i32, %c0_i32_0 : i32, i32
  }
  func.func @transform_1(%arg0: i32) -> (i32, i32) {
    %c0_i32 = arith.constant 0 : i32
    %c0_i32_0 = arith.constant 0 : i32
    %c0_i32_1 = arith.constant 0 : i32
    return %c0_i32, %c0_i32_0 : i32, i32
  }
  func.func @transform_2(%arg0: i32) -> (i32, i32) {
    %c0_i32 = arith.constant 0 : i32
    %c0_i32_0 = arith.constant 0 : i32
    return %arg0, %c0_i32 : i32, i32
  }
  func.func @transform_3(%arg0: i32) -> (i32, i32) {
    %c0_i32 = arith.constant 0 : i32
    %c0_i32_0 = arith.constant 0 : i32
    return %arg0, %c0_i32 : i32, i32
  }
  func.func @transform_4(%arg0: i32) -> (i32, i32) {
    %c0_i32 = arith.constant 0 : i32
    %c0_i32_0 = arith.constant 0 : i32
    return %arg0, %c0_i32 : i32, i32
  }
}

module attributes {stable_mosaic.version = 11 : i64} {
  func.func @_mm_stats_kernel(%arg0: i32, %arg1: memref<1x128xf32, #tpu.memory_space<vmem>>, %arg2: memref<1x128xf32, #tpu.memory_space<vmem>>, %arg3: memref<128x128xf32, #tpu.memory_space<vmem>>, %arg4: memref<128x128xbf16, #tpu.memory_space<vmem>>, %arg5: memref<128x128xf32, #tpu.memory_space<vmem>>, %arg6: memref<1x8x128xf32, #tpu.memory_space<vmem>>) attributes {dimension_semantics = [#tpu.dimension_semantics<parallel>], iteration_bounds = array<i64: 4>, scalar_prefetch = 0 : i64, scratch_operands = 0 : i64, tpu.core_type = #tpu.core_type<tc>, window_params = [{pipeline_mode = #tpu.pipeline_mode<synchronous>, transform_indices = @transform_0, window_bounds = array<i64: 1, 128>}, {pipeline_mode = #tpu.pipeline_mode<synchronous>, transform_indices = @transform_1, window_bounds = array<i64: 1, 128>}, {transform_indices = @transform_2, window_bounds = array<i64: 128, 128>}, {pipeline_mode = #tpu.pipeline_mode<synchronous>, transform_indices = @transform_3, window_bounds = array<i64: 128, 128>}, {transform_indices = @transform_4, window_bounds = array<i64: 128, 128>}, {transform_indices = @transform_5, window_bounds = array<i64: 1, 8, 128>}]} {
    %c0 = arith.constant 0 : index
    %c0_0 = arith.constant 0 : index
    %0 = vector.load %arg3[%c0, %c0_0] : memref<128x128xf32, #tpu.memory_space<vmem>>, vector<128x128xf32>
    %c0_1 = arith.constant 0 : index
    %c0_2 = arith.constant 0 : index
    %1 = vector.load %arg1[%c0_1, %c0_2] : memref<1x128xf32, #tpu.memory_space<vmem>>, vector<1x128xf32>
    %2 = vector.broadcast %1 : vector<1x128xf32> to vector<128x128xf32>
    %3 = arith.mulf %0, %2 : vector<128x128xf32>
    %c0_3 = arith.constant 0 : index
    %c0_4 = arith.constant 0 : index
    %4 = vector.load %arg2[%c0_3, %c0_4] : memref<1x128xf32, #tpu.memory_space<vmem>>, vector<1x128xf32>
    %5 = vector.broadcast %4 : vector<1x128xf32> to vector<128x128xf32>
    %6 = arith.addf %3, %5 : vector<128x128xf32>
    %cst = arith.constant 0.000000e+00 : f32
    %7 = vector.broadcast %cst : f32 to vector<128x128xf32>
    %8 = arith.maximumf %6, %7 : vector<128x128xf32>
    %9 = arith.truncf %8 : vector<128x128xf32> to vector<128x128xbf16>
    %c0_5 = arith.constant 0 : index
    %c0_6 = arith.constant 0 : index
    %10 = vector.load %arg4[%c0_5, %c0_6] : memref<128x128xbf16, #tpu.memory_space<vmem>>, vector<128x128xbf16>
    %cst_7 = arith.constant dense<0.000000e+00> : vector<128x128xf32>
    %11 = tpu.matmul %9, %10, %cst_7 {dimension_numbers = #tpu.dot_dimension_numbers<[1], [0], [0], [1], [0, 0, 1, 1], [], []>} : vector<128x128xbf16>, vector<128x128xbf16>, vector<128x128xf32> -> vector<128x128xf32>
    %c0_8 = arith.constant 0 : index
    %c0_9 = arith.constant 0 : index
    %12 = vector.load %arg5[%c0_8, %c0_9] : memref<128x128xf32, #tpu.memory_space<vmem>>, vector<128x128xf32>
    tpu.vector_store %arg5[%c0_8, %c0_9], %11 {strides = array<i32>} : memref<128x128xf32, #tpu.memory_space<vmem>>, vector<128x128xf32>,
    %cst_10 = arith.constant dense<0.000000e+00> : vector<128xf32>
    %13 = vector.multi_reduction <add>, %11, %cst_10 [0] : vector<128x128xf32> to vector<128xf32>
    %14 = vector.shape_cast %13 : vector<128xf32> to vector<1x128xf32>
    %15 = arith.mulf %11, %11 : vector<128x128xf32>
    %cst_11 = arith.constant dense<0.000000e+00> : vector<128xf32>
    %16 = vector.multi_reduction <add>, %15, %cst_11 [0] : vector<128x128xf32> to vector<128xf32>
    %17 = vector.shape_cast %16 : vector<128xf32> to vector<1x128xf32>
    %cst_12 = arith.constant 0.000000e+00 : f32
    %18 = vector.broadcast %cst_12 : f32 to vector<6x128xf32>
    %19 = tpu.concatenate %14, %17, %18 in 0 : vector<1x128xf32>, vector<1x128xf32>, vector<6x128xf32> -> vector<8x128xf32>
    %20 = vector.shape_cast %19 : vector<8x128xf32> to vector<1x8x128xf32>
    %c0_13 = arith.constant 0 : index
    %c0_14 = arith.constant 0 : index
    %c0_15 = arith.constant 0 : index
    %21 = vector.load %arg6[%c0_13, %c0_14, %c0_15] : memref<1x8x128xf32, #tpu.memory_space<vmem>>, vector<1x8x128xf32>
    tpu.vector_store %arg6[%c0_13, %c0_14, %c0_15], %20 {strides = array<i32>} : memref<1x8x128xf32, #tpu.memory_space<vmem>>, vector<1x8x128xf32>,
    return
  }
  func.func @transform_0(%arg0: i32) -> (i32, i32) {
    %c0_i32 = arith.constant 0 : i32
    %c0_i32_0 = arith.constant 0 : i32
    %c0_i32_1 = arith.constant 0 : i32
    return %c0_i32, %c0_i32_0 : i32, i32
  }
  func.func @transform_1(%arg0: i32) -> (i32, i32) {
    %c0_i32 = arith.constant 0 : i32
    %c0_i32_0 = arith.constant 0 : i32
    %c0_i32_1 = arith.constant 0 : i32
    return %c0_i32, %c0_i32_0 : i32, i32
  }
  func.func @transform_2(%arg0: i32) -> (i32, i32) {
    %c0_i32 = arith.constant 0 : i32
    %c0_i32_0 = arith.constant 0 : i32
    return %arg0, %c0_i32 : i32, i32
  }
  func.func @transform_3(%arg0: i32) -> (i32, i32) {
    %c0_i32 = arith.constant 0 : i32
    %c0_i32_0 = arith.constant 0 : i32
    %c0_i32_1 = arith.constant 0 : i32
    return %c0_i32, %c0_i32_0 : i32, i32
  }
  func.func @transform_4(%arg0: i32) -> (i32, i32) {
    %c0_i32 = arith.constant 0 : i32
    %c0_i32_0 = arith.constant 0 : i32
    return %arg0, %c0_i32 : i32, i32
  }
  func.func @transform_5(%arg0: i32) -> (i32, i32, i32) {
    %c0_i32 = arith.constant 0 : i32
    %c0_i32_0 = arith.constant 0 : i32
    %c0_i32_1 = arith.constant 0 : i32
    return %arg0, %c0_i32, %c0_i32_0 : i32, i32, i32
  }
}

</mosaic_0001>

<bundles_post_ra>
// kernel: bottleneck_forward.4
= control target key start
LH: loop header
LB: loop body
LE: loop exit
PB: predicated region body
PF: predicated region fallthrough
CT: control target
= control target key end

     0   :  { %9 = vsyncpa [#allocation3], 0  ;;  %s955_s0 = inlined_call_operand.hbm [shape: f32[512,128], index: 0, kind: input, shape index: {}]   ;;  %s956_s1 = inlined_call_operand.vmem [shape: bf16[128,128], index: 1, kind: input, shape index: {}]   ;;  %s957_s2 = inlined_call_operand.vmem [shape: f32[512,128], index: 2, kind: output, shape index: {0}]   ;;  %s958_s3 = inlined_call_operand.vmem [shape: f32[4,8,128], index: 3, kind: output, shape index: {1}]  }
   0x1   :  { %11 = vsyncpa [#allocation3 + $0x1], 0  ;;  %s790_s12 = smov 0   ;;  %s792_s13 = smov 0  }
   0x2   :  { %s794_s14 = smov 0   ;;  %s796_s15 = smov 0  }
   0x3 LB: > { %s809_s16 = sadd.s32 4294967295, %s765_s15   ;;  %s812_s17 = sadd.s32 1, %s765_s15   ;;  %s765_s15 = sphi %s796_s15, %s967_s15   ;;  %s761_s14 = sphi %s794_s14, %s966_s14   ;;  %s757_s13 = sphi %s792_s13, %s965_s13   ;;  %s753_s12 = sphi %s790_s12, %s964_s12  }
   0x4   : > { %s21_s18 = ssub.s32 %s765_s15, %s812_s17  ;;  %s24_s19 = sadd.s32 1, %s761_s14 }
   0x5   : > { %p22_p0 = scmp.eq.s32.totalorder %s21_s18, 0  ;;  %p31_p1 = scmp.ne.s32.totalorder %s761_s14, %s757_s13 }
   0x6   : > { %p32_p2 = scmp.eq.s32.totalorder %s765_s15, 0  ;;  %p37_p3 = scmp.ne.s32.totalorder %s757_s13, %s753_s12 }
   0x7   : > { %s822_s20 = scalar_select %p22_p0, %s761_s14, %s24_s19  }
   0x8   : > { %p33_p4 = por %p32_p2, %p31_p1  ;;  %p38_p5 = scmp.eq.s32.totalorder %s809_s16, 0 }
   0x9   : > { %p660_p6 = scmp.lt.s32.totalorder %s765_s15, 4  ;;  %s137_s22 = sand.u32 1, %s761_s14  }
   0xa   : > { %p826_p7 = por %p38_p5, %p37_p3  ;;  %s571_s23 = sshll.u32 %s137_s22, 7 }
   0xb   : > { %s589_s24 = sshll.u32 %s765_s15, 11  ;;  %s141_s28 = scalar_lea.vmem [#allocation2], %s571_s23 }
   0xc   : > { %s960_s21 = scalar_select %p826_p7, 1, 0 }
   0xd   : > { %s835_s27 = scalar_lea.hbm %s955_s0, %s589_s24  ;;  %s148_s29 = sshll.u32 %s141_s28, 4  ;;  %s837_s29 = int_to_ptr.vmem [resolvable:$true] %s148_s29 }
   0xe   : > { %p839_p8 = pnand %p660_p6, %p33_p4  ;;  %s844_s4 = scalar_lea.sflag [#allocation3], %s137_s22 }
   0xf   : > { %s703_s5 = scalar_lea.hbm %s835_s27, 2048  ;;  %s708_s8 = scalar_lea.hbm %s955_s0, 8192 }
  0x10   : > { %p704_p10 = scmp.ne.s32.totalorder %s835_s27, %s703_s5  ;;  %p705_p11 = pneg %p839_p8 }
  0x11   : > { %p709_p0 = scmp.lt.s32.totalorder %s835_s27, %s955_s0  ;;  %p710_p1 = scmp.lt.s32.totalorder %s708_s8, %s703_s5 }
  0x12   : > { %p706_p12 = pnand %p705_p11, %p704_p10 }
  0x13   : > { %p711_p2 = por %p710_p1, %p709_p0 }
  0x14   : > { %p707_p13 = pneg %p706_p12 }
  0x16   : > { %p712_p3 = pnand %p711_p2, %p707_p13 }
  0x18   : > { %715 = shalt.err (!%p712_p3)
}
  0x19   : > { %s716_s11 = scalar_lea.vmem %s837_s29, 2048  ;;  %s767_s12 = smov [#allocation2]  }
  0x1a   : > { %p717_p4 = scmp.ne.s32.totalorder %s837_s29, %s716_s11  ;;  %s721_s18 = sshll.u32 %s767_s12, 4  ;;  %s722_s18 = int_to_ptr.vmem [resolvable:$false] %s721_s18 }
  0x1b   : > { %s723_s19 = scalar_lea.vmem %s722_s18, 4096  ;;  %p724_p10 = scmp.lt.s32.totalorder %s837_s29, %s722_s18 }
  0x1c   : > { %p719_p5 = pnand %p717_p4, %p705_p11  ;;  %p725_p12 = scmp.lt.s32.totalorder %s723_s19, %s716_s11 }
  0x1e   : > { %p720_p6 = pneg %p719_p5  ;;  %p726_p9 = por %p725_p12, %p724_p10 }
  0x20   : > { %p727_p7 = pnand %p726_p9, %p720_p6 }
  0x22   : > { %730 = shalt.err (!%p727_p7)
}
  0x23   : > { %s768_s22 = smov 128   ;;  %s769_s23 = smov 8  }
  0x24   : > { %659 = dma.hbm_to_vmem [thread:$0]  (!%p839_p8), %s835_s27, 2048, %s837_s29, %s844_s4, %s768_s22, %s768_s22, %s769_s23  }
  0x25   : > { %p156_p11 = scmp.lt.s32.totalorder %s765_s15, 5  ;;  %p962_p13 = scmp.ge.s32.totalorder %s765_s15, 1 }
  0x27   : > { %p157_p0 = pnand %p962_p13, %p156_p11 }
  0x28   : > { %s162_s24 = sand.u32 (!%p157_p0), 1, %s757_s13   ;;  %p963_p7 = scmp.ne.s32.totalorder (!%p157_p0), %s960_s21, 0 }
  0x29   : > { %160 = sbr.rel (%p157_p0) target bundleno = 326 (0x146), region = 28  ;;  %s575_s25 = sshll.u32 (!%p157_p0), %s162_s24, 7 }
  0x2a   : > { %s163_s26 = scalar_lea.sflag (!%p157_p0), [#allocation3], %s162_s24  ;;  %s869_s28 = scalar_lea.vmem (!%p157_p0), [#allocation2], %s575_s25 }
  0x2e   : > { %748 = dma.done.wait (%p963_p7), %s163_s26, 2048  }
  0x2f   : > { %750 = vsyncadd (%p963_p7), %s163_s26, 4294965248  ;;  %v695_v0 = vld [vmem:[%s956_s1 + $0x38] sm:$0xff]   ;;  %v696_v1 = vld [vmem:[%s956_s1 + $0x30] sm:$0xff]   ;;  %s576_s22 = sshll.u32 %s809_s16, 4  ;;  %p200_p9 = scmp.lt.s32.totalorder %s809_s16, 3  ;;  %vm464_vm0 = vcmask 1040384  }
  0x30   : > { %606 = vmatprep.subr.bf16.mxu0 %v695_v0  ;;  %638 = vmatprep.subr.bf16.mxu1 %v695_v0  ;;  %v697_v2 = vld [vmem:[%s956_s1 + $0x28] sm:$0xff]   ;;  %v698_v3 = vld [vmem:[%s956_s1 + $0x20] sm:$0xff]   ;;  %v699_v9 = vld [vmem:[%s956_s1 + $0x18] sm:$0xff]   ;;  %p195_p8 = scmp.lt.s32.totalorder %s576_s22, 63  ;;  %vm466_vm1 = vcmask 1041408  }
  0x31   : > { %607 = vmatpush3.bf16.msra.mxu0 %v695_v0  ;;  %646 = vmatpush3.bf16.msra.mxu1 %v695_v0  ;;  %v205_v4 = vld [vmem:[%s869_s28] sm:$0xff]  ;;  %v206_v5 = vld [vmem:[%s869_s28 + $0x8] sm:$0xff]  ;;  %v700_v11 = vld [vmem:[%s956_s1 + $0x10] sm:$0xff]   ;;  %s971_s16 = smov (!%p200_p9, %s809_s16), 3 }
  0x32   : > { %608 = vmatprep.subr.bf16.mxu0 %v696_v1  ;;  %639 = vmatprep.subr.bf16.mxu1 %v696_v1  ;;  %v221_v6 = vpack.c.bf16 %v206_v5, %v205_v4  ;;  %v213_v7 = vld [vmem:[%s869_s28 + $0x40] sm:$0xff]  ;;  %v214_v8 = vld [vmem:[%s869_s28 + $0x48] sm:$0xff]  ;;  %v207_v14 = vld [vmem:[%s869_s28 + $0x10] sm:$0xff]  ;;  %s969_s22 = smov (!%p195_p8, %s576_s22), 63 }
  0x33   : > { %v225_v10 = vpack.c.bf16 %v214_v8, %v213_v7  ;;  %v701_v12 = vld [vmem:[%s956_s1 + $0x8] sm:$0xff]   ;;  %v702_v13 = vld [vmem:[%s956_s1] sm:$0xff]   ;;  %v208_v15 = vld [vmem:[%s869_s28 + $0x18] sm:$0xff]  ;;  %s577_s23 = sshll.u32 %s969_s22, 3 }
  0x34   : > { %622 = vmatprep.mubr.bf16.mxu0 %v221_v6  ;;  %v209_v16 = vld [vmem:[%s869_s28 + $0x20] sm:$0xff]  ;;  %v215_v17 = vld [vmem:[%s869_s28 + $0x50] sm:$0xff]  ;;  %v216_v18 = vld [vmem:[%s869_s28 + $0x58] sm:$0xff]  ;;  %v222_v22 = vpack.c.bf16 %v208_v15, %v207_v14  ;;  %s919_s26 = scalar_lea.vmem %s957_s2, %s577_s23 }
  0x35   : > { %609 = vmatpush3.bf16.msra.mxu0 %v696_v1  ;;  %647 = vmatpush3.bf16.msra.mxu1 %v696_v1  ;;  %v210_v19 = vld [vmem:[%s869_s28 + $0x28] sm:$0xff]  ;;  %v217_v20 = vld [vmem:[%s869_s28 + $0x60] sm:$0xff]  ;;  %v226_v23 = vpack.c.bf16 %v216_v18, %v215_v17  ;;  %v211_v26 = vld [vmem:[%s869_s28 + $0x30] sm:$0xff] }
  0x36   : > { %610 = vmatprep.subr.bf16.mxu0 %v697_v2  ;;  %640 = vmatprep.subr.bf16.mxu1 %v697_v2  ;;  %v218_v21 = vld [vmem:[%s869_s28 + $0x68] sm:$0xff]  ;;  %v223_v24 = vpack.c.bf16 %v210_v19, %v209_v16  ;;  %v212_v27 = vld [vmem:[%s869_s28 + $0x38] sm:$0xff]  ;;  %v219_v28 = vld [vmem:[%s869_s28 + $0x70] sm:$0xff] }
  0x37   : > { %630 = vmatprep.mubr.bf16.mxu1 %v225_v10  ;;  %v227_v25 = vpack.c.bf16 %v218_v21, %v217_v20  ;;  %v220_v29 = vld [vmem:[%s869_s28 + $0x78] sm:$0xff]  ;;  %v224_v30 = vpack.c.bf16 %v212_v27, %v211_v26  ;;  %s578_s28 = sshll.u32 %s971_s16, 3 }
  0x38   : > { %v228_v31 = vpack.c.bf16 %v220_v29, %v219_v28  ;;  %s203_s15 = scalar_lea.vmem %s958_s3, %s578_s28 }
  0x39   : > { %611 = vmatpush3.bf16.msra.mxu0 %v697_v2  ;;  %648 = vmatpush3.bf16.msra.mxu1 %v697_v2 }
  0x3a   : > { %612 = vmatprep.subr.bf16.mxu0 %v698_v3  ;;  %641 = vmatprep.subr.bf16.mxu1 %v698_v3 }
  0x3d   : > { %613 = vmatpush3.bf16.msra.mxu0 %v698_v3  ;;  %649 = vmatpush3.bf16.msra.mxu1 %v698_v3 }
  0x3e   : > { %614 = vmatprep.subr.bf16.mxu0 %v699_v9  ;;  %642 = vmatprep.subr.bf16.mxu1 %v699_v9 }
  0x41   : > { %615 = vmatpush3.bf16.msra.mxu0 %v699_v9  ;;  %650 = vmatpush3.bf16.msra.mxu1 %v699_v9 }
  0x42   : > { %616 = vmatprep.subr.bf16.mxu0 %v700_v11  ;;  %643 = vmatprep.subr.bf16.mxu1 %v700_v11 }
  0x45   : > { %617 = vmatpush3.bf16.msra.mxu0 %v700_v11  ;;  %651 = vmatpush3.bf16.msra.mxu1 %v700_v11 }
  0x46   : > { %618 = vmatprep.subr.bf16.mxu0 %v701_v12  ;;  %644 = vmatprep.subr.bf16.mxu1 %v701_v12 }
  0x49   : > { %619 = vmatpush3.bf16.msra.mxu0 %v701_v12  ;;  %652 = vmatpush3.bf16.msra.mxu1 %v701_v12 }
  0x4a   : > { %620 = vmatprep.subr.bf16.mxu0 %v702_v13  ;;  %645 = vmatprep.subr.bf16.mxu1 %v702_v13 }
  0x4d   : > { %621 = vmatpush3.bf16.msra.mxu0 %v702_v13  ;;  %653 = vmatpush3.bf16.msra.mxu1 %v702_v13 }
  0x50   : > { %623 = vmatmul.mubr.bf16.vlgmr.msra.gmra.mxu0 %v222_v22  ;;  %631 = vmatmul.mubr.bf16.vlgmr.msra.gmra.mxu1 %v226_v23 }
  0x51   : > { %626 = vmatprep.mubr.bf16.mxu0 %v223_v24  ;;  %634 = vmatprep.mubr.bf16.mxu1 %v227_v25 }
  0x58   : > { %627 = vmatmul.mubr.bf16.gmra.mxu0 %v224_v30  ;;  %635 = vmatmul.mubr.bf16.gmra.mxu1 %v228_v31 }
 0x110   : > { %v624_v32 = vpop.f32.mrf.mxu0  ;;  %v632_v33 = vpop.f32.mrf.mxu1 }
 0x111   : > { %392 = vst [vmem:[%s919_s26 + $0x10] sm:$0xff] %v624_v32  ;;  %400 = vst [vmem:[%s919_s26 + $0x50] sm:$0xff] %v632_v33  ;;  %v429_v45 = vmul.f32 %v624_v32, %v624_v32  ;;  %v437_v11 = vmul.f32 %v632_v33, %v632_v33 }
 0x112   : > { %v327_v34 = vpop.f32.mrf.mxu0  ;;  %v359_v35 = vpop.f32.mrf.mxu1 }
 0x113   : > { %390 = vst [vmem:[%s919_s26] sm:$0xff] %v327_v34  ;;  %398 = vst [vmem:[%s919_s26 + $0x40] sm:$0xff] %v359_v35  ;;  %v427_v40 = vmul.f32 %v327_v34, %v327_v34  ;;  %v435_v5 = vmul.f32 %v359_v35, %v359_v35 }
 0x114   : > { %v625_v36 = vpop.f32.mrf.mxu0  ;;  %v633_v37 = vpop.f32.mrf.mxu1 }
 0x115   : > { %393 = vst [vmem:[%s919_s26 + $0x18] sm:$0xff] %v625_v36  ;;  %401 = vst [vmem:[%s919_s26 + $0x58] sm:$0xff] %v633_v37  ;;  %v430_v50 = vmul.f32 %v625_v36, %v625_v36  ;;  %v438_v14 = vmul.f32 %v633_v37, %v633_v37 }
 0x116   : > { %v330_v38 = vpop.f32.mrf.mxu0  ;;  %v362_v39 = vpop.f32.mrf.mxu1 }
 0x117   : > { %391 = vst [vmem:[%s919_s26 + $0x8] sm:$0xff] %v330_v38  ;;  %v406_v41 = vadd.f32 %v330_v38, %v327_v34  ;;  %v428_v42 = vmul.f32 %v330_v38, %v330_v38  ;;  %399 = vst [vmem:[%s919_s26 + $0x48] sm:$0xff] %v362_v39  ;;  %v436_v9 = vmul.f32 %v362_v39, %v362_v39 }
 0x118   : > { %v628_v43 = vpop.f32.mrf.mxu0  ;;  %v636_v44 = vpop.f32.mrf.mxu1 }
 0x119   : > { %v407_v46 = vadd.f32 %v624_v32, %v406_v41  ;;  %v443_v47 = vadd.f32 %v428_v42, %v427_v40  ;;  %396 = vst [vmem:[%s919_s26 + $0x30] sm:$0xff] %v628_v43  ;;  %404 = vst [vmem:[%s919_s26 + $0x70] sm:$0xff] %v636_v44  ;;  %v433_v63 = vmul.f32 %v628_v43, %v628_v43 }
 0x11a   : > { %v343_v48 = vpop.f32.mrf.mxu0  ;;  %v375_v49 = vpop.f32.mrf.mxu1  ;;  %v441_v23 = vmul.f32 %v636_v44, %v636_v44 }
 0x11b   : > { %v444_v51 = vadd.f32 %v443_v47, %v429_v45  ;;  %394 = vst [vmem:[%s919_s26 + $0x20] sm:$0xff] %v343_v48  ;;  %v408_v52 = vadd.f32 %v625_v36, %v407_v46  ;;  %402 = vst [vmem:[%s919_s26 + $0x60] sm:$0xff] %v375_v49  ;;  %v431_v56 = vmul.f32 %v343_v48, %v343_v48 }
 0x11c   : > { %v629_v53 = vpop.f32.mrf.mxu0  ;;  %v637_v54 = vpop.f32.mrf.mxu1  ;;  %v439_v18 = vmul.f32 %v375_v49, %v375_v49 }
 0x11d   : > { %v409_v55 = vadd.f32 %v408_v52, %v343_v48  ;;  %v445_v57 = vadd.f32 %v444_v51, %v430_v50  ;;  %397 = vst [vmem:[%s919_s26 + $0x38] sm:$0xff] %v629_v53  ;;  %405 = vst [vmem:[%s919_s26 + $0x78] sm:$0xff] %v637_v54  ;;  %v434_v2 = vmul.f32 %v629_v53, %v629_v53 }
 0x11e   : > { %v346_v58 = vpop.f32.mrf.mxu0  ;;  %v378_v59 = vpop.f32.mrf.mxu1  ;;  %v442_v26 = vmul.f32 %v637_v54, %v637_v54 }
 0x11f   : > { %v446_v60 = vadd.f32 %v445_v57, %v431_v56  ;;  %395 = vst [vmem:[%s919_s26 + $0x28] sm:$0xff] %v346_v58  ;;  %v410_v61 = vadd.f32 %v409_v55, %v346_v58  ;;  %v432_v62 = vmul.f32 %v346_v58, %v346_v58  ;;  %403 = vst [vmem:[%s919_s26 + $0x68] sm:$0xff] %v378_v59 }
 0x120   : > { %v440_v22 = vmul.f32 %v378_v59, %v378_v59 }
 0x121   : > { %v411_v0 = vadd.f32 %v628_v43, %v410_v61  ;;  %v447_v1 = vadd.f32 %v446_v60, %v432_v62 }
 0x123   : > { %v412_v3 = vadd.f32 %v629_v53, %v411_v0  ;;  %v448_v4 = vadd.f32 %v447_v1, %v433_v63 }
 0x125   : > { %v449_v6 = vadd.f32 %v448_v4, %v434_v2  ;;  %v413_v7 = vadd.f32 %v412_v3, %v359_v35 }
 0x127   : > { %v414_v8 = vadd.f32 %v413_v7, %v362_v39  ;;  %v450_v10 = vadd.f32 %v449_v6, %v435_v5 }
 0x129   : > { %v415_v12 = vadd.f32 %v632_v33, %v414_v8  ;;  %v451_v13 = vadd.f32 %v450_v10, %v436_v9 }
 0x12b   : > { %v452_v15 = vadd.f32 %v451_v13, %v437_v11  ;;  %v416_v16 = vadd.f32 %v633_v37, %v415_v12 }
 0x12d   : > { %v417_v17 = vadd.f32 %v416_v16, %v375_v49  ;;  %v453_v19 = vadd.f32 %v452_v15, %v438_v14 }
 0x12f   : > { %v454_v20 = vadd.f32 %v453_v19, %v439_v18  ;;  %v418_v21 = vadd.f32 %v417_v17, %v378_v59 }
 0x131   : > { %v419_v24 = vadd.f32 %v636_v44, %v418_v21  ;;  %v455_v25 = vadd.f32 %v454_v20, %v440_v22 }
 0x133   : > { %v420_v27 = vadd.f32 %v637_v54, %v419_v24  ;;  %v456_v28 = vadd.f32 %v455_v25, %v441_v23 }
 0x135   : > { %v421_v29 = vrot.slane %v420_v27, 4  ;;  %v457_v30 = vadd.f32 %v456_v28, %v442_v26 }
 0x137   : > { %v422_v31 = vadd.f32 %v421_v29, %v420_v27  ;;  %v458_v32 = vrot.slane %v457_v30, 4 }
 0x139   : > { %v423_v33 = vrot.slane %v422_v31, 2  ;;  %v459_v34 = vadd.f32 %v458_v32, %v457_v30 }
 0x13b   : > { %v424_v35 = vadd.f32 %v423_v33, %v422_v31  ;;  %v460_v36 = vrot.slane %v459_v34, 2 }
 0x13d   : > { %v425_v37 = vrot.slane %v424_v35, 1  ;;  %v461_v38 = vadd.f32 %v460_v36, %v459_v34 }
 0x13f   : > { %v462_v39 = vrot.slane %v461_v38, 1  ;;  %v426_v40 = vadd.f32 %v425_v37, %v424_v35 }
 0x141   : > { %v463_v41 = vadd.f32 %v462_v39, %v461_v38 }
 0x143   : > { %v465_v42 = vsel %vm464_vm0, %v426_v40, %v463_v41 }
 0x144   : > { %v467_v43 = vsel %vm466_vm1, %v465_v42, 0.0 }
 0x145   : > { %468 = vst [vmem:[%s203_s15] sm:$0xff] %v467_v43 }
 0x146 PF: > { %p14_p1 = scmp.ge.s32.totalorder %s812_s17, 6   ;;  %s964_s12 = smov %s757_s13 }
 0x147   : > { %s965_s13 = smov %s761_s14  ;;  %s966_s14 = smov %s822_s20 }
 0x148   : > { %s967_s15 = smov %s812_s17  ;;  %16 = sbr.rel (!%p14_p1) target bundleno = 3 (0x3), region = 80 }
 0x14d   :  { %505 = vsyncpa [#allocation3], 1 }
 0x14e   :  { %507 = vsyncpa [#allocation3 + $0x1], 1 }

// kernel: bottleneck_forward.7
= control target key start
LH: loop header
LB: loop body
LE: loop exit
PB: predicated region body
PF: predicated region fallthrough
CT: control target
= control target key end

     0   :  { %9 = vsyncpa [#allocation3], 0  ;;  %s791_s0 = inlined_call_operand.vmem [shape: f32[1,128], index: 0, kind: input, shape index: {}]   ;;  %s792_s1 = inlined_call_operand.vmem [shape: f32[1,128], index: 1, kind: input, shape index: {}]   ;;  %s793_s2 = inlined_call_operand.vmem [shape: f32[512,128], index: 2, kind: input, shape index: {}]   ;;  %s794_s3 = inlined_call_operand.vmem [shape: f32[512,128], index: 3, kind: input, shape index: {}]   ;;  %s795_s4 = inlined_call_operand.hbm [shape: f32[512,128], index: 4, kind: output, shape index: {}]  }
   0x1   :  { %11 = vsyncpa [#allocation3 + $0x1], 0  ;;  %s583_s15 = smov 0   ;;  %s585_s16 = smov 0  }
   0x2   :  { %s587_s17 = smov 0   ;;  %s589_s18 = smov 0  }
   0x3 LB: > { %s604_s19 = sadd.s32 4294967295, %s553_s18   ;;  %s435_s20 = sadd.s32 4294967294, %s553_s18   ;;  %s553_s18 = sphi %s589_s18, %s801_s18   ;;  %s549_s17 = sphi %s587_s17, %s800_s17   ;;  %s545_s16 = sphi %s585_s16, %s799_s16   ;;  %s541_s15 = sphi %s583_s15, %s798_s15  }
   0x4   : > { %s608_s21 = sadd.s32 1, %s553_s18   ;;  %s118_s22 = sadd.s32 1, %s549_s17 }
   0x5   : > { %s115_s23 = ssub.s32 %s553_s18, %s608_s21  ;;  %p128_p0 = scmp.ne.s32.totalorder %s549_s17, %s545_s16 }
   0x6   : > { %p116_p1 = scmp.eq.s32.totalorder %s115_s23, 0  ;;  %p129_p2 = scmp.eq.s32.totalorder %s604_s19, 3 }
   0x7   : > { %p134_p3 = scmp.ne.s32.totalorder %s545_s16, %s541_s15  ;;  %p135_p4 = scmp.eq.s32.totalorder %s435_s20, 3 }
   0x8   : > { %s619_s24 = scalar_select %p116_p1, %s549_s17, %s118_s22  }
   0x9   : > { %p621_p5 = por %p129_p2, %p128_p0  ;;  %p625_p6 = por %p135_p4, %p134_p3 }
   0xa   : > { %p438_p7 = scmp.ge.s32.totalorder %s553_s18, 1  ;;  %p177_p8 = scmp.lt.s32.totalorder %s553_s18, 5 }
   0xc   : > { %p178_p9 = pnand %p438_p7, %p177_p8 }
   0xd   : > { %s440_s27 = sshll.u32 (!%p178_p9), %s604_s19, 4  ;;  %s205_s11 = sand.u32 (!%p178_p9), 1, %s545_s16  }
   0xe   : > { %181 = sbr.rel (%p178_p9) target bundleno = 58 (0x3a), region = 36  ;;  %p209_p10 = scmp.lt.s32.totalorder (!%p178_p9), %s440_s27, 63 }
   0xf   : > { %s665_s14 = sshll.u32 (!%p178_p9), %s205_s11, 7  ;;  %s451_s22 = sshll.u32 (!%p178_p9), %s604_s19, 11 }
  0x10   : > { %s695_s20 = scalar_lea.vmem (!%p178_p9), [#allocation2], %s665_s14  ;;  %s742_s29 = scalar_lea.hbm (!%p178_p9), %s795_s4, %s451_s22 }
  0x11   : > { %s361_s23 = sshll.u32 (!%p178_p9), %s695_s20, 4  ;;  %s751_s19 = scalar_lea.sflag (!%p178_p9), [#allocation3], %s205_s11  ;;  %s744_s23 = int_to_ptr.vmem [resolvable:$true] %s361_s23 }
  0x12   : > { %s493_s30 = scalar_lea.vmem (!%p178_p9), %s744_s23, 2048  ;;  %s555_s5 = smov (!%p178_p9), [#allocation2]  }
  0x13   : > { %s803_s27 = smov (!%p209_p10, %s440_s27), 63  ;;  %v635_v0 = vld [vmem:[%s791_s0] ss:$0 sm:$0xff]  ;;  %p494_p11 = scmp.ne.s32.totalorder %s744_s23, %s493_s30 }
  0x14   : > { %s441_s28 = sshll.u32 %s803_s27, 3  ;;  %v652_v2 = vld [vmem:[%s792_s1] ss:$0 sm:$0xff]  ;;  %s497_s6 = sshll.u32 %s555_s5, 4  ;;  %s498_s6 = int_to_ptr.vmem [resolvable:$false] %s497_s6 }
  0x15   : > { %s640_s7 = scalar_lea.vmem %s793_s2, %s441_s28  ;;  %s645_s10 = scalar_lea.vmem %s794_s3, %s441_s28 }
  0x16   : > { %v221_v1 = vld [vmem:[%s640_s7] sm:$0xff]  ;;  %v222_v3 = vld [vmem:[%s640_s7 + $0x8] sm:$0xff]  ;;  %v223_v7 = vld [vmem:[%s640_s7 + $0x10] sm:$0xff]  ;;  %p495_p12 = pnand %p494_p11, %p621_p5  ;;  %p500_p0 = scmp.lt.s32.totalorder %s744_s23, %s498_s6 }
  0x17   : > { %v244_v4 = vmul.f32 %v635_v0, %v221_v1  ;;  %v283_v5 = vld [vmem:[%s645_s10] sm:$0xff]  ;;  %v245_v6 = vmul.f32 %v635_v0, %v222_v3  ;;  %v284_v8 = vld [vmem:[%s645_s10 + $0x8] sm:$0xff]  ;;  %v246_v9 = vmul.f32 %v635_v0, %v223_v7  ;;  %v224_v10 = vld [vmem:[%s640_s7 + $0x18] sm:$0xff] }
  0x18   : > { %v225_v11 = vld [vmem:[%s640_s7 + $0x20] sm:$0xff]  ;;  %v285_v14 = vld [vmem:[%s645_s10 + $0x10] sm:$0xff]  ;;  %v247_v15 = vmul.f32 %v635_v0, %v224_v10  ;;  %v286_v16 = vld [vmem:[%s645_s10 + $0x18] sm:$0xff]  ;;  %p496_p13 = pneg %p495_p12 }
  0x19   : > { %v267_v12 = vadd.f32 %v652_v2, %v244_v4  ;;  %v268_v13 = vadd.f32 %v652_v2, %v245_v6  ;;  %v248_v17 = vmul.f32 %v635_v0, %v225_v11  ;;  %v226_v18 = vld [vmem:[%s640_s7 + $0x28] sm:$0xff]  ;;  %v269_v19 = vadd.f32 %v652_v2, %v246_v9  ;;  %v287_v20 = vld [vmem:[%s645_s10 + $0x20] sm:$0xff]  ;;  %v227_v22 = vld [vmem:[%s640_s7 + $0x30] sm:$0xff] }
  0x1a   : > { %v249_v21 = vmul.f32 %v635_v0, %v226_v18  ;;  %v228_v23 = vld [vmem:[%s640_s7 + $0x38] sm:$0xff]  ;;  %v270_v26 = vadd.f32 %v652_v2, %v247_v15  ;;  %v288_v28 = vld [vmem:[%s645_s10 + $0x28] sm:$0xff]  ;;  %v250_v31 = vmul.f32 %v635_v0, %v227_v22  ;;  %v229_v33 = vld [vmem:[%s640_s7 + $0x40] sm:$0xff] }
  0x1b   : > { %v299_v24 = vadd.f32 %v283_v5, %v267_v12  ;;  %v300_v25 = vadd.f32 %v284_v8, %v268_v13  ;;  %v271_v27 = vadd.f32 %v652_v2, %v248_v17  ;;  %v301_v29 = vadd.f32 %v285_v14, %v269_v19  ;;  %v230_v34 = vld [vmem:[%s640_s7 + $0x48] sm:$0xff]  ;;  %v289_v39 = vld [vmem:[%s645_s10 + $0x30] sm:$0xff]  ;;  %v290_v40 = vld [vmem:[%s645_s10 + $0x38] sm:$0xff] }
  0x1c   : > { %v272_v30 = vadd.f32 %v652_v2, %v249_v21  ;;  %v251_v32 = vmul.f32 %v635_v0, %v228_v23  ;;  %v302_v37 = vadd.f32 %v286_v16, %v270_v26  ;;  %v231_v41 = vld [vmem:[%s640_s7 + $0x50] sm:$0xff]  ;;  %v273_v44 = vadd.f32 %v652_v2, %v250_v31  ;;  %v232_v46 = vld [vmem:[%s640_s7 + $0x58] sm:$0xff]  ;;  %v233_v47 = vld [vmem:[%s640_s7 + $0x60] sm:$0xff] }
  0x1d   : > { %v315_v35 = vmax.f32 %v299_v24, 0.0  ;;  %v316_v36 = vmax.f32 %v300_v25, 0.0  ;;  %v303_v38 = vadd.f32 %v287_v20, %v271_v27  ;;  %v317_v42 = vmax.f32 %v301_v29, 0.0  ;;  %v234_v52 = vld [vmem:[%s640_s7 + $0x68] sm:$0xff]  ;;  %v291_v56 = vld [vmem:[%s645_s10 + $0x40] sm:$0xff]  ;;  %v293_v61 = vld [vmem:[%s645_s10 + $0x50] sm:$0xff] }
  0x1e   : > { %v304_v43 = vadd.f32 %v288_v28, %v272_v30  ;;  %v274_v45 = vadd.f32 %v652_v2, %v251_v32  ;;  %v318_v48 = vmax.f32 %v302_v37, 0.0  ;;  %v252_v50 = vmul.f32 %v635_v0, %v229_v33  ;;  %v292_v57 = vld [vmem:[%s645_s10 + $0x48] sm:$0xff]  ;;  %v235_v1 = vld [vmem:[%s640_s7 + $0x70] sm:$0xff]  ;;  %v236_v3 = vld [vmem:[%s640_s7 + $0x78] sm:$0xff]  ;;  %s499_s7 = scalar_lea.vmem %s498_s6, 4096 }
  0x1f   : > { %331 = vst [vmem:[%s695_s20] sm:$0xff] %v315_v35  ;;  %332 = vst [vmem:[%s695_s20 + $0x8] sm:$0xff] %v316_v36  ;;  %v319_v49 = vmax.f32 %v303_v38, 0.0  ;;  %v253_v51 = vmul.f32 %v635_v0, %v230_v34  ;;  %v305_v54 = vadd.f32 %v289_v39, %v273_v44  ;;  %v254_v58 = vmul.f32 %v635_v0, %v231_v41  ;;  %v294_v7 = vld [vmem:[%s645_s10 + $0x58] sm:$0xff]  ;;  %v295_v8 = vld [vmem:[%s645_s10 + $0x60] sm:$0xff]  ;;  %p501_p1 = scmp.lt.s32.totalorder %s499_s7, %s493_s30 }
  0x20   : > { %333 = vst [vmem:[%s695_s20 + $0x10] sm:$0xff] %v317_v42  ;;  %v320_v53 = vmax.f32 %v304_v43, 0.0  ;;  %v306_v55 = vadd.f32 %v290_v40, %v274_v45  ;;  %334 = vst [vmem:[%s695_s20 + $0x18] sm:$0xff] %v318_v48  ;;  %v275_v59 = vadd.f32 %v652_v2, %v252_v50  ;;  %v255_v62 = vmul.f32 %v635_v0, %v232_v46  ;;  %v296_v14 = vld [vmem:[%s645_s10 + $0x68] sm:$0xff]  ;;  %v297_v23 = vld [vmem:[%s645_s10 + $0x70] sm:$0xff] }
  0x21   : > { %335 = vst [vmem:[%s695_s20 + $0x20] sm:$0xff] %v319_v49  ;;  %v276_v60 = vadd.f32 %v652_v2, %v253_v51  ;;  %v256_v63 = vmul.f32 %v635_v0, %v233_v47  ;;  %v321_v4 = vmax.f32 %v305_v54, 0.0  ;;  %v277_v6 = vadd.f32 %v652_v2, %v254_v58  ;;  %v298_v24 = vld [vmem:[%s645_s10 + $0x78] sm:$0xff]  ;;  %p502_p2 = por %p501_p1, %p500_p0 }
  0x22   : > { %336 = vst [vmem:[%s695_s20 + $0x28] sm:$0xff] %v320_v53  ;;  %v322_v5 = vmax.f32 %v306_v55, 0.0  ;;  %v257_v9 = vmul.f32 %v635_v0, %v234_v52  ;;  %v307_v10 = vadd.f32 %v291_v56, %v275_v59  ;;  %v278_v12 = vadd.f32 %v652_v2, %v255_v62 }
  0x23   : > { %v308_v11 = vadd.f32 %v292_v57, %v276_v60  ;;  %v279_v13 = vadd.f32 %v652_v2, %v256_v63  ;;  %337 = vst [vmem:[%s695_s20 + $0x30] sm:$0xff] %v321_v4  ;;  %v309_v15 = vadd.f32 %v293_v61, %v277_v6  ;;  %v258_v17 = vmul.f32 %v635_v0, %v235_v1  ;;  %p503_p3 = pnand %p502_p2, %p496_p13 }
  0x24   : > { %338 = vst [vmem:[%s695_s20 + $0x38] sm:$0xff] %v322_v5  ;;  %v280_v16 = vadd.f32 %v652_v2, %v257_v9  ;;  %v259_v18 = vmul.f32 %v635_v0, %v236_v3  ;;  %v323_v19 = vmax.f32 %v307_v10, 0.0  ;;  %v310_v21 = vadd.f32 %v294_v7, %v278_v12 }
  0x25   : > { %v324_v20 = vmax.f32 %v308_v11, 0.0  ;;  %v311_v22 = vadd.f32 %v295_v8, %v279_v13  ;;  %v325_v25 = vmax.f32 %v309_v15, 0.0  ;;  %v281_v27 = vadd.f32 %v652_v2, %v258_v17 }
  0x26   : > { %v312_v26 = vadd.f32 %v296_v14, %v280_v16  ;;  %v282_v28 = vadd.f32 %v652_v2, %v259_v18  ;;  %339 = vst [vmem:[%s695_s20 + $0x40] sm:$0xff] %v323_v19  ;;  %v326_v0 = vmax.f32 %v310_v21, 0.0 }
  0x27   : > { %340 = vst [vmem:[%s695_s20 + $0x48] sm:$0xff] %v324_v20  ;;  %v327_v29 = vmax.f32 %v311_v22, 0.0  ;;  %341 = vst [vmem:[%s695_s20 + $0x50] sm:$0xff] %v325_v25  ;;  %v313_v31 = vadd.f32 %v297_v23, %v281_v27 }
  0x28   : > { %v328_v30 = vmax.f32 %v312_v26, 0.0  ;;  %v314_v32 = vadd.f32 %v298_v24, %v282_v28  ;;  %342 = vst [vmem:[%s695_s20 + $0x58] sm:$0xff] %v326_v0 }
  0x29   : > { %343 = vst [vmem:[%s695_s20 + $0x60] sm:$0xff] %v327_v29  ;;  %v329_v2 = vmax.f32 %v313_v31, 0.0 }
  0x2a   : > { %344 = vst [vmem:[%s695_s20 + $0x68] sm:$0xff] %v328_v30  ;;  %v330_v33 = vmax.f32 %v314_v32, 0.0 }
  0x2b   : > { %345 = vst [vmem:[%s695_s20 + $0x70] sm:$0xff] %v329_v2 }
  0x2c   : > { %346 = vst [vmem:[%s695_s20 + $0x78] sm:$0xff] %v330_v33 }
  0x2d   : > { %506 = shalt.err (!%p503_p3)
}
  0x2e   : > { %s507_s8 = scalar_lea.hbm %s742_s29, 2048  ;;  %s511_s11 = scalar_lea.hbm %s795_s4, 8192 }
  0x2f   : > { %p508_p4 = scmp.ne.s32.totalorder %s742_s29, %s507_s8  ;;  %p512_p9 = scmp.lt.s32.totalorder %s742_s29, %s795_s4 }
  0x30   : > { %p513_p10 = scmp.lt.s32.totalorder %s511_s11, %s507_s8 }
  0x31   : > { %p509_p7 = pnand %p508_p4, %p621_p5 }
  0x32   : > { %p514_p11 = por %p513_p10, %p512_p9 }
  0x33   : > { %p510_p8 = pneg %p509_p7 }
  0x35   : > { %p515_p12 = pnand %p514_p11, %p510_p8 }
  0x37   : > { %518 = shalt.err (!%p515_p12)
}
  0x38   : > { %s556_s14 = smov 128   ;;  %s557_s20 = smov 8  }
  0x39   : > { %452 = dma.vmem_to_hbm [thread:$0]  (%p621_p5), %s744_s23, 2048, %s742_s29, %s751_s19, %s556_s14, %s556_s14, %s557_s20  }
  0x3a PF: > { %p458_p13 = scmp.ge.s32.totalorder %s553_s18, 2  ;;  %s376_s22 = sand.u32 1, %s541_s15  }
  0x3b   : > { %s377_s27 = scalar_lea.sflag [#allocation3], %s376_s22 }
  0x3c   : > { %p455_p0 = pnand %p458_p13, %p625_p6 }
  0x3e   : > { %p456_p1 = pneg %p455_p0 }
  0x40   : > { %536 = dma.done.wait (%p456_p1), %s377_s27, 2048  }
  0x41   : > { %538 = vsyncadd (%p456_p1), %s377_s27, 4294965248  ;;  %p14_p2 = scmp.ge.s32.totalorder %s608_s21, 6   ;;  %s798_s15 = smov %s545_s16 }
  0x42   : > { %s799_s16 = smov %s549_s17  ;;  %s800_s17 = smov %s619_s24 }
  0x43   : > { %s801_s18 = smov %s608_s21  ;;  %16 = sbr.rel (!%p14_p2) target bundleno = 3 (0x3), region = 74 }
  0x48   :  { %382 = vsyncpa [#allocation3], 1 }
  0x49   :  { %384 = vsyncpa [#allocation3 + $0x1], 1 }

// kernel: bottleneck_forward.6
= control target key start
LH: loop header
LB: loop body
LE: loop exit
PB: predicated region body
PF: predicated region fallthrough
CT: control target
= control target key end

     0   :  { %s793_s18 = smov 0   ;;  %s927_s0 = inlined_call_operand.vmem [shape: f32[1,128], index: 0, kind: input, shape index: {}]   ;;  %s928_s1 = inlined_call_operand.vmem [shape: f32[1,128], index: 1, kind: input, shape index: {}]   ;;  %s929_s2 = inlined_call_operand.vmem [shape: f32[512,128], index: 2, kind: input, shape index: {}]   ;;  %s930_s3 = inlined_call_operand.vmem [shape: bf16[128,128], index: 3, kind: input, shape index: {}]   ;;  %s931_s4 = inlined_call_operand.vmem [shape: f32[512,128], index: 4, kind: output, shape index: {0}]   ;;  %s932_s5 = inlined_call_operand.vmem [shape: f32[4,8,128], index: 5, kind: output, shape index: {1}]  }
   0x1 LB: > { %s799_s19 = sadd.s32 4294967295, %s761_s18   ;;  %p657_p0 = scmp.ge.s32.totalorder %s761_s18, 1  ;;  %s761_s18 = sphi %s793_s18, %s16_s18  }
   0x2   : > { %p191_p1 = scmp.lt.s32.totalorder %s761_s18, 5 }
   0x4   : > { %p192_p2 = pnand %p657_p0, %p191_p1 }
   0x5   : > { %s658_s22 = sshll.u32 (!%p192_p2), %s799_s19, 4  ;;  %p235_p4 = scmp.lt.s32.totalorder (!%p192_p2), %s799_s19, 3 }
   0x6   : > { %195 = sbr.rel (%p192_p2) target bundleno = 290 (0x122), region = 36  ;;  %p224_p3 = scmp.lt.s32.totalorder (!%p192_p2), %s658_s22, 63 }
   0xb   : > { %v747_v0 = vld [vmem:[%s930_s3 + $0x38] sm:$0xff]   ;;  %v748_v1 = vld [vmem:[%s930_s3 + $0x30] sm:$0xff]   ;;  %s934_s22 = smov (!%p224_p3, %s658_s22), 63  ;;  %v749_v2 = vld [vmem:[%s930_s3 + $0x28] sm:$0xff]   ;;  %s936_s19 = smov (!%p235_p4, %s799_s19), 3  ;;  %vm561_vm0 = vcmask 1040384  }
   0xc   : > { %691 = vmatprep.subr.bf16.mxu0 %v747_v0  ;;  %723 = vmatprep.subr.bf16.mxu1 %v747_v0  ;;  %s659_s27 = sshll.u32 %s934_s22, 3  ;;  %v750_v3 = vld [vmem:[%s930_s3 + $0x20] sm:$0xff]   ;;  %v751_v12 = vld [vmem:[%s930_s3 + $0x18] sm:$0xff]   ;;  %v752_v17 = vld [vmem:[%s930_s3 + $0x10] sm:$0xff]   ;;  %s662_s22 = sshll.u32 %s936_s19, 3  ;;  %vm563_vm1 = vcmask 1041408  }
   0xd   : > { %692 = vmatpush3.bf16.msra.mxu0 %v747_v0  ;;  %731 = vmatpush3.bf16.msra.mxu1 %v747_v0  ;;  %s821_s30 = scalar_lea.vmem %s929_s2, %s659_s27  ;;  %v831_v6 = vld [vmem:[%s927_s0] ss:$0 sm:$0xff]  ;;  %v753_v40 = vld [vmem:[%s930_s3 + $0x8] sm:$0xff]   ;;  %s901_s25 = scalar_lea.vmem %s931_s4, %s659_s27 }
   0xe   : > { %693 = vmatprep.subr.bf16.mxu0 %v748_v1  ;;  %724 = vmatprep.subr.bf16.mxu1 %v748_v1  ;;  %v240_v4 = vld [vmem:[%s821_s30] sm:$0xff]  ;;  %v241_v5 = vld [vmem:[%s821_s30 + $0x8] sm:$0xff]  ;;  %v242_v18 = vld [vmem:[%s821_s30 + $0x10] sm:$0xff]  ;;  %s238_s28 = scalar_lea.vmem %s932_s5, %s662_s22 }
   0xf   : > { %v263_v7 = vmul.f32 %v831_v6, %v240_v4  ;;  %v264_v8 = vmul.f32 %v831_v6, %v241_v5  ;;  %v838_v9 = vld [vmem:[%s928_s1] ss:$0 sm:$0xff]  ;;  %v249_v16 = vld [vmem:[%s821_s30 + $0x48] sm:$0xff]  ;;  %v243_v19 = vld [vmem:[%s821_s30 + $0x18] sm:$0xff]  ;;  %v265_v29 = vmul.f32 %v831_v6, %v242_v18 }
  0x10   : > { %v248_v13 = vld [vmem:[%s821_s30 + $0x40] sm:$0xff]  ;;  %v250_v23 = vld [vmem:[%s821_s30 + $0x50] sm:$0xff]  ;;  %v251_v24 = vld [vmem:[%s821_s30 + $0x58] sm:$0xff]  ;;  %v272_v26 = vmul.f32 %v831_v6, %v249_v16  ;;  %v266_v30 = vmul.f32 %v831_v6, %v243_v19 }
  0x11   : > { %694 = vmatpush3.bf16.msra.mxu0 %v748_v1  ;;  %732 = vmatpush3.bf16.msra.mxu1 %v748_v1  ;;  %v286_v10 = vadd.f32 %v838_v9, %v263_v7  ;;  %v287_v11 = vadd.f32 %v838_v9, %v264_v8  ;;  %v244_v21 = vld [vmem:[%s821_s30 + $0x20] sm:$0xff]  ;;  %v271_v22 = vmul.f32 %v831_v6, %v248_v13  ;;  %v245_v25 = vld [vmem:[%s821_s30 + $0x28] sm:$0xff]  ;;  %v246_v45 = vld [vmem:[%s821_s30 + $0x30] sm:$0xff] }
  0x12   : > { %695 = vmatprep.subr.bf16.mxu0 %v749_v2  ;;  %725 = vmatprep.subr.bf16.mxu1 %v749_v2  ;;  %v252_v27 = vld [vmem:[%s821_s30 + $0x60] sm:$0xff]  ;;  %v253_v28 = vld [vmem:[%s821_s30 + $0x68] sm:$0xff]  ;;  %v267_v32 = vmul.f32 %v831_v6, %v244_v21  ;;  %v295_v33 = vadd.f32 %v838_v9, %v272_v26  ;;  %v273_v34 = vmul.f32 %v831_v6, %v250_v23  ;;  %v247_v46 = vld [vmem:[%s821_s30 + $0x38] sm:$0xff] }
  0x13   : > { %v302_v14 = vmax.f32 %v286_v10, 0.0  ;;  %v303_v15 = vmax.f32 %v287_v11, 0.0  ;;  %v294_v31 = vadd.f32 %v838_v9, %v271_v22  ;;  %v274_v35 = vmul.f32 %v831_v6, %v251_v24  ;;  %v254_v53 = vld [vmem:[%s821_s30 + $0x70] sm:$0xff]  ;;  %v255_v54 = vld [vmem:[%s821_s30 + $0x78] sm:$0xff]  ;;  %v754_v55 = vld [vmem:[%s930_s3] sm:$0xff]  }
  0x14   : > { %v268_v36 = vmul.f32 %v831_v6, %v245_v25  ;;  %v275_v38 = vmul.f32 %v831_v6, %v252_v27  ;;  %v276_v39 = vmul.f32 %v831_v6, %v253_v28  ;;  %v311_v41 = vmax.f32 %v295_v33, 0.0 }
  0x15   : > { %696 = vmatpush3.bf16.msra.mxu0 %v749_v2  ;;  %733 = vmatpush3.bf16.msra.mxu1 %v749_v2  ;;  %v318_v20 = vpack.c.bf16 %v303_v15, %v302_v14  ;;  %v310_v37 = vmax.f32 %v294_v31, 0.0  ;;  %v288_v42 = vadd.f32 %v838_v9, %v265_v29  ;;  %v289_v43 = vadd.f32 %v838_v9, %v266_v30 }
  0x16   : > { %697 = vmatprep.subr.bf16.mxu0 %v750_v3  ;;  %726 = vmatprep.subr.bf16.mxu1 %v750_v3  ;;  %v290_v44 = vadd.f32 %v838_v9, %v267_v32  ;;  %v296_v48 = vadd.f32 %v838_v9, %v273_v34  ;;  %v297_v49 = vadd.f32 %v838_v9, %v274_v35 }
  0x17   : > { %707 = vmatprep.mubr.bf16.mxu0 %v318_v20  ;;  %v322_v47 = vpack.c.bf16 %v311_v41, %v310_v37  ;;  %v291_v50 = vadd.f32 %v838_v9, %v268_v36  ;;  %v298_v51 = vadd.f32 %v838_v9, %v275_v38  ;;  %v299_v52 = vadd.f32 %v838_v9, %v276_v39 }
  0x18   : > { %v304_v56 = vmax.f32 %v288_v42, 0.0  ;;  %v305_v57 = vmax.f32 %v289_v43, 0.0  ;;  %v269_v58 = vmul.f32 %v831_v6, %v246_v45  ;;  %v270_v59 = vmul.f32 %v831_v6, %v247_v46 }
  0x19   : > { %698 = vmatpush3.bf16.msra.mxu0 %v750_v3  ;;  %734 = vmatpush3.bf16.msra.mxu1 %v750_v3  ;;  %v312_v60 = vmax.f32 %v296_v48, 0.0  ;;  %v313_v61 = vmax.f32 %v297_v49, 0.0  ;;  %v277_v62 = vmul.f32 %v831_v6, %v254_v53  ;;  %v278_v63 = vmul.f32 %v831_v6, %v255_v54 }
  0x1a   : > { %699 = vmatprep.subr.bf16.mxu0 %v751_v12  ;;  %727 = vmatprep.subr.bf16.mxu1 %v751_v12  ;;  %v306_v0 = vmax.f32 %v290_v44, 0.0  ;;  %v307_v1 = vmax.f32 %v291_v50, 0.0  ;;  %v314_v2 = vmax.f32 %v298_v51, 0.0  ;;  %v315_v3 = vmax.f32 %v299_v52, 0.0 }
  0x1b   : > { %715 = vmatprep.mubr.bf16.mxu1 %v322_v47  ;;  %v319_v4 = vpack.c.bf16 %v305_v57, %v304_v56  ;;  %v292_v5 = vadd.f32 %v838_v9, %v269_v58  ;;  %v293_v7 = vadd.f32 %v838_v9, %v270_v59  ;;  %v323_v8 = vpack.c.bf16 %v313_v61, %v312_v60 }
  0x1c   : > { %v300_v10 = vadd.f32 %v838_v9, %v277_v62  ;;  %v301_v11 = vadd.f32 %v838_v9, %v278_v63  ;;  %v320_v6 = vpack.c.bf16 %v307_v1, %v306_v0 }
  0x1d   : > { %700 = vmatpush3.bf16.msra.mxu0 %v751_v12  ;;  %735 = vmatpush3.bf16.msra.mxu1 %v751_v12  ;;  %v324_v12 = vpack.c.bf16 %v315_v3, %v314_v2  ;;  %v308_v13 = vmax.f32 %v292_v5, 0.0  ;;  %v309_v14 = vmax.f32 %v293_v7, 0.0 }
  0x1e   : > { %701 = vmatprep.subr.bf16.mxu0 %v752_v17  ;;  %728 = vmatprep.subr.bf16.mxu1 %v752_v17  ;;  %v316_v15 = vmax.f32 %v300_v10, 0.0  ;;  %v317_v16 = vmax.f32 %v301_v11, 0.0 }
  0x20   : > { %v325_v18 = vpack.c.bf16 %v317_v16, %v316_v15 }
  0x21   : > { %702 = vmatpush3.bf16.msra.mxu0 %v752_v17  ;;  %736 = vmatpush3.bf16.msra.mxu1 %v752_v17  ;;  %v321_v17 = vpack.c.bf16 %v309_v14, %v308_v13 }
  0x22   : > { %703 = vmatprep.subr.bf16.mxu0 %v753_v40  ;;  %729 = vmatprep.subr.bf16.mxu1 %v753_v40 }
  0x25   : > { %704 = vmatpush3.bf16.msra.mxu0 %v753_v40  ;;  %737 = vmatpush3.bf16.msra.mxu1 %v753_v40 }
  0x26   : > { %705 = vmatprep.subr.bf16.mxu0 %v754_v55  ;;  %730 = vmatprep.subr.bf16.mxu1 %v754_v55 }
  0x29   : > { %706 = vmatpush3.bf16.msra.mxu0 %v754_v55  ;;  %738 = vmatpush3.bf16.msra.mxu1 %v754_v55 }
  0x2c   : > { %708 = vmatmul.mubr.bf16.vlgmr.msra.gmra.mxu0 %v319_v4  ;;  %716 = vmatmul.mubr.bf16.vlgmr.msra.gmra.mxu1 %v323_v8 }
  0x2d   : > { %711 = vmatprep.mubr.bf16.mxu0 %v320_v6  ;;  %719 = vmatprep.mubr.bf16.mxu1 %v324_v12 }
  0x34   : > { %712 = vmatmul.mubr.bf16.gmra.mxu0 %v321_v17  ;;  %720 = vmatmul.mubr.bf16.gmra.mxu1 %v325_v18 }
  0xec   : > { %v709_v9 = vpop.f32.mrf.mxu0  ;;  %v717_v19 = vpop.f32.mrf.mxu1 }
  0xed   : > { %489 = vst [vmem:[%s901_s25 + $0x10] sm:$0xff] %v709_v9  ;;  %497 = vst [vmem:[%s901_s25 + $0x50] sm:$0xff] %v717_v19  ;;  %v526_v31 = vmul.f32 %v709_v9, %v709_v9  ;;  %v534_v61 = vmul.f32 %v717_v19, %v717_v19 }
  0xee   : > { %v424_v20 = vpop.f32.mrf.mxu0  ;;  %v456_v21 = vpop.f32.mrf.mxu1 }
  0xef   : > { %487 = vst [vmem:[%s901_s25] sm:$0xff] %v424_v20  ;;  %495 = vst [vmem:[%s901_s25 + $0x40] sm:$0xff] %v456_v21  ;;  %v524_v26 = vmul.f32 %v424_v20, %v424_v20  ;;  %v532_v55 = vmul.f32 %v456_v21, %v456_v21 }
  0xf0   : > { %v710_v22 = vpop.f32.mrf.mxu0  ;;  %v718_v23 = vpop.f32.mrf.mxu1 }
  0xf1   : > { %490 = vst [vmem:[%s901_s25 + $0x18] sm:$0xff] %v710_v22  ;;  %498 = vst [vmem:[%s901_s25 + $0x58] sm:$0xff] %v718_v23  ;;  %v527_v36 = vmul.f32 %v710_v22, %v710_v22  ;;  %v535_v0 = vmul.f32 %v718_v23, %v718_v23 }
  0xf2   : > { %v427_v24 = vpop.f32.mrf.mxu0  ;;  %v459_v25 = vpop.f32.mrf.mxu1 }
  0xf3   : > { %488 = vst [vmem:[%s901_s25 + $0x8] sm:$0xff] %v427_v24  ;;  %v503_v27 = vadd.f32 %v427_v24, %v424_v20  ;;  %v525_v28 = vmul.f32 %v427_v24, %v427_v24  ;;  %496 = vst [vmem:[%s901_s25 + $0x48] sm:$0xff] %v459_v25  ;;  %v533_v59 = vmul.f32 %v459_v25, %v459_v25 }
  0xf4   : > { %v713_v29 = vpop.f32.mrf.mxu0  ;;  %v721_v30 = vpop.f32.mrf.mxu1 }
  0xf5   : > { %v504_v32 = vadd.f32 %v709_v9, %v503_v27  ;;  %v540_v33 = vadd.f32 %v525_v28, %v524_v26  ;;  %493 = vst [vmem:[%s901_s25 + $0x30] sm:$0xff] %v713_v29  ;;  %501 = vst [vmem:[%s901_s25 + $0x70] sm:$0xff] %v721_v30  ;;  %v530_v49 = vmul.f32 %v713_v29, %v713_v29 }
  0xf6   : > { %v440_v34 = vpop.f32.mrf.mxu0  ;;  %v472_v35 = vpop.f32.mrf.mxu1  ;;  %v538_v11 = vmul.f32 %v721_v30, %v721_v30 }
  0xf7   : > { %v541_v37 = vadd.f32 %v540_v33, %v526_v31  ;;  %491 = vst [vmem:[%s901_s25 + $0x20] sm:$0xff] %v440_v34  ;;  %v505_v38 = vadd.f32 %v710_v22, %v504_v32  ;;  %499 = vst [vmem:[%s901_s25 + $0x60] sm:$0xff] %v472_v35  ;;  %v528_v42 = vmul.f32 %v440_v34, %v440_v34 }
  0xf8   : > { %v714_v39 = vpop.f32.mrf.mxu0  ;;  %v722_v40 = vpop.f32.mrf.mxu1  ;;  %v536_v4 = vmul.f32 %v472_v35, %v472_v35 }
  0xf9   : > { %v506_v41 = vadd.f32 %v505_v38, %v440_v34  ;;  %v542_v43 = vadd.f32 %v541_v37, %v527_v36  ;;  %494 = vst [vmem:[%s901_s25 + $0x38] sm:$0xff] %v714_v39  ;;  %502 = vst [vmem:[%s901_s25 + $0x78] sm:$0xff] %v722_v40  ;;  %v531_v52 = vmul.f32 %v714_v39, %v714_v39 }
  0xfa   : > { %v443_v44 = vpop.f32.mrf.mxu0  ;;  %v475_v45 = vpop.f32.mrf.mxu1  ;;  %v539_v13 = vmul.f32 %v722_v40, %v722_v40 }
  0xfb   : > { %v543_v46 = vadd.f32 %v542_v43, %v528_v42  ;;  %492 = vst [vmem:[%s901_s25 + $0x28] sm:$0xff] %v443_v44  ;;  %v507_v47 = vadd.f32 %v506_v41, %v443_v44  ;;  %v529_v48 = vmul.f32 %v443_v44, %v443_v44  ;;  %500 = vst [vmem:[%s901_s25 + $0x68] sm:$0xff] %v475_v45 }
  0xfc   : > { %v537_v10 = vmul.f32 %v475_v45, %v475_v45 }
  0xfd   : > { %v508_v50 = vadd.f32 %v713_v29, %v507_v47  ;;  %v544_v51 = vadd.f32 %v543_v46, %v529_v48 }
  0xff   : > { %v509_v53 = vadd.f32 %v714_v39, %v508_v50  ;;  %v545_v54 = vadd.f32 %v544_v51, %v530_v49 }
 0x101   : > { %v546_v56 = vadd.f32 %v545_v54, %v531_v52  ;;  %v510_v57 = vadd.f32 %v509_v53, %v456_v21 }
 0x103   : > { %v511_v58 = vadd.f32 %v510_v57, %v459_v25  ;;  %v547_v60 = vadd.f32 %v546_v56, %v532_v55 }
 0x105   : > { %v512_v62 = vadd.f32 %v717_v19, %v511_v58  ;;  %v548_v63 = vadd.f32 %v547_v60, %v533_v59 }
 0x107   : > { %v549_v1 = vadd.f32 %v548_v63, %v534_v61  ;;  %v513_v2 = vadd.f32 %v718_v23, %v512_v62 }
 0x109   : > { %v514_v3 = vadd.f32 %v513_v2, %v472_v35  ;;  %v550_v5 = vadd.f32 %v549_v1, %v535_v0 }
 0x10b   : > { %v551_v7 = vadd.f32 %v550_v5, %v536_v4  ;;  %v515_v8 = vadd.f32 %v514_v3, %v475_v45 }
 0x10d   : > { %v516_v6 = vadd.f32 %v721_v30, %v515_v8  ;;  %v552_v12 = vadd.f32 %v551_v7, %v537_v10 }
 0x10f   : > { %v517_v14 = vadd.f32 %v722_v40, %v516_v6  ;;  %v553_v15 = vadd.f32 %v552_v12, %v538_v11 }
 0x111   : > { %v518_v16 = vrot.slane %v517_v14, 4  ;;  %v554_v17 = vadd.f32 %v553_v15, %v539_v13 }
 0x113   : > { %v519_v18 = vadd.f32 %v518_v16, %v517_v14  ;;  %v555_v9 = vrot.slane %v554_v17, 4 }
 0x115   : > { %v520_v19 = vrot.slane %v519_v18, 2  ;;  %v556_v20 = vadd.f32 %v555_v9, %v554_v17 }
 0x117   : > { %v521_v21 = vadd.f32 %v520_v19, %v519_v18  ;;  %v557_v22 = vrot.slane %v556_v20, 2 }
 0x119   : > { %v522_v23 = vrot.slane %v521_v21, 1  ;;  %v558_v24 = vadd.f32 %v557_v22, %v556_v20 }
 0x11b   : > { %v559_v25 = vrot.slane %v558_v24, 1  ;;  %v523_v26 = vadd.f32 %v522_v23, %v521_v21 }
 0x11d   : > { %v560_v27 = vadd.f32 %v559_v25, %v558_v24 }
 0x11f   : > { %v562_v28 = vsel %vm561_vm0, %v523_v26, %v560_v27 }
 0x120   : > { %v564_v29 = vsel %vm563_vm1, %v562_v28, 0.0 }
 0x121   : > { %565 = vst [vmem:[%s238_s28] sm:$0xff] %v564_v29 }
 0x122 PF: > { %s16_s18 = sadd.s32 1, %s761_s18  }
 0x123   : > { %p13_p5 = scmp.ge.s32.totalorder %s16_s18, 6  }
 0x125   :  { %15 = sbr.rel (!%p13_p5) target bundleno = 1 (0x1), region = 78 }

// kernel: bottleneck_forward.5
= control target key start
LH: loop header
LB: loop body
LE: loop exit
PB: predicated region body
PF: predicated region fallthrough
CT: control target
= control target key end

     0   :  { %s4436_s18 = smov 0   ;;  %s5936_s0 = inlined_call_operand.vmem [shape: f32[1,128], index: 0, kind: input, shape index: {}]   ;;  %s5937_s1 = inlined_call_operand.vmem [shape: f32[1,128], index: 1, kind: input, shape index: {}]   ;;  %s5938_s2 = inlined_call_operand.vmem [shape: f32[2,16,16,128], index: 2, kind: input, shape index: {}]   ;;  %s5939_s3 = inlined_call_operand.vmem [shape: bf16[9,128,128], index: 3, kind: input, shape index: {}]   ;;  %s5940_s4 = inlined_call_operand.vmem [shape: f32[2,16,16,128], index: 4, kind: output, shape index: {0}]   ;;  %s5941_s5 = inlined_call_operand.vmem [shape: f32[2,8,128], index: 5, kind: output, shape index: {1}]  }
   0x1 LB: > { %s3298_s19 = sadd.s32 4294967295, %s4401_s18   ;;  %p3302_p0 = scmp.ge.s32.totalorder %s4401_s18, 1  ;;  %s4401_s18 = sphi %s4436_s18, %s16_s18  }
   0x2   : > { %p190_p1 = scmp.lt.s32.totalorder %s4401_s18, 3 }
   0x4   : > { %p191_p2 = pnand %p3302_p0, %p190_p1 }
   0x6   : > { %194 = sbr.rel (%p191_p2) target bundleno = 551 (0x227), region = 36 }
   0xb   : > { %v4323_v0 = vld [vmem:[%s5939_s3 + $0x78] sm:$0xff]   ;;  %p222_p3 = scmp.lt.s32.totalorder %s3298_s19, 1  ;;  %v4324_v1 = vld [vmem:[%s5939_s3 + $0x70] sm:$0xff]   ;;  %v4325_v2 = vld [vmem:[%s5939_s3 + $0x68] sm:$0xff]   ;;  %vm4403_vm0 = vmmov 0   ;;  %v4404_v11 = vmov 0   ;;  %v397_v51 = vlaneseq }
   0xc   : > { %3864 = vmatprep.subr.bf16.mxu0 %v4323_v0  ;;  %4296 = vmatprep.subr.bf16.mxu1 %v4323_v0  ;;  %v4326_v3 = vld [vmem:[%s5939_s3 + $0x60] sm:$0xff]   ;;  %vm585_vm1 = vmpackc.low %vm4403_vm0, %vm4403_vm0  ;;  %vm4405_vm2 = vmmov 1   ;;  %v4327_v18 = vld [vmem:[%s5939_s3 + $0x58] sm:$0xff]   ;;  %v5953_v27 = vmov 0  ;;  %v5957_v35 = vmov 0  ;;  %vm544_vm8 = vcmask 1040384  }
   0xd   : > { %s6084_s19 = smov (!%p222_p3, %s3298_s19), 1  ;;  %3865 = vmatpush3.bf16.msra.mxu0 %v4323_v0  ;;  %4304 = vmatpush3.bf16.msra.mxu1 %v4323_v0  ;;  %v4471_v6 = vld [vmem:[%s5936_s0] ss:$0 sm:$0xff]  ;;  %v589_v12 = vsel %vm585_vm1, 65537, %v4404_v11  ;;  %vm588_vm3 = vmpackc.low %vm4405_vm2, %vm4405_vm2  ;;  %v4328_v33 = vld [vmem:[%s5939_s3 + $0x50] sm:$0xff]   ;;  %vm1184_vm10 = vcmask 1047552  }
   0xe   : > { %3866 = vmatprep.subr.bf16.mxu0 %v4324_v1  ;;  %4297 = vmatprep.subr.bf16.mxu1 %v4324_v1  ;;  %s3646_s26 = sshll.u32 %s6084_s19, 8  ;;  %v4478_v9 = vld [vmem:[%s5937_s1] ss:$0 sm:$0xff]  ;;  %v3310_v17 = vcombine.low %v589_v12, %v589_v12  ;;  %v4490_v19 = vsel %vm588_vm3, 65537, %v4404_v11  ;;  %v4329_v45 = vld [vmem:[%s5939_s3 + $0x48] sm:$0xff]   ;;  %vm3209_vm2 = vcmask 1041408  }
   0xf   : > { %s4461_s29 = scalar_lea.vmem %s5938_s2, %s3646_s26  ;;  %v3313_v28 = vcombine.low %v4490_v19, %v4490_v19  ;;  %v4330_v58 = vld [vmem:[%s5939_s3 + $0x40] sm:$0xff]   ;;  %vm545_vm9 = vsmask.f32 256  ;;  %vm1185_vm13 = vsmask.f32 7424  ;;  %s5808_s17 = scalar_lea.vmem %s5940_s4, %s3646_s26 }
  0x10   : > { %v269_v4 = vld [vmem:[%s4461_s29 + $0xf0] sm:$0xff]  ;;  %v270_v5 = vld [vmem:[%s4461_s29 + $0xf8] sm:$0xff]  ;;  %v239_v22 = vld [vmem:[%s4461_s29] sm:$0xff]  ;;  %vm4497_vm4 = vcmp.ne.s16.totalorder %v3310_v17, 0  ;;  %s3307_s26 = sshll.u32 %s6084_s19, 3 }
  0x11   : > { %3867 = vmatpush3.bf16.msra.mxu0 %v4324_v1  ;;  %4305 = vmatpush3.bf16.msra.mxu1 %v4324_v1  ;;  %v308_v7 = vmul.f32 %v4471_v6, %v269_v4  ;;  %v309_v8 = vmul.f32 %v4471_v6, %v270_v5  ;;  %v253_v10 = vld [vmem:[%s4461_s29 + $0x70] sm:$0xff]  ;;  %v254_v13 = vld [vmem:[%s4461_s29 + $0x78] sm:$0xff]  ;;  %v240_v25 = vld [vmem:[%s4461_s29 + $0x8] sm:$0xff]  ;;  %v5954_v27 = vsel %vm4497_vm4, 4294967295, %v5953_v27  ;;  %vm4510_vm5 = vcmp.ne.s16.totalorder %v3313_v28, 0  ;;  %s235_s22 = scalar_lea.vmem %s5941_s5, %s3307_s26 }
  0x12   : > { %3868 = vmatprep.subr.bf16.mxu0 %v4325_v2  ;;  %4298 = vmatprep.subr.bf16.mxu1 %v4325_v2  ;;  %v292_v14 = vmul.f32 %v4471_v6, %v253_v10  ;;  %v293_v20 = vmul.f32 %v4471_v6, %v254_v13  ;;  %v255_v26 = vld [vmem:[%s4461_s29 + $0x80] sm:$0xff]  ;;  %5955 = vst [vmem:[#allocation2_spill] sm:$0xff] %v5954_v27  ;;  %v256_v32 = vld [vmem:[%s4461_s29 + $0x88] sm:$0xff]  ;;  %v5958_v35 = vsel %vm4510_vm5, 4294967295, %v5957_v35  ;;  %v241_v37 = vld [vmem:[%s4461_s29 + $0x10] sm:$0xff]  ;;  %v398_v4 = vshrl.u32 %v397_v51, 7 }
  0x13   : > { %v347_v15 = vadd.f32 %v4478_v9, %v308_v7  ;;  %v348_v16 = vadd.f32 %v4478_v9, %v309_v8  ;;  %5959 = vst [vmem:[#allocation4_spill] sm:$0xff] %v5958_v35  ;;  %v278_v36 = vmul.f32 %v4471_v6, %v239_v22  ;;  %v242_v38 = vld [vmem:[%s4461_s29 + $0x18] sm:$0xff]  ;;  %v279_v40 = vmul.f32 %v4471_v6, %v240_v25  ;;  %v257_v43 = vld [vmem:[%s4461_s29 + $0x90] sm:$0xff]  ;;  %v243_v50 = vld [vmem:[%s4461_s29 + $0x20] sm:$0xff] }
  0x14   : > { %v331_v21 = vadd.f32 %v4478_v9, %v292_v14  ;;  %v332_v29 = vadd.f32 %v4478_v9, %v293_v20  ;;  %v294_v41 = vmul.f32 %v4471_v6, %v255_v26  ;;  %v295_v42 = vmul.f32 %v4471_v6, %v256_v32  ;;  %v258_v44 = vld [vmem:[%s4461_s29 + $0x98] sm:$0xff]  ;;  %v244_v53 = vld [vmem:[%s4461_s29 + $0x28] sm:$0xff]  ;;  %v259_v57 = vld [vmem:[%s4461_s29 + $0xa0] sm:$0xff] }
  0x15   : > { %3869 = vmatpush3.bf16.msra.mxu0 %v4325_v2  ;;  %4306 = vmatpush3.bf16.msra.mxu1 %v4325_v2  ;;  %v379_v23 = vmax.f32 %v347_v15, 0.0  ;;  %v380_v24 = vmax.f32 %v348_v16, 0.0  ;;  %v280_v46 = vmul.f32 %v4471_v6, %v241_v37  ;;  %v281_v47 = vmul.f32 %v4471_v6, %v242_v38  ;;  %v260_v62 = vld [vmem:[%s4461_s29 + $0xa8] sm:$0xff]  ;;  %v245_v2 = vld [vmem:[%s4461_s29 + $0x30] sm:$0xff]  ;;  %v4331_v13 = vld [vmem:[%s5939_s3 + $0x38] sm:$0xff]  }
  0x16   : > { %3870 = vmatprep.subr.bf16.mxu0 %v4326_v3  ;;  %4299 = vmatprep.subr.bf16.mxu1 %v4326_v3  ;;  %v363_v30 = vmax.f32 %v331_v21, 0.0  ;;  %v364_v34 = vmax.f32 %v332_v29, 0.0  ;;  %v296_v48 = vmul.f32 %v4471_v6, %v257_v43  ;;  %v297_v49 = vmul.f32 %v4471_v6, %v258_v44  ;;  %v4332_v14 = vld [vmem:[%s5939_s3 + $0xb8] sm:$0xff]   ;;  %v261_v16 = vld [vmem:[%s4461_s29 + $0xb0] sm:$0xff]  ;;  %v263_v44 = vld [vmem:[%s4461_s29 + $0xc0] sm:$0xff] }
  0x17   : > { %v4504_v31 = vpack.c.bf16 %v380_v24, %v379_v23  ;;  %v317_v52 = vadd.f32 %v4478_v9, %v278_v36  ;;  %v318_v54 = vadd.f32 %v4478_v9, %v279_v40  ;;  %v333_v55 = vadd.f32 %v4478_v9, %v294_v41  ;;  %v262_v17 = vld [vmem:[%s4461_s29 + $0xb8] sm:$0xff]  ;;  %vm4750_vm14 = vmand %vm544_vm8, %vm545_vm9 }
  0x18   : > { %v4520_v39 = vpack.c.bf16 %v364_v34, %v363_v30  ;;  %v334_v56 = vadd.f32 %v4478_v9, %v295_v42  ;;  %v319_v59 = vadd.f32 %v4478_v9, %v280_v46  ;;  %v320_v60 = vadd.f32 %v4478_v9, %v281_v47  ;;  %v248_v34 = vld [vmem:[%s4461_s29 + $0x48] sm:$0xff]  ;;  %v4333_v46 = vld [vmem:[%s5939_s3 + $0x30] sm:$0xff]   ;;  %vm4755_vm15 = vmand %vm1184_vm10, %vm1185_vm13 }
  0x19   : > { %3871 = vmatpush3.bf16.msra.mxu0 %v4326_v3  ;;  %4307 = vmatpush3.bf16.msra.mxu1 %v4326_v3  ;;  %5956 = vst [vmem:[#allocation3_spill] sm:$0xff] %v4504_v31  ;;  %v335_v61 = vadd.f32 %v4478_v9, %v296_v48  ;;  %v336_v63 = vadd.f32 %v4478_v9, %v297_v49  ;;  %v246_v3 = vld [vmem:[%s4461_s29 + $0x38] sm:$0xff]  ;;  %v349_v5 = vmax.f32 %v317_v52, 0.0  ;;  %v350_v8 = vmax.f32 %v318_v54, 0.0  ;;  %v4334_v47 = vld [vmem:[%s5939_s3 + $0xb0] sm:$0xff]  }
  0x1a   : > { %3872 = vmatprep.subr.bf16.mxu0 %v4327_v18  ;;  %4300 = vmatprep.subr.bf16.mxu1 %v4327_v18  ;;  %v282_v0 = vmul.f32 %v4471_v6, %v243_v50  ;;  %v283_v1 = vmul.f32 %v4471_v6, %v244_v53  ;;  %v298_v7 = vmul.f32 %v4471_v6, %v259_v57  ;;  %v365_v10 = vmax.f32 %v333_v55, 0.0  ;;  %v249_v52 = vld [vmem:[%s4461_s29 + $0x50] sm:$0xff]  ;;  %v250_v57 = vld [vmem:[%s4461_s29 + $0x58] sm:$0xff] }
  0x1b   : > { %3880 = vmatprep.mubr.msk.bf16.mxu0 %vm4497_vm4, %v4504_v31  ;;  %3896 = vmatprep.mubr.msk.bf16.mxu1 %vm4510_vm5, %v4520_v39  ;;  %v366_v12 = vmax.f32 %v334_v56, 0.0  ;;  %v299_v15 = vmul.f32 %v4471_v6, %v260_v62  ;;  %v352_v20 = vmax.f32 %v320_v60, 0.0  ;;  %v284_v21 = vmul.f32 %v4471_v6, %v245_v2  ;;  %v4335_v60 = vld [vmem:[%s5939_s3 + $0x28] sm:$0xff]  }
  0x1c   : > { %v285_v22 = vmul.f32 %v4471_v6, %v246_v3  ;;  %v367_v23 = vmax.f32 %v335_v61, 0.0  ;;  %v368_v24 = vmax.f32 %v336_v63, 0.0  ;;  %v321_v25 = vadd.f32 %v4478_v9, %v282_v0  ;;  %v266_v63 = vld [vmem:[%s4461_s29 + $0xd8] sm:$0xff]  ;;  %v4336_v3 = vld [vmem:[%s5939_s3 + $0xa8] sm:$0xff]  }
  0x1d   : > { %3873 = vmatpush3.bf16.msra.mxu0 %v4327_v18  ;;  %4308 = vmatpush3.bf16.msra.mxu1 %v4327_v18  ;;  %v351_v18 = vmax.f32 %v319_v59, 0.0  ;;  %v322_v26 = vadd.f32 %v4478_v9, %v283_v1  ;;  %v399_v28 = vadd.s32 8, %v398_v4  ;;  %v337_v29 = vadd.f32 %v4478_v9, %v298_v7 }
  0x1e   : > { %3874 = vmatprep.subr.bf16.mxu0 %v4328_v33  ;;  %4301 = vmatprep.subr.bf16.mxu1 %v4328_v33  ;;  %v300_v30 = vmul.f32 %v4471_v6, %v261_v16  ;;  %v301_v32 = vmul.f32 %v4471_v6, %v262_v17  ;;  %v4575_v36 = vpack.c.bf16 %v350_v8, %v349_v5  ;;  %v4580_v40 = vadd.s32 4294967295, %v398_v4 }
  0x1f   : > { %v4577_v37 = vpack.c.bf16 %v366_v12, %v365_v10  ;;  %v338_v38 = vadd.f32 %v4478_v9, %v299_v15  ;;  %v4582_v41 = vpack.c.bf16 %v352_v20, %v351_v18  ;;  %v323_v42 = vadd.f32 %v4478_v9, %v284_v21  ;;  %v252_v15 = vld [vmem:[%s4461_s29 + $0x68] sm:$0xff] }
  0x20   : > { %5960 = vst [vmem:[#allocation5_spill] sm:$0xff] %v4575_v36  ;;  %v324_v43 = vadd.f32 %v4478_v9, %v285_v22  ;;  %v4594_v48 = vpack.c.bf16 %v368_v24, %v367_v23  ;;  %v353_v49 = vmax.f32 %v321_v25, 0.0  ;;  %v354_v50 = vmax.f32 %v322_v26, 0.0  ;;  %v4337_v22 = vld [vmem:[%s5939_s3 + $0x20] sm:$0xff]   ;;  %v268_v26 = vld [vmem:[%s4461_s29 + $0xe8] sm:$0xff] }
  0x21   : > { %3875 = vmatpush3.bf16.msra.mxu0 %v4328_v33  ;;  %4309 = vmatpush3.bf16.msra.mxu1 %v4328_v33  ;;  %v247_v33 = vld [vmem:[%s4461_s29 + $0x40] sm:$0xff]  ;;  %v369_v53 = vmax.f32 %v337_v29, 0.0  ;;  %v339_v54 = vadd.f32 %v4478_v9, %v300_v30  ;;  %v340_v55 = vadd.f32 %v4478_v9, %v301_v32  ;;  %v287_v56 = vmul.f32 %v4471_v6, %v248_v34 }
  0x22   : > { %3876 = vmatprep.subr.bf16.mxu0 %v4329_v45  ;;  %4302 = vmatprep.subr.bf16.mxu1 %v4329_v45  ;;  %v286_v51 = vmul.f32 %v4471_v6, %v247_v33  ;;  %v370_v59 = vmax.f32 %v338_v38, 0.0  ;;  %v302_v61 = vmul.f32 %v4471_v6, %v263_v44  ;;  %v355_v0 = vmax.f32 %v323_v42, 0.0  ;;  %v267_v25 = vld [vmem:[%s4461_s29 + $0xe0] sm:$0xff] }
  0x23   : > { %v356_v1 = vmax.f32 %v324_v43, 0.0  ;;  %v288_v2 = vmul.f32 %v4471_v6, %v249_v52  ;;  %v289_v5 = vmul.f32 %v4471_v6, %v250_v57  ;;  %v371_v8 = vmax.f32 %v339_v54, 0.0  ;;  %v4338_v29 = vld [vmem:[%s5939_s3 + $0xa0] sm:$0xff]  }
  0x24   : > { %v4620_v4 = vadd.f32 %v4478_v9, %v286_v51  ;;  %v372_v10 = vmax.f32 %v340_v55, 0.0  ;;  %v326_v12 = vadd.f32 %v4478_v9, %v287_v56  ;;  %v4634_v16 = vpack.c.bf16 %v354_v50, %v353_v49  ;;  %v4339_v49 = vld [vmem:[%s5939_s3 + $0x18] sm:$0xff]  }
  0x25   : > { %3877 = vmatpush3.bf16.msra.mxu0 %v4329_v45  ;;  %4310 = vmatpush3.bf16.msra.mxu1 %v4329_v45  ;;  %v264_v45 = vld [vmem:[%s4461_s29 + $0xc8] sm:$0xff]  ;;  %v4636_v17 = vpack.c.bf16 %v370_v59, %v369_v53  ;;  %v341_v18 = vadd.f32 %v4478_v9, %v302_v61  ;;  %vm565_vm6 = vcmp.ge.s32.totalorder %v4580_v40, 0  ;;  %v1204_v21 = vadd.s32 1, %v399_v28  ;;  %v4340_v51 = vld [vmem:[%s5939_s3 + $0x98] sm:$0xff]  }
  0x26   : > { %3878 = vmatprep.subr.bf16.mxu0 %v4330_v58  ;;  %4303 = vmatprep.subr.bf16.mxu1 %v4330_v58  ;;  %v303_v62 = vmul.f32 %v4471_v6, %v264_v45  ;;  %v4644_v23 = vpack.c.bf16 %v356_v1, %v355_v0  ;;  %v327_v24 = vadd.f32 %v4478_v9, %v288_v2  ;;  %v357_v28 = vmax.f32 %v4620_v4, 0.0  ;;  %vm4679_vm11 = vmpackc.low %vm565_vm6, %vm565_vm6  ;;  %v4342_v1 = vld [vmem:[%s5939_s3 + $0x90] sm:$0xff]  }
  0x27   : > { %v328_v30 = vadd.f32 %v4478_v9, %v289_v5  ;;  %v4656_v34 = vpack.c.bf16 %v372_v10, %v371_v8  ;;  %v358_v38 = vmax.f32 %v326_v12, 0.0  ;;  %v291_v43 = vmul.f32 %v4471_v6, %v252_v15  ;;  %v4343_v15 = vld [vmem:[%s5939_s3 + $0x8] sm:$0xff]  }
  0x28   : > { %v342_v20 = vadd.f32 %v4478_v9, %v303_v62  ;;  %v373_v44 = vmax.f32 %v341_v18, 0.0  ;;  %vm1212_vm7 = vcmp.lt.s32.totalorder %v1204_v21, 16  ;;  %v401_v50 = vshrl.u32 %v4504_v31, 16  ;;  %v4344_v18 = vld [vmem:[%s5939_s3 + $0x88] sm:$0xff]  }
  0x29   : > { %3879 = vmatpush3.bf16.msra.mxu0 %v4330_v58  ;;  %4311 = vmatpush3.bf16.msra.mxu1 %v4330_v58  ;;  %v265_v58 = vld [vmem:[%s4461_s29 + $0xd0] sm:$0xff]  ;;  %v359_v52 = vmax.f32 %v327_v24, 0.0  ;;  %v360_v53 = vmax.f32 %v328_v30, 0.0  ;;  %v330_v57 = vadd.f32 %v4478_v9, %v291_v43  ;;  %vm4693_vm12 = vmpackc.low %vm1212_vm7, %vm1212_vm7  ;;  %v4697_v59 = vpack.c.bf16 %v358_v38, %v357_v28  ;;  %v4345_v24 = vld [vmem:[%s5939_s3] sm:$0xff]  }
  0x2a   : > { %3912 = vmatprep.subr.bf16.mxu1 %v4331_v13  ;;  %3960 = vmatprep.subr.bf16.mxu0 %v4332_v14  ;;  %v304_v7 = vmul.f32 %v4471_v6, %v265_v58  ;;  %v374_v45 = vmax.f32 %v342_v20, 0.0  ;;  %v480_v58 = vshll.u32 %v4504_v31, 16  ;;  %v403_v0 = vrot.slane %v401_v50, 7  ;;  %v4366_v28 = vld [vmem:[%s5939_s3 + $0x1b0] sm:$0xff]  }
  0x2b   : > { %v362_v5 = vmax.f32 %v330_v57, 0.0  ;;  %v591_v10 = vsel %vm4679_vm11, 65537, %v4404_v11  ;;  %v1232_v12 = vsel %vm4693_vm12, 65537, %v4404_v11  ;;  %v409_v11 = vshrl.u32 %v4582_v41, 16 }
  0x2c   : > { %3881 = vmatmul.mubr.msk.bf16.vlgmr.msra.gmra.mxu0 %vm4510_vm5, %v4575_v36  ;;  %3897 = vmatmul.mubr.msk.bf16.vlgmr.msra.gmra.mxu1 %vm4510_vm5, %v4577_v37  ;;  %v343_v32 = vadd.f32 %v4478_v9, %v304_v7  ;;  %v486_v20 = vshll.u32 %v4582_v41, 16  ;;  %v3311_v38 = vcombine.low %v591_v10, %v4490_v19 }
  0x2d   : > { %3913 = vmatpush3.bf16.msra.mxu1 %v4331_v13  ;;  %3961 = vmatpush3.bf16.msra.mxu0 %v4332_v14  ;;  %v305_v13 = vmul.f32 %v4471_v6, %v266_v63  ;;  %v251_v14 = vld [vmem:[%s4461_s29 + $0x60] sm:$0xff]  ;;  %v4341_v63 = vld [vmem:[%s5939_s3 + $0x10] sm:$0xff]  }
  0x2e   : > { %3914 = vmatprep.subr.bf16.mxu1 %v4333_v46  ;;  %3962 = vmatprep.subr.bf16.mxu0 %v4334_v47  ;;  %v290_v33 = vmul.f32 %v4471_v6, %v251_v14  ;;  %v483_v14 = vshll.u32 %v4575_v36, 16  ;;  %v1124_v43 = vrot.slane %v486_v20, 1  ;;  %vm4794_vm0 = vcmp.ne.s16.totalorder %v3311_v38, 0  ;;  %v4353_v38 = vld [vmem:[%s5939_s3 + $0xe0] sm:$0xff]  }
  0x2f   : > { %3884 = vmatprep.mubr.msk.bf16.mxu0 %vm4510_vm5, %v4582_v41  ;;  %3900 = vmatprep.mubr.msk.bf16.mxu1 %vm4510_vm5, %v4594_v48  ;;  %v344_v42 = vadd.f32 %v4478_v9, %v305_v13  ;;  %v405_v13 = vshrl.u32 %v4575_v36, 16 }
  0x30   : > { %v329_v54 = vadd.f32 %v4478_v9, %v290_v33  ;;  %v4346_v33 = vld [vmem:[%s5939_s3 + $0x80] sm:$0xff]   ;;  %v1125_v55 = vor.u32 %v1124_v43, %v409_v11 }
  0x31   : > { %3915 = vmatpush3.bf16.msra.mxu1 %v4333_v46  ;;  %3963 = vmatpush3.bf16.msra.mxu0 %v4334_v47  ;;  %v306_v46 = vmul.f32 %v4471_v6, %v267_v25  ;;  %v307_v47 = vmul.f32 %v4471_v6, %v268_v26  ;;  %v375_v6 = vmax.f32 %v343_v32, 0.0  ;;  %v376_v56 = vmax.f32 %v344_v42, 0.0  ;;  %v4365_v26 = vld [vmem:[%s5939_s3 + $0x170] sm:$0xff]  }
  0x32   : > { %3916 = vmatprep.subr.bf16.mxu1 %v4335_v60  ;;  %3964 = vmatprep.subr.bf16.mxu0 %v4336_v3  ;;  %v361_v2 = vmax.f32 %v329_v54, 0.0  ;;  %v482_v25 = vor.u32 %v480_v58, %v403_v0  ;;  %v407_v30 = vrot.slane %v405_v13, 7  ;;  %v1122_v32 = vrot.slane %v483_v14, 1 }
  0x33   : > { %v345_v61 = vadd.f32 %v4478_v9, %v306_v46  ;;  %v346_v62 = vadd.f32 %v4478_v9, %v307_v47  ;;  %v4711_v4 = vpack.c.bf16 %v376_v56, %v375_v6  ;;  %v1120_v9 = vrot.slane %v480_v58, 1 }
  0x34   : > { %3885 = vmatmul.mubr.msk.bf16.gmra.mxu0 %vm4510_vm5, %v4634_v16  ;;  %3901 = vmatmul.mubr.msk.bf16.gmra.mxu1 %vm4510_vm5, %v4636_v17  ;;  %v4741_v21 = vpack.c.bf16 %v362_v5, %v361_v2  ;;  %v411_v42 = vrot.slane %v409_v11, 7  ;;  %v485_v47 = vor.u32 %v483_v14, %v407_v30  ;;  %v492_v6 = vshll.u32 %v4644_v23, 16  ;;  %v4349_v5 = vld [vmem:[%s5939_s3 + $0xf0] sm:$0xff]   ;;  %v4351_v11 = vld [vmem:[%s5939_s3 + $0xe8] sm:$0xff]  }
  0x35   : > { %3917 = vmatpush3.bf16.msra.mxu1 %v4335_v60  ;;  %3965 = vmatpush3.bf16.msra.mxu0 %v4336_v3  ;;  %v4699_v60 = vpack.c.bf16 %v374_v45, %v373_v44  ;;  %v4709_v3 = vpack.c.bf16 %v360_v53, %v359_v52  ;;  %v377_v7 = vmax.f32 %v345_v61, 0.0  ;;  %v378_v8 = vmax.f32 %v346_v62, 0.0  ;;  %v4348_v52 = vld [vmem:[%s5939_s3 + $0x138] sm:$0xff]  }
  0x36   : > { %3918 = vmatprep.subr.bf16.mxu1 %v4337_v22  ;;  %3966 = vmatprep.subr.bf16.mxu0 %v4338_v29  ;;  %v3379_v44 = vcombine.low %v4490_v19, %v1232_v12  ;;  %v4772_v45 = vsel %vm4750_vm14, %v403_v0, %v482_v25  ;;  %v1123_v19 = vor.u32 %v1122_v32, %v405_v13  ;;  %v417_v53 = vshrl.u32 %v4644_v23, 16 }
  0x37   : > { %3888 = vmatprep.mubr.msk.bf16.mxu0 %vm4510_vm5, %v4644_v23  ;;  %3904 = vmatprep.mubr.msk.bf16.mxu1 %vm4510_vm5, %v4656_v34  ;;  %v488_v54 = vor.u32 %v486_v20, %v411_v42  ;;  %v4804_v58 = vsel %vm4750_vm14, %v407_v30, %v485_v47  ;;  %v1128_v0 = vrot.slane %v492_v6, 1  ;;  %v4816_v2 = vsel %vm4755_vm15, %v1125_v55, %v1124_v43  ;;  %v4352_v20 = vld [vmem:[%s5939_s3 + $0x128] sm:$0xff]  }
  0x38   : > { %vm4798_vm1 = vcmp.ne.s16.totalorder %v3379_v44, 0  ;;  %v4808_v40 = vsel %vm4755_vm15, %v1123_v19, %v1122_v32  ;;  %v425_v13 = vshrl.u32 %v4709_v3, 16  ;;  %v498_v14 = vshll.u32 %v4709_v3, 16 }
  0x39   : > { %3919 = vmatpush3.bf16.msra.mxu1 %v4337_v22  ;;  %3967 = vmatpush3.bf16.msra.mxu0 %v4338_v29  ;;  %v4743_v22 = vpack.c.bf16 %v378_v8, %v377_v7  ;;  %v1121_v29 = vor.u32 %v1120_v9, %v401_v50  ;;  %v489_v50 = vshll.u32 %v4634_v16, 16  ;;  %5974 = vst [vmem:[#allocation7_spill] sm:$0xff] %v4808_v40  ;;  %v421_v7 = vshrl.u32 %v4697_v59, 16 }
  0x3a   : > { %3920 = vmatprep.subr.bf16.mxu1 %v4339_v49  ;;  %3968 = vmatprep.subr.bf16.mxu0 %v4340_v51  ;;  %v495_v8 = vshll.u32 %v4697_v59, 16  ;;  %v427_v32 = vrot.slane %v425_v13, 7  ;;  %v429_v47 = vshrl.u32 %v4741_v21, 16  ;;  %v501_v19 = vshll.u32 %v4741_v21, 16 }
  0x3b   : > { %v4776_v46 = vsel %vm4755_vm15, %v1121_v29, %v1120_v9  ;;  %v1126_v62 = vrot.slane %v489_v50, 1  ;;  %v4350_v9 = vld [vmem:[%s5939_s3 + $0x130] sm:$0xff]   ;;  %v504_v55 = vshll.u32 %v4520_v39, 16 }
  0x3c   : > { %3889 = vmatmul.mubr.msk.bf16.gmra.mxu0 %vm4510_vm5, %v4697_v59  ;;  %3905 = vmatmul.mubr.msk.bf16.gmra.mxu1 %vm4510_vm5, %v4699_v60  ;;  %5969 = vst [vmem:[#allocation6_spill] sm:$0xff] %v4776_v46  ;;  %v1130_v25 = vrot.slane %v495_v8, 1 }
  0x3d   : > { %3921 = vmatpush3.bf16.msra.mxu1 %v4339_v49  ;;  %3969 = vmatpush3.bf16.msra.mxu0 %v4340_v51  ;;  %v413_v49 = vshrl.u32 %v4634_v16, 16  ;;  %v4347_v51 = vld [vmem:[%s5939_s3 + $0xf8] sm:$0xff]  }
  0x3e   : > { %3922 = vmatprep.subr.bf16.mxu1 %v4341_v63  ;;  %3970 = vmatprep.subr.bf16.mxu0 %v4342_v1 }
  0x3f   : > { %3892 = vmatprep.mubr.msk.bf16.mxu0 %vm4510_vm5, %v4709_v3  ;;  %3908 = vmatprep.mubr.msk.bf16.mxu1 %vm4510_vm5, %v4711_v4  ;;  %v415_v61 = vrot.slane %v413_v49, 7  ;;  %v1127_v12 = vor.u32 %v1126_v62, %v413_v49 }
  0x41   : > { %3923 = vmatpush3.bf16.msra.mxu1 %v4341_v63  ;;  %3971 = vmatpush3.bf16.msra.mxu0 %v4342_v1  ;;  %v419_v63 = vrot.slane %v417_v53, 7  ;;  %v4812_v1 = vsel %vm4750_vm14, %v411_v42, %v488_v54  ;;  %v491_v10 = vor.u32 %v489_v50, %v415_v61  ;;  %v4852_v30 = vsel %vm4755_vm15, %v1127_v12, %v1126_v62  ;;  %v4354_v42 = vld [vmem:[%s5939_s3 + $0x120] sm:$0xff]  }
  0x42   : > { %3924 = vmatprep.subr.bf16.mxu1 %v4343_v15  ;;  %3972 = vmatprep.subr.bf16.mxu0 %v4344_v18  ;;  %v1131_v50 = vor.u32 %v1130_v25, %v421_v7  ;;  %v433_v54 = vshrl.u32 %v4520_v39, 16  ;;  %v1134_v62 = vrot.slane %v501_v19, 1 }
  0x43   : > { %v4848_v29 = vsel %vm4750_vm14, %v415_v61, %v491_v10  ;;  %v431_v61 = vrot.slane %v429_v47, 7  ;;  %v4357_v10 = vld [vmem:[%s5939_s3 + $0xd0] sm:$0xff]  }
  0x44   : > { %3893 = vmatmul.mubr.msk.bf16.gmra.mxu0 %vm4510_vm5, %v4741_v21  ;;  %3909 = vmatmul.mubr.msk.bf16.gmra.mxu1 %vm4510_vm5, %v4743_v22 }
  0x45   : > { %3925 = vmatpush3.bf16.msra.mxu1 %v4343_v15  ;;  %3973 = vmatpush3.bf16.msra.mxu0 %v4344_v18  ;;  %v494_v15 = vor.u32 %v492_v6, %v419_v63  ;;  %v1129_v18 = vor.u32 %v1128_v0, %v417_v53  ;;  %v500_v53 = vor.u32 %v498_v14, %v427_v32 }
  0x46   : > { %3926 = vmatprep.subr.bf16.mxu1 %v4345_v24  ;;  %3974 = vmatprep.subr.bf16.mxu0 %v4346_v33 }
  0x47   : > { %3928 = vmatprep.mubr.msk.bf16.mxu1 %vm4497_vm4, %v4772_v45  ;;  %3976 = vmatprep.mubr.msk.bf16.mxu0 %vm4497_vm4, %v4776_v46  ;;  %v4862_v43 = vsel %vm4750_vm14, %v419_v63, %v494_v15  ;;  %v4866_v44 = vsel %vm4755_vm15, %v1129_v18, %v1128_v0  ;;  %v437_v63 = vshrl.u32 %v4577_v37, 16  ;;  %v507_v0 = vshll.u32 %v4577_v37, 16  ;;  %v4358_v18 = vld [vmem:[%s5939_s3 + $0x110] sm:$0xff]  }
  0x48   : > { %v4907_v12 = vsel %vm4750_vm14, %v427_v32, %v500_v53  ;;  %v1136_v15 = vrot.slane %v504_v55, 1  ;;  %v4361_v53 = vld [vmem:[%s5939_s3 + $0xc0] sm:$0xff]  }
  0x49   : > { %3927 = vmatpush3.bf16.msra.mxu1 %v4345_v24  ;;  %3975 = vmatpush3.bf16.msra.mxu0 %v4346_v33  ;;  %v423_v24 = vrot.slane %v421_v7, 7  ;;  %v1132_v33 = vrot.slane %v498_v14, 1  ;;  %v441_v7 = vshrl.u32 %v4594_v48, 16  ;;  %v435_v14 = vrot.slane %v433_v54, 7 }
  0x4a   : > { %4008 = vmatprep.subr.bf16.mxu1 %v4347_v51  ;;  %4056 = vmatprep.subr.bf16.mxu0 %v4348_v52 }
  0x4b   : > { %v497_v49 = vor.u32 %v495_v8, %v423_v24  ;;  %v1133_v6 = vor.u32 %v1132_v33, %v425_v13  ;;  %v510_v8 = vshll.u32 %v4594_v48, 16  ;;  %v443_v32 = vrot.slane %v441_v7, 7 }
  0x4c   : > { %3929 = vmatmul.mubr.msk.bf16.vlgmr.msra.gmra.mxu1 %vm4794_vm0, %v4804_v58  ;;  %3977 = vmatmul.mubr.msk.bf16.vlgmr.msra.gmra.mxu0 %vm4798_vm1, %v4808_v40 }
  0x4d   : > { %4009 = vmatpush3.bf16.msra.mxu1 %v4347_v51  ;;  %4057 = vmatpush3.bf16.msra.mxu0 %v4348_v52  ;;  %v4355_v51 = vld [vmem:[%s5939_s3 + $0xd8] sm:$0xff]   ;;  %v4911_v13 = vsel %vm4755_vm15, %v1133_v6, %v1132_v33  ;;  %v1140_v33 = vrot.slane %v510_v8, 1  ;;  %v4362_v6 = vld [vmem:[%s5939_s3 + $0x100] sm:$0xff]  }
  0x4e   : > { %3932 = vmatprep.mubr.msk.bf16.mxu1 %vm4794_vm0, %v4812_v1  ;;  %3980 = vmatprep.mubr.msk.bf16.mxu0 %vm4798_vm1, %v4816_v2  ;;  %v4356_v52 = vld [vmem:[%s5939_s3 + $0x118] sm:$0xff]  }
  0x4f   : > { %4010 = vmatprep.subr.bf16.mxu1 %v4349_v5  ;;  %4058 = vmatprep.subr.bf16.mxu0 %v4350_v9 }
  0x51   : > { %4011 = vmatpush3.bf16.msra.mxu1 %v4349_v5  ;;  %4059 = vmatpush3.bf16.msra.mxu0 %v4350_v9  ;;  %v4894_v5 = vsel %vm4750_vm14, %v423_v24, %v497_v49  ;;  %v4898_v9 = vsel %vm4755_vm15, %v1131_v50, %v1130_v25  ;;  %v503_v24 = vor.u32 %v501_v19, %v431_v61 }
  0x52   : > { %4012 = vmatprep.subr.bf16.mxu1 %v4351_v11  ;;  %4060 = vmatprep.subr.bf16.mxu0 %v4352_v20  ;;  %v1135_v25 = vor.u32 %v1134_v62, %v429_v47  ;;  %v506_v49 = vor.u32 %v504_v55, %v435_v14  ;;  %v1137_v50 = vor.u32 %v1136_v15, %v433_v54 }
  0x53   : > { %v4936_v19 = vsel %vm4750_vm14, %v431_v61, %v503_v24  ;;  %v445_v61 = vshrl.u32 %v4636_v17, 16  ;;  %v4975_v24 = vld [vmem:[%s5939_s3 + $0x178] sm:$0xff]  }
  0x54   : > { %3933 = vmatmul.mubr.msk.bf16.gmra.mxu1 %vm4794_vm0, %v4848_v29  ;;  %3981 = vmatmul.mubr.msk.bf16.gmra.mxu0 %vm4798_vm1, %v4852_v30  ;;  %v4940_v47 = vsel %vm4755_vm15, %v1135_v25, %v1134_v62  ;;  %v513_v62 = vshll.u32 %v4636_v17, 16 }
  0x55   : > { %3936 = vmatprep.mubr.msk.bf16.mxu1 %vm4794_vm0, %v4862_v43  ;;  %3984 = vmatprep.mubr.msk.bf16.mxu0 %vm4798_vm1, %v4866_v44 }
  0x56   : > { %4013 = vmatpush3.bf16.msra.mxu1 %v4351_v11  ;;  %4061 = vmatpush3.bf16.msra.mxu0 %v4352_v20  ;;  %v439_v11 = vrot.slane %v437_v63, 7  ;;  %v1138_v20 = vrot.slane %v507_v0, 1  ;;  %v1142_v25 = vrot.slane %v513_v62, 1 }
  0x57   : > { %4014 = vmatprep.subr.bf16.mxu1 %v4353_v38  ;;  %4062 = vmatprep.subr.bf16.mxu0 %v4354_v42 }
  0x58   : > { %v509_v54 = vor.u32 %v507_v0, %v439_v11  ;;  %v1139_v55 = vor.u32 %v1138_v20, %v437_v63  ;;  %v4980_v63 = vld [vmem:[%s5939_s3 + $0x1b8] sm:$0xff]  }
  0x5a   : > { %4015 = vmatpush3.bf16.msra.mxu1 %v4353_v38  ;;  %4063 = vmatpush3.bf16.msra.mxu0 %v4354_v42  ;;  %v4359_v38 = vld [vmem:[%s5939_s3 + $0xc8] sm:$0xff]   ;;  %v4984_v0 = vsel %vm4750_vm14, %v439_v11, %v509_v54  ;;  %v457_v54 = vshrl.u32 %v4711_v4, 16 }
  0x5b   : > { %4016 = vmatprep.subr.bf16.mxu1 %v4355_v51  ;;  %4064 = vmatprep.subr.bf16.mxu0 %v4356_v52  ;;  %v4360_v42 = vld [vmem:[%s5939_s3 + $0x108] sm:$0xff]  }
  0x5c   : > { %3937 = vmatmul.mubr.msk.bf16.gmra.mxu1 %vm4794_vm0, %v4894_v5  ;;  %3985 = vmatmul.mubr.msk.bf16.gmra.mxu0 %vm4798_vm1, %v4898_v9 }
  0x5d   : > { %3940 = vmatprep.mubr.msk.bf16.mxu1 %vm4794_vm0, %v4907_v12  ;;  %3988 = vmatprep.mubr.msk.bf16.mxu0 %vm4798_vm1, %v4911_v13 }
  0x5e   : > { %4017 = vmatpush3.bf16.msra.mxu1 %v4355_v51  ;;  %4065 = vmatpush3.bf16.msra.mxu0 %v4356_v52  ;;  %v4950_v51 = vsel %vm4750_vm14, %v435_v14, %v506_v49  ;;  %v4954_v52 = vsel %vm4755_vm15, %v1137_v50, %v1136_v15  ;;  %v1141_v14 = vor.u32 %v1140_v33, %v441_v7  ;;  %v449_v15 = vshrl.u32 %v4656_v34, 16 }
  0x5f   : > { %4018 = vmatprep.subr.bf16.mxu1 %v4357_v10  ;;  %4066 = vmatprep.subr.bf16.mxu0 %v4358_v18  ;;  %v4988_v7 = vsel %vm4755_vm15, %v1139_v55, %v1138_v20  ;;  %v1143_v20 = vor.u32 %v1142_v25, %v445_v61  ;;  %v522_v55 = vshll.u32 %v4711_v4, 16 }
  0x60   : > { %v451_v49 = vrot.slane %v449_v15, 7 }
  0x61   : > { %v1148_v27 = vrot.slane %v522_v55, 1 }
  0x62   : > { %4019 = vmatpush3.bf16.msra.mxu1 %v4357_v10  ;;  %4067 = vmatpush3.bf16.msra.mxu0 %v4358_v18  ;;  %v512_v10 = vor.u32 %v510_v8, %v443_v32  ;;  %v516_v18 = vshll.u32 %v4656_v34, 16  ;;  %v447_v8 = vrot.slane %v445_v61, 7 }
  0x63   : > { %4020 = vmatprep.subr.bf16.mxu1 %v4359_v38  ;;  %4068 = vmatprep.subr.bf16.mxu0 %v4360_v42 }
  0x64   : > { %3941 = vmatmul.mubr.msk.bf16.gmra.mxu1 %vm4794_vm0, %v4936_v19  ;;  %3989 = vmatmul.mubr.msk.bf16.gmra.mxu0 %vm4798_vm1, %v4940_v47  ;;  %v1144_v50 = vrot.slane %v516_v18, 1  ;;  %v515_v11 = vor.u32 %v513_v62, %v447_v8 }
  0x65   : > { %3944 = vmatprep.mubr.msk.bf16.mxu1 %vm4794_vm0, %v4950_v51  ;;  %3992 = vmatprep.mubr.msk.bf16.mxu0 %vm4798_vm1, %v4954_v52 }
  0x66   : > { %4021 = vmatpush3.bf16.msra.mxu1 %v4359_v38  ;;  %4069 = vmatpush3.bf16.msra.mxu0 %v4360_v42  ;;  %v4992_v38 = vsel %vm4750_vm14, %v443_v32, %v512_v10  ;;  %v4996_v42 = vsel %vm4755_vm15, %v1141_v14, %v1140_v33  ;;  %v453_v32 = vshrl.u32 %v4699_v60, 16  ;;  %v519_v33 = vshll.u32 %v4699_v60, 16 }
  0x67   : > { %4022 = vmatprep.subr.bf16.mxu1 %v4361_v53  ;;  %4070 = vmatprep.subr.bf16.mxu0 %v4362_v6  ;;  %v5018_v10 = vsel %vm4750_vm14, %v447_v8, %v515_v11  ;;  %v5022_v14 = vsel %vm4755_vm15, %v1143_v20, %v1142_v25  ;;  %v1149_v20 = vor.u32 %v1148_v27, %v457_v54 }
  0x68   : > { %5975 = vst [vmem:[#allocation8_spill] sm:$0xff] %v5022_v14  ;;  %v455_v62 = vrot.slane %v453_v32, 7  ;;  %v1146_v61 = vrot.slane %v519_v33, 1 }
  0x6a   : > { %4023 = vmatpush3.bf16.msra.mxu1 %v4361_v53  ;;  %4071 = vmatpush3.bf16.msra.mxu0 %v4362_v6  ;;  %v518_v53 = vor.u32 %v516_v18, %v451_v49  ;;  %v1145_v6 = vor.u32 %v1144_v50, %v449_v15  ;;  %v459_v18 = vrot.slane %v457_v54, 7  ;;  %v521_v8 = vor.u32 %v519_v33, %v455_v62 }
  0x6b   : > { %4104 = vmatprep.subr.bf16.mxu1 %v4975_v24  ;;  %4152 = vmatprep.subr.bf16.mxu0 %v4980_v63  ;;  %v1147_v25 = vor.u32 %v1146_v61, %v453_v32  ;;  %v5060_v32 = vsel %vm4755_vm15, %v1149_v20, %v1148_v27  ;;  %v4378_v20 = vld [vmem:[%s5939_s3 + $0x180] sm:$0xff]  }
  0x6c   : > { %3945 = vmatmul.mubr.msk.bf16.gmra.mxu1 %vm4794_vm0, %v4984_v0  ;;  %3993 = vmatmul.mubr.msk.bf16.gmra.mxu0 %vm4798_vm1, %v4988_v7  ;;  %v5026_v35 = vsel %vm4750_vm14, %v451_v49, %v518_v53  ;;  %v5030_v15 = vsel %vm4755_vm15, %v1145_v6, %v1144_v50  ;;  %v461_v49 = vshrl.u32 %v4743_v22, 16  ;;  %v525_v50 = vshll.u32 %v4743_v22, 16 }
  0x6d   : > { %3948 = vmatprep.mubr.msk.bf16.mxu1 %vm4794_vm0, %v4992_v38  ;;  %3996 = vmatprep.mubr.msk.bf16.mxu0 %vm4798_vm1, %v4996_v42  ;;  %v524_v11 = vor.u32 %v522_v55, %v459_v18  ;;  %v5048_v53 = vsel %vm4750_vm14, %v455_v62, %v521_v8  ;;  %v5052_v6 = vsel %vm4755_vm15, %v1147_v25, %v1146_v61  ;;  %v4371_v61 = vld [vmem:[%s5939_s3 + $0x158] sm:$0xff]   ;;  %v4373_v8 = vld [vmem:[%s5939_s3 + $0x150] sm:$0xff]  }
  0x6e   : > { %v463_v46 = vrot.slane %v461_v49, 7  ;;  %v4374_v25 = vld [vmem:[%s5939_s3 + $0x190] sm:$0xff]  }
  0x6f   : > { %v5056_v33 = vsel %vm4750_vm14, %v459_v18, %v524_v11  ;;  %v4372_v18 = vld [vmem:[%s5939_s3 + $0x198] sm:$0xff]   ;;  %v4377_v11 = vld [vmem:[%s5939_s3 + $0x140] sm:$0xff]  }
  0x70   : > { %v527_v54 = vor.u32 %v525_v50, %v463_v46 }
  0x72   : > { %v5076_v27 = vsel %vm4750_vm14, %v463_v46, %v527_v54  ;;  %v4367_v46 = vld [vmem:[%s5939_s3 + $0x168] sm:$0xff]   ;;  %v4379_v54 = vld [vmem:[%s5939_s3 + $0x1f8] sm:$0xff]  }
  0x74   : > { %3949 = vmatmul.mubr.msk.bf16.gmra.mxu1 %vm4794_vm0, %v5018_v10  ;;  %3997 = vmatmul.mubr.msk.bf16.gmra.mxu0 %vm4798_vm1, %v5022_v14  ;;  %v1150_v14 = vrot.slane %v525_v50, 1  ;;  %v4376_v50 = vld [vmem:[%s5939_s3 + $0x188] sm:$0xff]  }
  0x75   : > { %3952 = vmatprep.mubr.msk.bf16.mxu1 %vm4794_vm0, %v5026_v35  ;;  %4000 = vmatprep.mubr.msk.bf16.mxu0 %vm4798_vm1, %v5030_v15 }
  0x76   : > { %v1151_v55 = vor.u32 %v1150_v14, %v461_v49  ;;  %v4375_v49 = vld [vmem:[%s5939_s3 + $0x148] sm:$0xff]  }
  0x78   : > { %v5080_v62 = vsel %vm4755_vm15, %v1151_v55, %v1150_v14  ;;  %v4368_v14 = vld [vmem:[%s5939_s3 + $0x1a8] sm:$0xff]   ;;  %v4380_v55 = vld [vmem:[%s5939_s3 + $0x238] sm:$0xff]  }
  0x7c   : > { %3953 = vmatmul.mubr.msk.bf16.gmra.mxu1 %vm4794_vm0, %v5048_v53  ;;  %4001 = vmatmul.mubr.msk.bf16.gmra.mxu0 %vm4798_vm1, %v5052_v6 }
  0x7d   : > { %3956 = vmatprep.mubr.msk.bf16.mxu1 %vm4794_vm0, %v5056_v33  ;;  %4004 = vmatprep.mubr.msk.bf16.mxu0 %vm4798_vm1, %v5060_v32 }
  0x84   : > { %3957 = vmatmul.mubr.msk.bf16.gmra.mxu1 %vm4794_vm0, %v5076_v27  ;;  %4005 = vmatmul.mubr.msk.bf16.gmra.mxu0 %vm4798_vm1, %v5080_v62 }
  0x85   : > { %4024 = vmatprep.mubr.msk.bf16.mxu1 %vm4794_vm0, %v4804_v58  ;;  %4072 = vmatprep.mubr.bf16.mxu0 %v4575_v36 }
  0x8c   : > { %4025 = vmatmul.mubr.msk.bf16.vlgmr.msra.gmra.mxu1 %vm4794_vm0, %v4812_v1  ;;  %4073 = vmatmul.mubr.bf16.vlgmr.msra.gmra.mxu0 %v4582_v41 }
  0x8d   : > { %4105 = vmatpush3.bf16.msra.mxu1 %v4975_v24  ;;  %4153 = vmatpush3.bf16.msra.mxu0 %v4980_v63  ;;  %v4369_v24 = vld [vmem:[%s5939_s3 + $0x160] sm:$0xff]  }
  0x8e   : > { %4028 = vmatprep.mubr.msk.bf16.mxu1 %vm4794_vm0, %v4848_v29  ;;  %4076 = vmatprep.mubr.bf16.mxu0 %v4634_v16  ;;  %v4370_v63 = vld [vmem:[%s5939_s3 + $0x1a0] sm:$0xff]  }
  0x8f   : > { %4106 = vmatprep.subr.bf16.mxu1 %v4365_v26  ;;  %4154 = vmatprep.subr.bf16.mxu0 %v4366_v28 }
  0x91   : > { %4107 = vmatpush3.bf16.msra.mxu1 %v4365_v26  ;;  %4155 = vmatpush3.bf16.msra.mxu0 %v4366_v28  ;;  %v4381_v26 = vld [vmem:[%s5939_s3 + $0x1f0] sm:$0xff]  }
  0x92   : > { %4108 = vmatprep.subr.bf16.mxu1 %v4367_v46  ;;  %4156 = vmatprep.subr.bf16.mxu0 %v4368_v14  ;;  %v4382_v28 = vld [vmem:[%s5939_s3 + $0x230] sm:$0xff]  }
  0x94   : > { %4029 = vmatmul.mubr.msk.bf16.gmra.mxu1 %vm4794_vm0, %v4862_v43  ;;  %4077 = vmatmul.mubr.bf16.gmra.mxu0 %v4644_v23 }
  0x95   : > { %4032 = vmatprep.mubr.msk.bf16.mxu1 %vm4794_vm0, %v4894_v5  ;;  %4080 = vmatprep.mubr.bf16.mxu0 %v4697_v59 }
  0x96   : > { %4109 = vmatpush3.bf16.msra.mxu1 %v4367_v46  ;;  %4157 = vmatpush3.bf16.msra.mxu0 %v4368_v14  ;;  %v4384_v46 = vld [vmem:[%s5939_s3 + $0x228] sm:$0xff]   ;;  %v4387_v14 = vld [vmem:[%s5939_s3 + $0x1d8] sm:$0xff]  }
  0x97   : > { %4110 = vmatprep.subr.bf16.mxu1 %v4369_v24  ;;  %4158 = vmatprep.subr.bf16.mxu0 %v4370_v63 }
  0x9a   : > { %4111 = vmatpush3.bf16.msra.mxu1 %v4369_v24  ;;  %4159 = vmatpush3.bf16.msra.mxu0 %v4370_v63  ;;  %v4390_v24 = vld [vmem:[%s5939_s3 + $0x210] sm:$0xff]   ;;  %v4391_v63 = vld [vmem:[%s5939_s3 + $0x1c8] sm:$0xff]  }
  0x9b   : > { %4112 = vmatprep.subr.bf16.mxu1 %v4371_v61  ;;  %4160 = vmatprep.subr.bf16.mxu0 %v4372_v18 }
  0x9c   : > { %4033 = vmatmul.mubr.msk.bf16.gmra.mxu1 %vm4794_vm0, %v4907_v12  ;;  %4081 = vmatmul.mubr.bf16.gmra.mxu0 %v4709_v3 }
  0x9d   : > { %4036 = vmatprep.mubr.msk.bf16.mxu1 %vm4794_vm0, %v4936_v19  ;;  %4084 = vmatprep.mubr.bf16.mxu0 %v4741_v21 }
  0x9e   : > { %4113 = vmatpush3.bf16.msra.mxu1 %v4371_v61  ;;  %4161 = vmatpush3.bf16.msra.mxu0 %v4372_v18  ;;  %v4394_v61 = vld [vmem:[%s5939_s3 + $0x200] sm:$0xff]  }
  0x9f   : > { %4114 = vmatprep.subr.bf16.mxu1 %v4373_v8  ;;  %4162 = vmatprep.subr.bf16.mxu0 %v4374_v25 }
  0xa2   : > { %4115 = vmatpush3.bf16.msra.mxu1 %v4373_v8  ;;  %4163 = vmatpush3.bf16.msra.mxu0 %v4374_v25 }
  0xa3   : > { %4116 = vmatprep.subr.bf16.mxu1 %v4375_v49  ;;  %4164 = vmatprep.subr.bf16.mxu0 %v4376_v50 }
  0xa4   : > { %4037 = vmatmul.mubr.msk.bf16.gmra.mxu1 %vm4794_vm0, %v4950_v51  ;;  %4085 = vmatmul.mubr.bf16.gmra.mxu0 %v4520_v39 }
  0xa5   : > { %4040 = vmatprep.mubr.msk.bf16.mxu1 %vm4794_vm0, %v4984_v0  ;;  %4088 = vmatprep.mubr.bf16.mxu0 %v4577_v37 }
  0xa6   : > { %4117 = vmatpush3.bf16.msra.mxu1 %v4375_v49  ;;  %4165 = vmatpush3.bf16.msra.mxu0 %v4376_v50 }
  0xa7   : > { %4118 = vmatprep.subr.bf16.mxu1 %v4377_v11  ;;  %4166 = vmatprep.subr.bf16.mxu0 %v4378_v20 }
  0xaa   : > { %4119 = vmatpush3.bf16.msra.mxu1 %v4377_v11  ;;  %4167 = vmatpush3.bf16.msra.mxu0 %v4378_v20 }
  0xab   : > { %4200 = vmatprep.subr.bf16.mxu1 %v4379_v54  ;;  %4248 = vmatprep.subr.bf16.mxu0 %v4380_v55 }
  0xac   : > { %4041 = vmatmul.mubr.msk.bf16.gmra.mxu1 %vm4794_vm0, %v4992_v38  ;;  %4089 = vmatmul.mubr.bf16.gmra.mxu0 %v4594_v48 }
  0xad   : > { %4044 = vmatprep.mubr.msk.bf16.mxu1 %vm4794_vm0, %v5018_v10  ;;  %4092 = vmatprep.mubr.bf16.mxu0 %v4636_v17 }
  0xb4   : > { %4045 = vmatmul.mubr.msk.bf16.gmra.mxu1 %vm4794_vm0, %v5026_v35  ;;  %4093 = vmatmul.mubr.bf16.gmra.mxu0 %v4656_v34 }
  0xb5   : > { %4048 = vmatprep.mubr.msk.bf16.mxu1 %vm4794_vm0, %v5048_v53  ;;  %4096 = vmatprep.mubr.bf16.mxu0 %v4699_v60 }
  0xbc   : > { %4049 = vmatmul.mubr.msk.bf16.gmra.mxu1 %vm4794_vm0, %v5056_v33  ;;  %4097 = vmatmul.mubr.bf16.gmra.mxu0 %v4711_v4 }
  0xbd   : > { %4052 = vmatprep.mubr.msk.bf16.mxu1 %vm4794_vm0, %v5076_v27  ;;  %4100 = vmatprep.mubr.bf16.mxu0 %v4743_v22 }
  0xc4   : > { %4053 = vmatmul.mubr.msk.bf16.gmra.mxu1 %vm4794_vm0, %v4772_v45  ;;  %4101 = vmatmul.mubr.bf16.gmra.mxu0 %v4504_v31 }
  0xc5   : > { %4120 = vmatprep.mubr.msk.bf16.mxu1 %vm4798_vm1, %v4808_v40  ;;  %4168 = vmatprep.mubr.msk.bf16.mxu0 %vm4794_vm0, %v4812_v1  ;;  %v4383_v1 = vld [vmem:[%s5939_s3 + $0x1e8] sm:$0xff]  }
  0xcc   : > { %4121 = vmatmul.mubr.msk.bf16.vlgmr.msra.gmra.mxu1 %vm4798_vm1, %v4816_v2  ;;  %4169 = vmatmul.mubr.msk.bf16.vlgmr.msra.gmra.mxu0 %vm4794_vm0, %v4848_v29  ;;  %v4385_v29 = vld [vmem:[%s5939_s3 + $0x1e0] sm:$0xff]  }
  0xcd   : > { %4201 = vmatpush3.bf16.msra.mxu1 %v4379_v54  ;;  %4249 = vmatpush3.bf16.msra.mxu0 %v4380_v55 }
  0xce   : > { %4124 = vmatprep.mubr.msk.bf16.mxu1 %vm4798_vm1, %v4852_v30  ;;  %4172 = vmatprep.mubr.msk.bf16.mxu0 %vm4794_vm0, %v4862_v43  ;;  %v4386_v43 = vld [vmem:[%s5939_s3 + $0x220] sm:$0xff]  }
  0xcf   : > { %4202 = vmatprep.subr.bf16.mxu1 %v4381_v26  ;;  %4250 = vmatprep.subr.bf16.mxu0 %v4382_v28 }
  0xd1   : > { %4203 = vmatpush3.bf16.msra.mxu1 %v4381_v26  ;;  %4251 = vmatpush3.bf16.msra.mxu0 %v4382_v28 }
  0xd2   : > { %4204 = vmatprep.subr.bf16.mxu1 %v4383_v1  ;;  %4252 = vmatprep.subr.bf16.mxu0 %v4384_v46 }
  0xd4   : > { %4125 = vmatmul.mubr.msk.bf16.gmra.mxu1 %vm4798_vm1, %v4866_v44  ;;  %4173 = vmatmul.mubr.msk.bf16.gmra.mxu0 %vm4794_vm0, %v4894_v5  ;;  %v4388_v5 = vld [vmem:[%s5939_s3 + $0x218] sm:$0xff]  }
  0xd5   : > { %4128 = vmatprep.mubr.msk.bf16.mxu1 %vm4798_vm1, %v4898_v9  ;;  %4176 = vmatprep.mubr.msk.bf16.mxu0 %vm4794_vm0, %v4907_v12  ;;  %v4389_v12 = vld [vmem:[%s5939_s3 + $0x1d0] sm:$0xff]  }
  0xd6   : > { %4205 = vmatpush3.bf16.msra.mxu1 %v4383_v1  ;;  %4253 = vmatpush3.bf16.msra.mxu0 %v4384_v46 }
  0xd7   : > { %4206 = vmatprep.subr.bf16.mxu1 %v4385_v29  ;;  %4254 = vmatprep.subr.bf16.mxu0 %v4386_v43 }
  0xda   : > { %4207 = vmatpush3.bf16.msra.mxu1 %v4385_v29  ;;  %4255 = vmatpush3.bf16.msra.mxu0 %v4386_v43 }
  0xdb   : > { %4208 = vmatprep.subr.bf16.mxu1 %v4387_v14  ;;  %4256 = vmatprep.subr.bf16.mxu0 %v4388_v5 }
  0xdc   : > { %4129 = vmatmul.mubr.msk.bf16.gmra.mxu1 %vm4798_vm1, %v4911_v13  ;;  %4177 = vmatmul.mubr.msk.bf16.gmra.mxu0 %vm4794_vm0, %v4936_v19  ;;  %v4392_v19 = vld [vmem:[%s5939_s3 + $0x208] sm:$0xff]  }
  0xdd   : > { %4132 = vmatprep.mubr.msk.bf16.mxu1 %vm4798_vm1, %v4940_v47  ;;  %4180 = vmatprep.mubr.msk.bf16.mxu0 %vm4794_vm0, %v4950_v51  ;;  %v4393_v51 = vld [vmem:[%s5939_s3 + $0x1c0] sm:$0xff]  }
  0xde   : > { %4209 = vmatpush3.bf16.msra.mxu1 %v4387_v14  ;;  %4257 = vmatpush3.bf16.msra.mxu0 %v4388_v5 }
  0xdf   : > { %4210 = vmatprep.subr.bf16.mxu1 %v4389_v12  ;;  %4258 = vmatprep.subr.bf16.mxu0 %v4390_v24 }
  0xe2   : > { %4211 = vmatpush3.bf16.msra.mxu1 %v4389_v12  ;;  %4259 = vmatpush3.bf16.msra.mxu0 %v4390_v24 }
  0xe3   : > { %4212 = vmatprep.subr.bf16.mxu1 %v4391_v63  ;;  %4260 = vmatprep.subr.bf16.mxu0 %v4392_v19 }
  0xe4   : > { %4133 = vmatmul.mubr.msk.bf16.gmra.mxu1 %vm4798_vm1, %v4954_v52  ;;  %4181 = vmatmul.mubr.msk.bf16.gmra.mxu0 %vm4794_vm0, %v4984_v0  ;;  %v5976_v0 = vld [vmem:[#allocation8_spill] sm:$0xff] }
  0xe5   : > { %4136 = vmatprep.mubr.msk.bf16.mxu1 %vm4798_vm1, %v4988_v7  ;;  %4184 = vmatprep.mubr.msk.bf16.mxu0 %vm4794_vm0, %v4992_v38 }
  0xe6   : > { %4213 = vmatpush3.bf16.msra.mxu1 %v4391_v63  ;;  %4261 = vmatpush3.bf16.msra.mxu0 %v4392_v19  ;;  %v5982_v19 = vld [vmem:[#allocation6_spill] sm:$0xff] }
  0xe7   : > { %4214 = vmatprep.subr.bf16.mxu1 %v4393_v51  ;;  %4262 = vmatprep.subr.bf16.mxu0 %v4394_v61 }
  0xea   : > { %4215 = vmatpush3.bf16.msra.mxu1 %v4393_v51  ;;  %4263 = vmatpush3.bf16.msra.mxu0 %v4394_v61 }
  0xec   : > { %v3882_v18 = vpop.f32.mrf.mxu0  ;;  %v5298_v8 = vpop.f32.mrf.mxu1  ;;  %4137 = vmatmul.mubr.msk.bf16.gmra.mxu1 %vm4798_vm1, %v4996_v42  ;;  %4185 = vmatmul.mubr.msk.bf16.gmra.mxu0 %vm4794_vm0, %v5018_v10 }
  0xed   : > { %4140 = vmatprep.mubr.msk.bf16.mxu1 %vm4798_vm1, %v5976_v0  ;;  %4188 = vmatprep.mubr.msk.bf16.mxu0 %vm4794_vm0, %v5026_v35 }
  0xee   : > { %v784_v38 = vpop.f32.mrf.mxu0  ;;  %v5312_v25 = vpop.f32.mrf.mxu1 }
  0xf0   : > { %v3883_v49 = vpop.f32.mrf.mxu0  ;;  %v5314_v50 = vpop.f32.mrf.mxu1 }
  0xf2   : > { %v787_v11 = vpop.f32.mrf.mxu0  ;;  %v5316_v20 = vpop.f32.mrf.mxu1 }
  0xf4   : > { %v3886_v54 = vpop.f32.mrf.mxu0  ;;  %v5318_v55 = vpop.f32.mrf.mxu1  ;;  %4141 = vmatmul.mubr.msk.bf16.gmra.mxu1 %vm4798_vm1, %v5030_v15  ;;  %4189 = vmatmul.mubr.msk.bf16.gmra.mxu0 %vm4794_vm0, %v5048_v53 }
  0xf5   : > { %4144 = vmatprep.mubr.msk.bf16.mxu1 %vm4798_vm1, %v5052_v6  ;;  %4192 = vmatprep.mubr.msk.bf16.mxu0 %vm4794_vm0, %v5056_v33 }
  0xf6   : > { %v800_v35 = vpop.f32.mrf.mxu0  ;;  %v5332_v10 = vpop.f32.mrf.mxu1 }
  0xf8   : > { %v3887_v26 = vpop.f32.mrf.mxu0  ;;  %v5334_v28 = vpop.f32.mrf.mxu1 }
  0xfa   : > { %v5336_v1 = vpop.f32.mrf.mxu0  ;;  %v5338_v46 = vpop.f32.mrf.mxu1 }
  0xfc   : > { %v5340_v29 = vpop.f32.mrf.mxu0  ;;  %v5342_v53 = vpop.f32.mrf.mxu1  ;;  %4145 = vmatmul.mubr.msk.bf16.gmra.mxu1 %vm4798_vm1, %v5060_v32  ;;  %4193 = vmatmul.mubr.msk.bf16.gmra.mxu0 %vm4794_vm0, %v5076_v27 }
  0xfd   : > { %5977 = vst [vmem:[#allocation8_spill] sm:$0xff] %v5342_v53  ;;  %4148 = vmatprep.mubr.msk.bf16.mxu1 %vm4798_vm1, %v5080_v62  ;;  %4196 = vmatprep.mubr.msk.bf16.mxu0 %vm4794_vm0, %v4772_v45 }
  0xfe   : > { %v5356_v33 = vpop.f32.mrf.mxu0  ;;  %v5358_v43 = vpop.f32.mrf.mxu1 }
  0xff   : > { %5978 = vst [vmem:[#allocation9_spill] sm:$0xff] %v5358_v43 }
 0x100   : > { %v5360_v14 = vpop.f32.mrf.mxu0  ;;  %v5362_v5 = vpop.f32.mrf.mxu1 }
 0x101   : > { %5979 = vst [vmem:[#allocation10_spill] sm:$0xff] %v5362_v5 }
 0x102   : > { %v5364_v12 = vpop.f32.mrf.mxu0  ;;  %v5366_v24 = vpop.f32.mrf.mxu1 }
 0x103   : > { %5980 = vst [vmem:[#allocation11_spill] sm:$0xff] %v5366_v24 }
 0x104   : > { %v5368_v27 = vpop.f32.mrf.mxu0  ;;  %v5370_v63 = vpop.f32.mrf.mxu1  ;;  %4149 = vmatmul.mubr.msk.bf16.gmra.mxu1 %vm4798_vm1, %v5982_v19  ;;  %4197 = vmatmul.mubr.msk.bf16.gmra.mxu0 %vm4497_vm4, %v4804_v58 }
 0x105   : > { %5981 = vst [vmem:[#allocation12_spill] sm:$0xff] %v5370_v63  ;;  %4216 = vmatprep.mubr.msk.bf16.mxu1 %vm4510_vm5, %v4582_v41  ;;  %4264 = vmatprep.mubr.msk.bf16.mxu0 %vm4798_vm1, %v4816_v2 }
 0x106   : > { %v5384_v51 = vpop.f32.mrf.mxu0  ;;  %v5386_v61 = vpop.f32.mrf.mxu1 }
 0x107   : > { %5985 = vst [vmem:[#allocation4_spill] sm:$0xff] %v5386_v61 }
 0x108   : > { %v5388_v63 = vpop.f32.mrf.mxu0  ;;  %v5390_v40 = vpop.f32.mrf.mxu1 }
 0x109   : > { %5986 = vst [vmem:[#allocation13_spill] sm:$0xff] %v5390_v40 }
 0x10a   : > { %v5392_v36 = vpop.f32.mrf.mxu0  ;;  %v5394_v45 = vpop.f32.mrf.mxu1 }
 0x10b   : > { %5987 = vst [vmem:[#allocation14_spill] sm:$0xff] %v5394_v45 }
 0x10c   : > { %v3930_v58 = vpop.f32.mrf.mxu1  ;;  %v3978_v24 = vpop.f32.mrf.mxu0  ;;  %4217 = vmatmul.mubr.msk.bf16.vlgmr.msra.gmra.mxu1 %vm4510_vm5, %v4634_v16  ;;  %4265 = vmatmul.mubr.msk.bf16.vlgmr.msra.gmra.mxu0 %vm4798_vm1, %v4852_v30 }
 0x10d   : > { %v1002_v41 = vadd.f32 %v3930_v58, %v3882_v18  ;;  %4220 = vmatprep.mubr.msk.bf16.mxu1 %vm4510_vm5, %v4644_v23  ;;  %4268 = vmatprep.mubr.msk.bf16.mxu0 %vm4798_vm1, %v4866_v44 }
 0x10e   : > { %v993_v2 = vpop.f32.mrf.mxu1  ;;  %v1356_v45 = vpop.f32.mrf.mxu0 }
 0x10f   : > { %v5408_v40 = vadd.f32 %v3978_v24, %v1002_v41  ;;  %v994_v61 = vadd.f32 %v993_v2, %v784_v38 }
 0x110   : > { %v3931_v5 = vpop.f32.mrf.mxu1  ;;  %v3979_v16 = vpop.f32.mrf.mxu0 }
 0x111   : > { %v5410_v43 = vadd.f32 %v1356_v45, %v994_v61  ;;  %v1005_v19 = vadd.f32 %v3931_v5, %v3883_v49 }
 0x112   : > { %v996_v30 = vpop.f32.mrf.mxu1  ;;  %v1359_v18 = vpop.f32.mrf.mxu0 }
 0x113   : > { %v5412_v58 = vadd.f32 %v3979_v16, %v1005_v19  ;;  %v997_v31 = vadd.f32 %v996_v30, %v787_v11 }
 0x114   : > { %v3934_v23 = vpop.f32.mrf.mxu1  ;;  %v3982_v53 = vpop.f32.mrf.mxu0  ;;  %4221 = vmatmul.mubr.msk.bf16.gmra.mxu1 %vm4510_vm5, %v4697_v59  ;;  %4269 = vmatmul.mubr.msk.bf16.gmra.mxu0 %vm4798_vm1, %v4898_v9 }
 0x115   : > { %v5420_v44 = vadd.f32 %v1359_v18, %v997_v31  ;;  %v1018_v38 = vadd.f32 %v3934_v23, %v3886_v54  ;;  %4224 = vmatprep.mubr.msk.bf16.mxu1 %vm4510_vm5, %v4709_v3  ;;  %4272 = vmatprep.mubr.msk.bf16.mxu0 %vm4798_vm1, %v4911_v13 }
 0x116   : > { %v1009_v49 = vpop.f32.mrf.mxu1  ;;  %v1372_v11 = vpop.f32.mrf.mxu0 }
 0x117   : > { %v5428_v5 = vadd.f32 %v3982_v53, %v1018_v38  ;;  %v1010_v59 = vadd.f32 %v1009_v49, %v800_v35 }
 0x118   : > { %v3935_v24 = vpop.f32.mrf.mxu1  ;;  %v3983_v19 = vpop.f32.mrf.mxu0 }
 0x119   : > { %v5430_v45 = vadd.f32 %v1372_v11, %v1010_v59  ;;  %v1021_v31 = vadd.f32 %v3935_v24, %v3887_v26 }
 0x11a   : > { %v1012_v9 = vpop.f32.mrf.mxu1  ;;  %v1375_v54 = vpop.f32.mrf.mxu0 }
 0x11b   : > { %v5432_v61 = vadd.f32 %v3983_v19, %v1021_v31  ;;  %v1013_v3 = vadd.f32 %v1012_v9, %v5336_v1 }
 0x11c   : > { %v3938_v41 = vpop.f32.mrf.mxu1  ;;  %v3986_v2 = vpop.f32.mrf.mxu0  ;;  %4225 = vmatmul.mubr.msk.bf16.gmra.mxu1 %vm4510_vm5, %v4741_v21  ;;  %4273 = vmatmul.mubr.msk.bf16.gmra.mxu0 %vm4798_vm1, %v4940_v47 }
 0x11d   : > { %v5441_v13 = vadd.f32 %v1375_v54, %v1013_v3  ;;  %v1034_v35 = vadd.f32 %v3938_v41, %v5340_v29  ;;  %4228 = vmatprep.mubr.msk.bf16.mxu1 %vm4510_vm5, %v4520_v39  ;;  %4276 = vmatprep.mubr.msk.bf16.mxu0 %vm4798_vm1, %v4954_v52 }
 0x11e   : > { %v1025_v26 = vpop.f32.mrf.mxu1  ;;  %v1388_v1 = vpop.f32.mrf.mxu0 }
 0x11f   : > { %v5450_v53 = vadd.f32 %v3986_v2, %v1034_v35  ;;  %v1026_v21 = vadd.f32 %v1025_v26, %v5356_v33 }
 0x120   : > { %v3939_v16 = vpop.f32.mrf.mxu1  ;;  %v3987_v47 = vpop.f32.mrf.mxu0 }
 0x121   : > { %v5453_v30 = vadd.f32 %v1388_v1, %v1026_v21  ;;  %v1037_v29 = vadd.f32 %v3939_v16, %v5360_v14 }
 0x122   : > { %v1028_v18 = vpop.f32.mrf.mxu1  ;;  %v1391_v23 = vpop.f32.mrf.mxu0 }
 0x123   : > { %v5456_v38 = vadd.f32 %v3987_v47, %v1037_v29  ;;  %v1029_v39 = vadd.f32 %v1028_v18, %v5364_v12 }
 0x124   : > { %v3942_v49 = vpop.f32.mrf.mxu1  ;;  %v3990_v52 = vpop.f32.mrf.mxu0  ;;  %4229 = vmatmul.mubr.msk.bf16.gmra.mxu1 %vm4510_vm5, %v4577_v37  ;;  %4277 = vmatmul.mubr.msk.bf16.gmra.mxu0 %vm4798_vm1, %v4988_v7 }
 0x125   : > { %v5465_v33 = vadd.f32 %v1391_v23, %v1029_v39  ;;  %v1050_v14 = vadd.f32 %v3942_v49, %v5368_v27  ;;  %4232 = vmatprep.mubr.msk.bf16.mxu1 %vm4510_vm5, %v4594_v48  ;;  %4280 = vmatprep.mubr.msk.bf16.mxu0 %vm4798_vm1, %v4996_v42 }
 0x126   : > { %v1041_v12 = vpop.f32.mrf.mxu1  ;;  %v1404_v11 = vpop.f32.mrf.mxu0 }
 0x127   : > { %v5474_v59 = vadd.f32 %v3990_v52, %v1050_v14  ;;  %v1042_v37 = vadd.f32 %v1041_v12, %v5384_v51 }
 0x128   : > { %v3943_v24 = vpop.f32.mrf.mxu1  ;;  %v3991_v7 = vpop.f32.mrf.mxu0 }
 0x129   : > { %v5477_v19 = vadd.f32 %v1404_v11, %v1042_v37  ;;  %v1053_v27 = vadd.f32 %v3943_v24, %v5388_v63  ;;  %v5988_v11 = vld [vmem:[#allocation8_spill] sm:$0xff]  ;;  %v5989_v37 = vld [vmem:[#allocation3_spill] sm:$0xff]  ;;  %v5990_v24 = vld [vmem:[#allocation6_spill] sm:$0xff] }
 0x12a   : > { %v1044_v31 = vpop.f32.mrf.mxu1  ;;  %v1407_v9 = vpop.f32.mrf.mxu0 }
 0x12b   : > { %v5480_v54 = vadd.f32 %v3991_v7, %v1053_v27  ;;  %v1045_v48 = vadd.f32 %v1044_v31, %v5392_v36 }
 0x12c   : > { %v3946_v3 = vpop.f32.mrf.mxu1  ;;  %v3994_v42 = vpop.f32.mrf.mxu0  ;;  %4233 = vmatmul.mubr.msk.bf16.gmra.mxu1 %vm4510_vm5, %v4636_v17  ;;  %4281 = vmatmul.mubr.msk.bf16.gmra.mxu0 %vm4798_vm1, %v5976_v0 }
 0x12d   : > { %v5489_v51 = vadd.f32 %v1407_v9, %v1045_v48  ;;  %v1066_v63 = vadd.f32 %v3946_v3, %v5298_v8  ;;  %4236 = vmatprep.mubr.msk.bf16.mxu1 %vm4510_vm5, %v4656_v34  ;;  %4284 = vmatprep.mubr.msk.bf16.mxu0 %vm4798_vm1, %v5030_v15  ;;  %v5992_v3 = vld [vmem:[#allocation10_spill] sm:$0xff] }
 0x12e   : > { %v1057_v36 = vpop.f32.mrf.mxu1  ;;  %v1420_v41 = vpop.f32.mrf.mxu0 }
 0x12f   : > { %v5498_v2 = vadd.f32 %v3994_v42, %v1066_v63  ;;  %v1058_v17 = vadd.f32 %v1057_v36, %v5312_v25 }
 0x130   : > { %v3947_v35 = vpop.f32.mrf.mxu1  ;;  %v3995_v0 = vpop.f32.mrf.mxu0 }
 0x131   : > { %v5501_v26 = vadd.f32 %v1420_v41, %v1058_v17  ;;  %v1069_v8 = vadd.f32 %v3947_v35, %v5314_v50  ;;  %v5993_v41 = vld [vmem:[#allocation11_spill] sm:$0xff] }
 0x132   : > { %v1060_v1 = vpop.f32.mrf.mxu1  ;;  %v1423_v21 = vpop.f32.mrf.mxu0 }
 0x133   : > { %v5504_v16 = vadd.f32 %v3995_v0, %v1069_v8  ;;  %v1061_v34 = vadd.f32 %v1060_v1, %v5316_v20  ;;  %v5994_v0 = vld [vmem:[#allocation5_spill] sm:$0xff]  ;;  %v5996_v1 = vld [vmem:[#allocation7_spill] sm:$0xff] }
 0x134   : > { %v3950_v47 = vpop.f32.mrf.mxu1  ;;  %v3998_v15 = vpop.f32.mrf.mxu0  ;;  %4237 = vmatmul.mubr.msk.bf16.gmra.mxu1 %vm4510_vm5, %v4699_v60  ;;  %4285 = vmatmul.mubr.msk.bf16.gmra.mxu0 %vm4798_vm1, %v5052_v6 }
 0x135   : > { %v5513_v25 = vadd.f32 %v1423_v21, %v1061_v34  ;;  %v1082_v50 = vadd.f32 %v3950_v47, %v5318_v55  ;;  %4240 = vmatprep.mubr.msk.bf16.mxu1 %vm4510_vm5, %v4711_v4  ;;  %4288 = vmatprep.mubr.msk.bf16.mxu0 %vm4798_vm1, %v5060_v32  ;;  %v5997_v34 = vld [vmem:[#allocation12_spill] sm:$0xff] }
 0x136   : > { %v1073_v20 = vpop.f32.mrf.mxu1  ;;  %v1436_v29 = vpop.f32.mrf.mxu0 }
 0x137   : > { %v5522_v18 = vadd.f32 %v3998_v15, %v1082_v50  ;;  %v1074_v60 = vadd.f32 %v1073_v20, %v5332_v10 }
 0x138   : > { %v3951_v23 = vpop.f32.mrf.mxu1  ;;  %v3999_v6 = vpop.f32.mrf.mxu0 }
 0x139   : > { %v5525_v39 = vadd.f32 %v1436_v29, %v1074_v60  ;;  %v1085_v55 = vadd.f32 %v3951_v23, %v5334_v28  ;;  %v5998_v29 = vld [vmem:[#allocation4_spill] sm:$0xff] }
 0x13a   : > { %v1076_v49 = vpop.f32.mrf.mxu1  ;;  %v1439_v52 = vpop.f32.mrf.mxu0 }
 0x13b   : > { %v5528_v14 = vadd.f32 %v3999_v6, %v1085_v55  ;;  %v1077_v4 = vadd.f32 %v1076_v49, %v5338_v46  ;;  %v5999_v49 = vld [vmem:[#allocation13_spill] sm:$0xff] }
 0x13c   : > { %v3954_v12 = vpop.f32.mrf.mxu1  ;;  %v4002_v32 = vpop.f32.mrf.mxu0  ;;  %4241 = vmatmul.mubr.msk.bf16.gmra.mxu1 %vm4510_vm5, %v4743_v22  ;;  %4289 = vmatmul.mubr.msk.bf16.gmra.mxu0 %vm4798_vm1, %v5080_v62  ;;  %v5991_v22 = vld [vmem:[#allocation9_spill] sm:$0xff] }
 0x13d   : > { %v5537_v10 = vadd.f32 %v1439_v52, %v1077_v4  ;;  %v1098_v28 = vadd.f32 %v3954_v12, %v5988_v11  ;;  %4244 = vmatprep.mubr.msk.bf16.mxu1 %vm4510_vm5, %v5989_v37  ;;  %4292 = vmatprep.mubr.msk.bf16.mxu0 %vm4798_vm1, %v5990_v24  ;;  %v6000_v11 = vld [vmem:[#allocation14_spill] sm:$0xff] }
 0x13e   : > { %v1089_v46 = vpop.f32.mrf.mxu1  ;;  %v1452_v7 = vpop.f32.mrf.mxu0 }
 0x13f   : > { %v5546_v27 = vadd.f32 %v4002_v32, %v1098_v28  ;;  %v1090_v31 = vadd.f32 %v1089_v46, %v5991_v22 }
 0x140   : > { %v3955_v9 = vpop.f32.mrf.mxu1  ;;  %v4003_v62 = vpop.f32.mrf.mxu0 }
 0x141   : > { %v5549_v48 = vadd.f32 %v1452_v7, %v1090_v31  ;;  %v1101_v42 = vadd.f32 %v3955_v9, %v5992_v3 }
 0x142   : > { %v1092_v63 = vpop.f32.mrf.mxu1  ;;  %v1455_v36 = vpop.f32.mrf.mxu0 }
 0x143   : > { %v5552_v56 = vadd.f32 %v4003_v62, %v1101_v42  ;;  %v1093_v17 = vadd.f32 %v1092_v63, %v5993_v41 }
 0x144   : > { %v3958_v57 = vpop.f32.mrf.mxu1  ;;  %v4006_v35 = vpop.f32.mrf.mxu0  ;;  %4245 = vmatmul.mubr.msk.bf16.gmra.mxu1 %vm4497_vm4, %v5994_v0  ;;  %4293 = vmatmul.mubr.msk.bf16.gmra.mxu0 %vm4497_vm4, %v5996_v1 }
 0x145   : > { %v5561_v21 = vadd.f32 %v1455_v36, %v1093_v17  ;;  %v1114_v47 = vadd.f32 %v3958_v57, %v5997_v34 }
 0x146   : > { %v1105_v15 = vpop.f32.mrf.mxu1  ;;  %v1468_v50 = vpop.f32.mrf.mxu0 }
 0x147   : > { %v5564_v20 = vadd.f32 %v4006_v35, %v1114_v47  ;;  %v1106_v60 = vadd.f32 %v1105_v15, %v5998_v29 }
 0x148   : > { %v3959_v23 = vpop.f32.mrf.mxu1  ;;  %v4007_v6 = vpop.f32.mrf.mxu0 }
 0x149   : > { %v5567_v55 = vadd.f32 %v1468_v50, %v1106_v60  ;;  %v1117_v52 = vadd.f32 %v3959_v23, %v5999_v49 }
 0x14a   : > { %v1108_v4 = vpop.f32.mrf.mxu1  ;;  %v1471_v12 = vpop.f32.mrf.mxu0 }
 0x14b   : > { %v5570_v32 = vadd.f32 %v4007_v6, %v1117_v52  ;;  %v1109_v28 = vadd.f32 %v1108_v4, %v6000_v11 }
 0x14c   : > { %v4026_v37 = vpop.f32.mrf.mxu1  ;;  %v4074_v24 = vpop.f32.mrf.mxu0 }
 0x14d   : > { %v5573_v46 = vadd.f32 %v1471_v12, %v1109_v28  ;;  %v1744_v7 = vadd.f32 %v4026_v37, %v5408_v40 }
 0x14e   : > { %v1615_v22 = vpop.f32.mrf.mxu1  ;;  %v1873_v31 = vpop.f32.mrf.mxu0 }
 0x14f   : > { %v5576_v9 = vadd.f32 %v4074_v24, %v1744_v7  ;;  %v1742_v62 = vadd.f32 %v1615_v22, %v5410_v43 }
 0x150   : > { %v4027_v3 = vpop.f32.mrf.mxu1  ;;  %v4075_v42 = vpop.f32.mrf.mxu0 }
 0x151   : > { %v5579_v63 = vadd.f32 %v1873_v31, %v1742_v62  ;;  %v1745_v36 = vadd.f32 %v4027_v3, %v5412_v58 }
 0x152   : > { %v1618_v41 = vpop.f32.mrf.mxu1  ;;  %v1876_v17 = vpop.f32.mrf.mxu0 }
 0x153   : > { %v5582_v57 = vadd.f32 %v4075_v42, %v1745_v36  ;;  %v1743_v35 = vadd.f32 %v1618_v41, %v5420_v44 }
 0x154   : > { %v4030_v0 = vpop.f32.mrf.mxu1  ;;  %v4078_v40 = vpop.f32.mrf.mxu0 }
 0x155   : > { %v5585_v8 = vadd.f32 %v1876_v17, %v1743_v35  ;;  %v1748_v1 = vadd.f32 %v4030_v0, %v5428_v5 }
 0x156   : > { %v1631_v34 = vpop.f32.mrf.mxu1  ;;  %v1889_v43 = vpop.f32.mrf.mxu0 }
 0x157   : > { %v5588_v47 = vadd.f32 %v4078_v40, %v1748_v1  ;;  %v1746_v15 = vadd.f32 %v1631_v34, %v5430_v45 }
 0x158   : > { %v4031_v50 = vpop.f32.mrf.mxu1  ;;  %v4079_v58 = vpop.f32.mrf.mxu0 }
 0x159   : > { %v5591_v29 = vadd.f32 %v1889_v43, %v1746_v15  ;;  %v1749_v60 = vadd.f32 %v4031_v50, %v5432_v61 }
 0x15a   : > { %v1634_v23 = vpop.f32.mrf.mxu1  ;;  %v1892_v44 = vpop.f32.mrf.mxu0 }
 0x15b   : > { %v5594_v6 = vadd.f32 %v4079_v58, %v1749_v60  ;;  %v1747_v49 = vadd.f32 %v1634_v23, %v5441_v13 }
 0x15c   : > { %v4034_v52 = vpop.f32.mrf.mxu1  ;;  %v4082_v5 = vpop.f32.mrf.mxu0 }
 0x15d   : > { %v5597_v4 = vadd.f32 %v1892_v44, %v1747_v49  ;;  %v1752_v12 = vadd.f32 %v4034_v52, %v5450_v53 }
 0x15e   : > { %v1647_v11 = vpop.f32.mrf.mxu1  ;;  %v1905_v45 = vpop.f32.mrf.mxu0 }
 0x15f   : > { %v5600_v28 = vadd.f32 %v4082_v5, %v1752_v12  ;;  %v1750_v37 = vadd.f32 %v1647_v11, %v5453_v30 }
 0x160   : > { %v4035_v24 = vpop.f32.mrf.mxu1  ;;  %v4083_v61 = vpop.f32.mrf.mxu0 }
 0x161   : > { %v5603_v7 = vadd.f32 %v1905_v45, %v1750_v37  ;;  %v1753_v22 = vadd.f32 %v4035_v24, %v5456_v38 }
 0x162   : > { %v1650_v31 = vpop.f32.mrf.mxu1  ;;  %v1908_v13 = vpop.f32.mrf.mxu0 }
 0x163   : > { %v5606_v62 = vadd.f32 %v4083_v61, %v1753_v22  ;;  %v1751_v3 = vadd.f32 %v1650_v31, %v5465_v33 }
 0x164   : > { %v4038_v42 = vpop.f32.mrf.mxu1  ;;  %v4086_v53 = vpop.f32.mrf.mxu0 }
 0x165   : > { %v5609_v36 = vadd.f32 %v1908_v13, %v1751_v3  ;;  %v1756_v41 = vadd.f32 %v4038_v42, %v5474_v59 }
 0x166   : > { %v1663_v17 = vpop.f32.mrf.mxu1  ;;  %v1921_v30 = vpop.f32.mrf.mxu0 }
 0x167   : > { %v5612_v35 = vadd.f32 %v4086_v53, %v1756_v41  ;;  %v1754_v0 = vadd.f32 %v1663_v17, %v5477_v19 }
 0x168   : > { %v4039_v40 = vpop.f32.mrf.mxu1  ;;  %v4087_v38 = vpop.f32.mrf.mxu0 }
 0x169   : > { %v5615_v1 = vadd.f32 %v1921_v30, %v1754_v0  ;;  %v1757_v34 = vadd.f32 %v4039_v40, %v5480_v54 }
 0x16a   : > { %v1666_v43 = vpop.f32.mrf.mxu1  ;;  %v1924_v33 = vpop.f32.mrf.mxu0 }
 0x16b   : > { %v5618_v15 = vadd.f32 %v4087_v38, %v1757_v34  ;;  %v1755_v50 = vadd.f32 %v1666_v43, %v5489_v51 }
 0x16c   : > { %v4042_v58 = vpop.f32.mrf.mxu1  ;;  %v4090_v59 = vpop.f32.mrf.mxu0 }
 0x16d   : > { %v5621_v60 = vadd.f32 %v1924_v33, %v1755_v50  ;;  %v1760_v23 = vadd.f32 %v4042_v58, %v5498_v2 }
 0x16e   : > { %v1679_v44 = vpop.f32.mrf.mxu1  ;;  %v1937_v19 = vpop.f32.mrf.mxu0 }
 0x16f   : > { %v5624_v49 = vadd.f32 %v4090_v59, %v1760_v23  ;;  %v1758_v52 = vadd.f32 %v1679_v44, %v5501_v26 }
 0x170   : > { %v4043_v5 = vpop.f32.mrf.mxu1  ;;  %v4091_v54 = vpop.f32.mrf.mxu0 }
 0x171   : > { %v5627_v12 = vadd.f32 %v1937_v19, %v1758_v52  ;;  %v1761_v11 = vadd.f32 %v4043_v5, %v5504_v16 }
 0x172   : > { %v1682_v45 = vpop.f32.mrf.mxu1  ;;  %v1940_v51 = vpop.f32.mrf.mxu0 }
 0x173   : > { %v5630_v37 = vadd.f32 %v4091_v54, %v1761_v11  ;;  %v1759_v24 = vadd.f32 %v1682_v45, %v5513_v25 }
 0x174   : > { %v4046_v61 = vpop.f32.mrf.mxu1  ;;  %v4094_v2 = vpop.f32.mrf.mxu0 }
 0x175   : > { %6001 = vst [vmem:[#allocation8_spill] sm:$0xff] %v5630_v37  ;;  %v5633_v22 = vadd.f32 %v1940_v51, %v1759_v24  ;;  %v1764_v31 = vadd.f32 %v4046_v61, %v5522_v18 }
 0x176   : > { %v1695_v13 = vpop.f32.mrf.mxu1  ;;  %v1953_v26 = vpop.f32.mrf.mxu0 }
 0x177   : > { %6002 = vst [vmem:[#allocation3_spill] sm:$0xff] %v5633_v22  ;;  %v5636_v3 = vadd.f32 %v4094_v2, %v1764_v31  ;;  %v1762_v42 = vadd.f32 %v1695_v13, %v5525_v39 }
 0x178   : > { %v4047_v53 = vpop.f32.mrf.mxu1  ;;  %v4095_v16 = vpop.f32.mrf.mxu0 }
 0x179   : > { %6003 = vst [vmem:[#allocation6_spill] sm:$0xff] %v5636_v3  ;;  %v5639_v41 = vadd.f32 %v1953_v26, %v1762_v42  ;;  %v1765_v17 = vadd.f32 %v4047_v53, %v5528_v14 }
 0x17a   : > { %v1698_v30 = vpop.f32.mrf.mxu1  ;;  %v1956_v25 = vpop.f32.mrf.mxu0 }
 0x17b   : > { %6004 = vst [vmem:[#allocation9_spill] sm:$0xff] %v5639_v41  ;;  %v5642_v0 = vadd.f32 %v4095_v16, %v1765_v17  ;;  %v1763_v40 = vadd.f32 %v1698_v30, %v5537_v10 }
 0x17c   : > { %v4050_v38 = vpop.f32.mrf.mxu1  ;;  %v4098_v18 = vpop.f32.mrf.mxu0 }
 0x17d   : > { %6005 = vst [vmem:[#allocation10_spill] sm:$0xff] %v5642_v0  ;;  %v5645_v34 = vadd.f32 %v1956_v25, %v1763_v40  ;;  %v1768_v43 = vadd.f32 %v4050_v38, %v5546_v27 }
 0x17e   : > { %v1711_v33 = vpop.f32.mrf.mxu1  ;;  %v1969_v39 = vpop.f32.mrf.mxu0 }
 0x17f   : > { %6006 = vst [vmem:[#allocation11_spill] sm:$0xff] %v5645_v34  ;;  %v5648_v50 = vadd.f32 %v4098_v18, %v1768_v43  ;;  %v1766_v58 = vadd.f32 %v1711_v33, %v5549_v48 }
 0x180   : > { %v4051_v59 = vpop.f32.mrf.mxu1  ;;  %v4099_v14 = vpop.f32.mrf.mxu0 }
 0x181   : > { %6007 = vst [vmem:[#allocation5_spill] sm:$0xff] %v5648_v50  ;;  %v5651_v23 = vadd.f32 %v1969_v39, %v1766_v58  ;;  %v1769_v44 = vadd.f32 %v4051_v59, %v5552_v56 }
 0x182   : > { %v1714_v19 = vpop.f32.mrf.mxu1  ;;  %v1972_v10 = vpop.f32.mrf.mxu0 }
 0x183   : > { %6008 = vst [vmem:[#allocation2_spill] sm:$0xff] %v5651_v23  ;;  %v5654_v52 = vadd.f32 %v4099_v14, %v1769_v44  ;;  %v1767_v5 = vadd.f32 %v1714_v19, %v5561_v21 }
 0x184   : > { %v4054_v54 = vpop.f32.mrf.mxu1  ;;  %v4102_v27 = vpop.f32.mrf.mxu0 }
 0x185   : > { %6009 = vst [vmem:[#allocation7_spill] sm:$0xff] %v5654_v52  ;;  %v5657_v11 = vadd.f32 %v1972_v10, %v1767_v5  ;;  %v1772_v45 = vadd.f32 %v4054_v54, %v5564_v20 }
 0x186   : > { %v1727_v51 = vpop.f32.mrf.mxu1  ;;  %v1985_v48 = vpop.f32.mrf.mxu0 }
 0x187   : > { %6010 = vst [vmem:[#allocation12_spill] sm:$0xff] %v5657_v11  ;;  %v5660_v24 = vadd.f32 %v4102_v27, %v1772_v45  ;;  %v1770_v61 = vadd.f32 %v1727_v51, %v5567_v55 }
 0x188   : > { %v4055_v2 = vpop.f32.mrf.mxu1  ;;  %v4103_v56 = vpop.f32.mrf.mxu0 }
 0x189   : > { %6011 = vst [vmem:[#allocation4_spill] sm:$0xff] %v5660_v24  ;;  %v5663_v31 = vadd.f32 %v1985_v48, %v1770_v61  ;;  %v1773_v13 = vadd.f32 %v4055_v2, %v5570_v32 }
 0x18a   : > { %v1730_v26 = vpop.f32.mrf.mxu1  ;;  %v1988_v21 = vpop.f32.mrf.mxu0 }
 0x18b   : > { %6012 = vst [vmem:[#allocation13_spill] sm:$0xff] %v5663_v31  ;;  %v5666_v42 = vadd.f32 %v4103_v56, %v1773_v13  ;;  %v1771_v53 = vadd.f32 %v1730_v26, %v5573_v46 }
 0x18c   : > { %v4122_v16 = vpop.f32.mrf.mxu1  ;;  %v5669_v20 = vpop.f32.mrf.mxu0 }
 0x18d   : > { %6013 = vst [vmem:[#allocation14_spill] sm:$0xff] %v5666_v42  ;;  %v5671_v17 = vadd.f32 %v1988_v21, %v1771_v53 }
 0x18e   : > { %v2132_v30 = vpop.f32.mrf.mxu1  ;;  %v5673_v25 = vpop.f32.mrf.mxu0 }
 0x18f   : > { %6014 = vst [vmem:[#allocation15_spill] sm:$0xff] %v5671_v17 }
 0x190   : > { %v5675_v55 = vpop.f32.mrf.mxu1  ;;  %v5677_v40 = vpop.f32.mrf.mxu0 }
 0x192   : > { %v5679_v38 = vpop.f32.mrf.mxu1  ;;  %v5681_v32 = vpop.f32.mrf.mxu0 }
 0x194   : > { %v5683_v18 = vpop.f32.mrf.mxu1  ;;  %v5685_v43 = vpop.f32.mrf.mxu0 }
 0x196   : > { %v5687_v46 = vpop.f32.mrf.mxu1  ;;  %v5689_v33 = vpop.f32.mrf.mxu0 }
 0x198   : > { %v5691_v39 = vpop.f32.mrf.mxu1  ;;  %v5693_v58 = vpop.f32.mrf.mxu0 }
 0x19a   : > { %v5695_v59 = vpop.f32.mrf.mxu1  ;;  %v5697_v14 = vpop.f32.mrf.mxu0 }
 0x19c   : > { %v5699_v44 = vpop.f32.mrf.mxu1  ;;  %v5701_v19 = vpop.f32.mrf.mxu0 }
 0x19e   : > { %v5703_v10 = vpop.f32.mrf.mxu1  ;;  %v5705_v5 = vpop.f32.mrf.mxu0 }
 0x1a0   : > { %v5707_v54 = vpop.f32.mrf.mxu1  ;;  %v5709_v27 = vpop.f32.mrf.mxu0 }
 0x1a2   : > { %v5711_v45 = vpop.f32.mrf.mxu1  ;;  %v5713_v51 = vpop.f32.mrf.mxu0 }
 0x1a4   : > { %v5715_v48 = vpop.f32.mrf.mxu1  ;;  %v5717_v61 = vpop.f32.mrf.mxu0 }
 0x1a6   : > { %v5719_v2 = vpop.f32.mrf.mxu1  ;;  %v5721_v56 = vpop.f32.mrf.mxu0 }
 0x1a8   : > { %v5723_v13 = vpop.f32.mrf.mxu1  ;;  %v5725_v26 = vpop.f32.mrf.mxu0 }
 0x1aa   : > { %v5727_v21 = vpop.f32.mrf.mxu1  ;;  %v5729_v53 = vpop.f32.mrf.mxu0 }
 0x1ac   : > { %v5731_v17 = vpop.f32.mrf.mxu1  ;;  %v5733_v42 = vpop.f32.mrf.mxu0 }
 0x1ae   : > { %v5735_v31 = vpop.f32.mrf.mxu1  ;;  %v5737_v24 = vpop.f32.mrf.mxu0 }
 0x1af   : > { %6015 = vst [vmem:[#allocation16_spill] sm:$0xff] %v5737_v24 }
 0x1b0   : > { %v5739_v11 = vpop.f32.mrf.mxu1  ;;  %v5741_v52 = vpop.f32.mrf.mxu0 }
 0x1b1   : > { %6016 = vst [vmem:[#allocation17_spill] sm:$0xff] %v5739_v11  ;;  %6017 = vst [vmem:[#allocation18_spill] sm:$0xff] %v5741_v52 }
 0x1b2   : > { %v5743_v23 = vpop.f32.mrf.mxu1  ;;  %v5745_v50 = vpop.f32.mrf.mxu0 }
 0x1b3   : > { %6018 = vst [vmem:[#allocation19_spill] sm:$0xff] %v5743_v23  ;;  %6019 = vst [vmem:[#allocation20_spill] sm:$0xff] %v5745_v50 }
 0x1b4   : > { %v5747_v34 = vpop.f32.mrf.mxu1  ;;  %v5749_v0 = vpop.f32.mrf.mxu0 }
 0x1b5   : > { %6020 = vst [vmem:[#allocation21_spill] sm:$0xff] %v5747_v34  ;;  %6021 = vst [vmem:[#allocation22_spill] sm:$0xff] %v5749_v0 }
 0x1b6   : > { %v5751_v41 = vpop.f32.mrf.mxu1  ;;  %v5753_v3 = vpop.f32.mrf.mxu0 }
 0x1b7   : > { %6022 = vst [vmem:[#allocation23_spill] sm:$0xff] %v5751_v41  ;;  %6023 = vst [vmem:[#allocation24_spill] sm:$0xff] %v5753_v3 }
 0x1b8   : > { %v5755_v22 = vpop.f32.mrf.mxu1  ;;  %v5757_v37 = vpop.f32.mrf.mxu0 }
 0x1b9   : > { %6024 = vst [vmem:[#allocation25_spill] sm:$0xff] %v5755_v22  ;;  %6025 = vst [vmem:[#allocation26_spill] sm:$0xff] %v5757_v37 }
 0x1ba   : > { %v5759_v24 = vpop.f32.mrf.mxu1  ;;  %v5761_v11 = vpop.f32.mrf.mxu0 }
 0x1bb   : > { %6026 = vst [vmem:[#allocation27_spill] sm:$0xff] %v5759_v24  ;;  %6027 = vst [vmem:[#allocation28_spill] sm:$0xff] %v5761_v11 }
 0x1bc   : > { %v5763_v52 = vpop.f32.mrf.mxu1  ;;  %v5765_v23 = vpop.f32.mrf.mxu0 }
 0x1bd   : > { %6028 = vst [vmem:[#allocation29_spill] sm:$0xff] %v5763_v52  ;;  %6029 = vst [vmem:[#allocation30_spill] sm:$0xff] %v5765_v23 }
 0x1be   : > { %v5767_v50 = vpop.f32.mrf.mxu1  ;;  %v5769_v34 = vpop.f32.mrf.mxu0 }
 0x1bf   : > { %6030 = vst [vmem:[#allocation31_spill] sm:$0xff] %v5767_v50  ;;  %6031 = vst [vmem:[#allocation32_spill] sm:$0xff] %v5769_v34  ;;  %v2261_v50 = vadd.f32 %v4122_v16, %v5576_v9  ;;  %v2260_v9 = vadd.f32 %v5679_v38, %v5585_v8 }
 0x1c0   : > { %v5771_v0 = vpop.f32.mrf.mxu1  ;;  %v5773_v41 = vpop.f32.mrf.mxu0 }
 0x1c1   : > { %6032 = vst [vmem:[#allocation33_spill] sm:$0xff] %v5771_v0  ;;  %6033 = vst [vmem:[#allocation34_spill] sm:$0xff] %v5773_v41  ;;  %v2259_v41 = vadd.f32 %v2132_v30, %v5579_v63 }
 0x1c2   : > { %v5775_v3 = vpop.f32.mrf.mxu1  ;;  %v5777_v22 = vpop.f32.mrf.mxu0 }
 0x1c3   : > { %6034 = vst [vmem:[#allocation35_spill] sm:$0xff] %v5775_v3  ;;  %6035 = vst [vmem:[#allocation36_spill] sm:$0xff] %v5777_v22 }
 0x1c4   : > { %v5779_v37 = vpop.f32.mrf.mxu1  ;;  %v5781_v24 = vpop.f32.mrf.mxu0 }
 0x1c5   : > { %6036 = vst [vmem:[#allocation37_spill] sm:$0xff] %v5779_v37  ;;  %6037 = vst [vmem:[#allocation38_spill] sm:$0xff] %v5781_v24  ;;  %v2520_v37 = vadd.f32 %v5669_v20, %v2261_v50  ;;  %v2262_v24 = vadd.f32 %v5675_v55, %v5582_v57  ;;  %v2265_v20 = vadd.f32 %v5683_v18, %v5588_v47 }
 0x1c6   : > { %v5783_v11 = vpop.f32.mrf.mxu1  ;;  %v5785_v23 = vpop.f32.mrf.mxu0 }
 0x1c7   : > { %6038 = vst [vmem:[#allocation39_spill] sm:$0xff] %v5783_v11  ;;  %6039 = vst [vmem:[#allocation40_spill] sm:$0xff] %v5785_v23  ;;  %v2518_v23 = vadd.f32 %v5673_v25, %v2259_v41  ;;  %v2521_v57 = vadd.f32 %v5677_v40, %v2262_v24  ;;  %v2524_v24 = vadd.f32 %v5685_v43, %v2265_v20 }
 0x1c8   : > { %v5788_v34 = vpop.f32.mrf.mxu1  ;;  %v5790_v0 = vpop.f32.mrf.mxu0  ;;  %v2264_v40 = vadd.f32 %v5695_v59, %v5597_v4  ;;  %v2269_v43 = vadd.f32 %v5699_v44, %v5600_v28 }
 0x1c9   : > { %6040 = vst [vmem:[#allocation41_spill] sm:$0xff] %v5790_v0 }
 0x1ca   : > { %v5793_v3 = vpop.f32.mrf.mxu1  ;;  %v5795_v22 = vpop.f32.mrf.mxu0  ;;  %v2523_v59 = vadd.f32 %v5697_v14, %v2264_v40  ;;  %v2528_v44 = vadd.f32 %v5701_v19, %v2269_v43 }
 0x1cb   : > { %6041 = vst [vmem:[#allocation42_spill] sm:$0xff] %v5795_v22 }
 0x1cc   : > { %v4218_v11 = vpop.f32.mrf.mxu1  ;;  %v4266_v52 = vpop.f32.mrf.mxu0 }
 0x1cd   : > { %v2780_v16 = vadd.f32 %v4218_v11, %v2520_v37  ;;  %v2519_v37 = vadd.f32 %v5681_v32, %v2260_v9  ;;  %v2263_v11 = vadd.f32 %v5687_v46, %v5591_v29 }
 0x1ce   : > { %v2651_v63 = vpop.f32.mrf.mxu1  ;;  %v2910_v50 = vpop.f32.mrf.mxu0 }
 0x1cf   : > { %v3039_v41 = vadd.f32 %v4266_v52, %v2780_v16  ;;  %v2778_v30 = vadd.f32 %v2651_v63, %v2518_v23  ;;  %v2266_v23 = vadd.f32 %v5691_v39, %v5594_v6  ;;  %v2522_v29 = vadd.f32 %v5689_v33, %v2263_v11 }
 0x1d0   : > { %v4219_v25 = vpop.f32.mrf.mxu1  ;;  %v4267_v8 = vpop.f32.mrf.mxu0 }
 0x1d1   : > { %3071 = vst [vmem:[%s5808_s17 + $0x10] sm:$0xff] %v3039_v41  ;;  %v3037_v55 = vadd.f32 %v2910_v50, %v2778_v30  ;;  %v2781_v38 = vadd.f32 %v4219_v25, %v2521_v57  ;;  %v2525_v4 = vadd.f32 %v5693_v58, %v2266_v23  ;;  %v3140_v20 = vmul.f32 %v3039_v41, %v3039_v41 }
 0x1d2   : > { %v2654_v22 = vpop.f32.mrf.mxu1  ;;  %v2913_v0 = vpop.f32.mrf.mxu0 }
 0x1d3   : > { %3069 = vst [vmem:[%s5808_s17] sm:$0xff] %v3037_v55  ;;  %v3040_v47 = vadd.f32 %v4267_v8, %v2781_v38  ;;  %v2779_v52 = vadd.f32 %v2654_v22, %v2519_v37  ;;  %v3138_v16 = vmul.f32 %v3037_v55, %v3037_v55  ;;  %v2267_v8 = vadd.f32 %v5703_v10, %v5603_v7 }
 0x1d4   : > { %v4222_v32 = vpop.f32.mrf.mxu1  ;;  %v4270_v18 = vpop.f32.mrf.mxu0  ;;  %v2270_v37 = vadd.f32 %v5707_v54, %v5606_v62 }
 0x1d5   : > { %3072 = vst [vmem:[%s5808_s17 + $0x18] sm:$0xff] %v3040_v47  ;;  %v3038_v46 = vadd.f32 %v2913_v0, %v2779_v52  ;;  %v2784_v9 = vadd.f32 %v4222_v32, %v2524_v24  ;;  %v3141_v14 = vmul.f32 %v3040_v47, %v3040_v47  ;;  %v2268_v52 = vadd.f32 %v5711_v45, %v5609_v36 }
 0x1d6   : > { %v2667_v63 = vpop.f32.mrf.mxu1  ;;  %v2926_v22 = vpop.f32.mrf.mxu0 }
 0x1d7   : > { %3070 = vst [vmem:[%s5808_s17 + $0x8] sm:$0xff] %v3038_v46  ;;  %v3101_v50 = vadd.f32 %v3038_v46, %v3037_v55  ;;  %v3139_v6 = vmul.f32 %v3038_v46, %v3038_v46  ;;  %v3043_v39 = vadd.f32 %v4270_v18, %v2784_v9  ;;  %v2782_v57 = vadd.f32 %v2667_v63, %v2522_v29 }
 0x1d8   : > { %v4223_v33 = vpop.f32.mrf.mxu1  ;;  %v4271_v0 = vpop.f32.mrf.mxu0  ;;  %v2526_v18 = vadd.f32 %v5705_v5, %v2267_v8  ;;  %v2529_v29 = vadd.f32 %v5709_v27, %v2270_v37  ;;  %v2273_v63 = vadd.f32 %v5715_v48, %v5612_v35 }
 0x1d9   : > { %v3102_v30 = vadd.f32 %v3101_v50, %v3039_v41  ;;  %v3170_v25 = vadd.f32 %v3139_v6, %v3138_v16  ;;  %3075 = vst [vmem:[%s5808_s17 + $0x30] sm:$0xff] %v3043_v39  ;;  %v3041_v28 = vadd.f32 %v2926_v22, %v2782_v57  ;;  %v2785_v11 = vadd.f32 %v4223_v33, %v2525_v4 }
 0x1da   : > { %v2670_v58 = vpop.f32.mrf.mxu1  ;;  %v2929_v55 = vpop.f32.mrf.mxu0  ;;  %v2527_v16 = vadd.f32 %v5713_v51, %v2268_v52  ;;  %v2271_v22 = vadd.f32 %v5719_v2, %v5615_v1  ;;  %v3144_v6 = vmul.f32 %v3043_v39, %v3043_v39  ;;  %v2274_v33 = vadd.f32 %v5723_v13, %v5618_v15 }
 0x1db   : > { %v3171_v38 = vadd.f32 %v3170_v25, %v3140_v20  ;;  %3073 = vst [vmem:[%s5808_s17 + $0x20] sm:$0xff] %v3041_v28  ;;  %v3103_v24 = vadd.f32 %v3102_v30, %v3040_v47  ;;  %v2783_v41 = vadd.f32 %v2670_v58, %v2523_v59  ;;  %v3142_v19 = vmul.f32 %v3041_v28, %v3041_v28 }
 0x1dc   : > { %v3044_v23 = vadd.f32 %v4271_v0, %v2785_v11  ;;  %v4226_v40 = vpop.f32.mrf.mxu1  ;;  %v4274_v7 = vpop.f32.mrf.mxu0  ;;  %v2532_v25 = vadd.f32 %v5717_v61, %v2273_v63  ;;  %v2533_v11 = vadd.f32 %v5725_v26, %v2274_v33  ;;  %v2272_v58 = vadd.f32 %v5727_v21, %v5621_v60 }
 0x1dd   : > { %v3104_v10 = vadd.f32 %v3103_v24, %v3041_v28  ;;  %v3172_v32 = vadd.f32 %v3171_v38, %v3141_v14  ;;  %v3042_v62 = vadd.f32 %v2929_v55, %v2783_v41  ;;  %v2788_v54 = vadd.f32 %v4226_v40, %v2528_v44 }
 0x1de   : > { %3076 = vst [vmem:[%s5808_s17 + $0x38] sm:$0xff] %v3044_v23  ;;  %v2683_v46 = vpop.f32.mrf.mxu1  ;;  %v2942_v47 = vpop.f32.mrf.mxu0  ;;  %v3145_v0 = vmul.f32 %v3044_v23, %v3044_v23  ;;  %v2530_v28 = vadd.f32 %v5721_v56, %v2271_v22  ;;  %v2277_v55 = vadd.f32 %v5731_v17, %v5624_v49 }
 0x1df   : > { %v3173_v9 = vadd.f32 %v3172_v32, %v3142_v19  ;;  %3074 = vst [vmem:[%s5808_s17 + $0x28] sm:$0xff] %v3042_v62  ;;  %v3105_v43 = vadd.f32 %v3104_v10, %v3042_v62  ;;  %v3143_v36 = vmul.f32 %v3042_v62, %v3042_v62  ;;  %v3047_v45 = vadd.f32 %v4274_v7, %v2788_v54  ;;  %v6042_v62 = vld [vmem:[#allocation8_spill] sm:$0xff]  ;;  %v6043_v54 = vld [vmem:[#allocation17_spill] sm:$0xff] }
 0x1e0   : > { %v2786_v5 = vadd.f32 %v2683_v46, %v2526_v18  ;;  %v4227_v50 = vpop.f32.mrf.mxu1  ;;  %v4275_v27 = vpop.f32.mrf.mxu0  ;;  %v2275_v19 = vadd.f32 %v5735_v31, %v5627_v12  ;;  %v2531_v10 = vadd.f32 %v5729_v53, %v2272_v58  ;;  %v2536_v32 = vadd.f32 %v5733_v42, %v2277_v55  ;;  %v6053_v55 = vld [vmem:[#allocation10_spill] sm:$0xff] }
 0x1e1   : > { %v3106_v57 = vadd.f32 %v3105_v43, %v3043_v39  ;;  %v3174_v4 = vadd.f32 %v3173_v9, %v3143_v36  ;;  %3079 = vst [vmem:[%s5808_s17 + $0x50] sm:$0xff] %v3047_v45  ;;  %v2789_v59 = vadd.f32 %v4227_v50, %v2529_v29  ;;  %v2278_v18 = vadd.f32 %v6043_v54, %v6042_v62  ;;  %v6044_v43 = vld [vmem:[#allocation16_spill] sm:$0xff]  ;;  %v6057_v54 = vld [vmem:[#allocation11_spill] sm:$0xff] }
 0x1e2   : > { %v3045_v51 = vadd.f32 %v2942_v47, %v2786_v5  ;;  %v2686_v20 = vpop.f32.mrf.mxu1  ;;  %v2945_v35 = vpop.f32.mrf.mxu0  ;;  %v2534_v36 = vadd.f32 %v6044_v43, %v2275_v19  ;;  %v6055_v19 = vld [vmem:[#allocation22_spill] sm:$0xff] }
 0x1e3   : > { %v3175_v48 = vadd.f32 %v3174_v4, %v3144_v6  ;;  %v3107_v30 = vadd.f32 %v3106_v57, %v3044_v23  ;;  %v3048_v1 = vadd.f32 %v4275_v27, %v2789_v59  ;;  %v2787_v2 = vadd.f32 %v2686_v20, %v2527_v16  ;;  %v6046_v16 = vld [vmem:[#allocation19_spill] sm:$0xff]  ;;  %v6047_v57 = vld [vmem:[#allocation18_spill] sm:$0xff]  ;;  %v6049_v20 = vld [vmem:[#allocation21_spill] sm:$0xff] }
 0x1e4   : > { %3077 = vst [vmem:[%s5808_s17 + $0x40] sm:$0xff] %v3045_v51  ;;  %v4230_v39 = vpop.f32.mrf.mxu1  ;;  %v4278_v44 = vpop.f32.mrf.mxu0  ;;  %v3146_v37 = vmul.f32 %v3045_v51, %v3045_v51  ;;  %v3148_v23 = vmul.f32 %v3047_v45, %v3047_v45  ;;  %v2537_v4 = vadd.f32 %v6047_v57, %v2278_v18  ;;  %v6058_v18 = vld [vmem:[#allocation27_spill] sm:$0xff] }
 0x1e5   : > { %v3108_v8 = vadd.f32 %v3107_v30, %v3045_v51  ;;  %v3176_v15 = vadd.f32 %v3175_v48, %v3145_v0  ;;  %3080 = vst [vmem:[%s5808_s17 + $0x58] sm:$0xff] %v3048_v1  ;;  %v3046_v13 = vadd.f32 %v2945_v35, %v2787_v2  ;;  %v2792_v61 = vadd.f32 %v4230_v39, %v2532_v25  ;;  %v6048_v51 = vld [vmem:[#allocation6_spill] sm:$0xff] }
 0x1e6   : > { %v2699_v14 = vpop.f32.mrf.mxu1  ;;  %v2958_v56 = vpop.f32.mrf.mxu0  ;;  %v3149_v31 = vmul.f32 %v3048_v1, %v3048_v1  ;;  %v2281_v35 = vadd.f32 %v6049_v20, %v6048_v51 }
 0x1e7   : > { %v3177_v38 = vadd.f32 %v3176_v15, %v3146_v37  ;;  %3078 = vst [vmem:[%s5808_s17 + $0x48] sm:$0xff] %v3046_v13  ;;  %v3109_v24 = vadd.f32 %v3108_v8, %v3046_v13  ;;  %v3147_v41 = vmul.f32 %v3046_v13, %v3046_v13  ;;  %v2790_v52 = vadd.f32 %v2699_v14, %v2530_v28  ;;  %v6051_v37 = vld [vmem:[#allocation9_spill] sm:$0xff]  ;;  %v6052_v15 = vld [vmem:[#allocation23_spill] sm:$0xff] }
 0x1e8   : > { %v3051_v26 = vadd.f32 %v4278_v44, %v2792_v61  ;;  %v4231_v40 = vpop.f32.mrf.mxu1  ;;  %v4279_v60 = vpop.f32.mrf.mxu0  ;;  %v6050_v44 = vld [vmem:[#allocation20_spill] sm:$0xff]  ;;  %v2279_v13 = vadd.f32 %v6052_v15, %v6051_v37  ;;  %v6054_v61 = vld [vmem:[#allocation25_spill] sm:$0xff]  ;;  %v6067_v37 = vld [vmem:[#allocation30_spill] sm:$0xff] }
 0x1e9   : > { %v3110_v21 = vadd.f32 %v3109_v24, %v3047_v45  ;;  %v3178_v7 = vadd.f32 %v3177_v38, %v3147_v41  ;;  %v3049_v49 = vadd.f32 %v2958_v56, %v2790_v52  ;;  %v2793_v17 = vadd.f32 %v4231_v40, %v2533_v11  ;;  %v6045_v45 = vld [vmem:[#allocation3_spill] sm:$0xff] }
 0x1ea   : > { %3083 = vst [vmem:[%s5808_s17 + $0x70] sm:$0xff] %v3051_v26  ;;  %v2702_v29 = vpop.f32.mrf.mxu1  ;;  %v2961_v12 = vpop.f32.mrf.mxu0  ;;  %v2276_v63 = vadd.f32 %v6046_v16, %v6045_v45  ;;  %v2282_v14 = vadd.f32 %v6054_v61, %v6053_v55  ;;  %v3152_v56 = vmul.f32 %v3051_v26, %v3051_v26 }
 0x1eb   : > { %v3179_v46 = vadd.f32 %v3178_v7, %v3148_v23  ;;  %3081 = vst [vmem:[%s5808_s17 + $0x60] sm:$0xff] %v3049_v49  ;;  %v3111_v47 = vadd.f32 %v3110_v21, %v3048_v1  ;;  %v3052_v9 = vadd.f32 %v4279_v60, %v2793_v17  ;;  %v2791_v53 = vadd.f32 %v2702_v29, %v2531_v10 }
 0x1ec   : > { %v4234_v42 = vpop.f32.mrf.mxu1  ;;  %v4282_v22 = vpop.f32.mrf.mxu0  ;;  %v3150_v50 = vmul.f32 %v3049_v49, %v3049_v49  ;;  %v2535_v8 = vadd.f32 %v6050_v44, %v2276_v63  ;;  %v2540_v23 = vadd.f32 %v6055_v19, %v2281_v35  ;;  %v2280_v29 = vadd.f32 %v6058_v18, %v6057_v54  ;;  %v6060_v63 = vld [vmem:[#allocation5_spill] sm:$0xff] }
 0x1ed   : > { %v3112_v5 = vadd.f32 %v3111_v47, %v3049_v49  ;;  %v3180_v27 = vadd.f32 %v3179_v46, %v3149_v31  ;;  %3084 = vst [vmem:[%s5808_s17 + $0x78] sm:$0xff] %v3052_v9  ;;  %v2796_v6 = vadd.f32 %v4234_v42, %v2536_v32  ;;  %v3050_v59 = vadd.f32 %v2961_v12, %v2791_v53  ;;  %v6056_v32 = vld [vmem:[#allocation24_spill] sm:$0xff]  ;;  %v6059_v31 = vld [vmem:[#allocation26_spill] sm:$0xff] }
 0x1ee   : > { %v2715_v33 = vpop.f32.mrf.mxu1  ;;  %v2974_v0 = vpop.f32.mrf.mxu0  ;;  %v3153_v21 = vmul.f32 %v3052_v9, %v3052_v9  ;;  %v2538_v62 = vadd.f32 %v6056_v32, %v2279_v13  ;;  %v2541_v46 = vadd.f32 %v6059_v31, %v2282_v14 }
 0x1ef   : > { %v3181_v48 = vadd.f32 %v3180_v27, %v3150_v50  ;;  %v3055_v30 = vadd.f32 %v4282_v22, %v2796_v6  ;;  %v2794_v1 = vadd.f32 %v2715_v33, %v2534_v36  ;;  %3082 = vst [vmem:[%s5808_s17 + $0x68] sm:$0xff] %v3050_v59  ;;  %v3113_v2 = vadd.f32 %v3112_v5, %v3050_v59  ;;  %v6063_v33 = vld [vmem:[#allocation2_spill] sm:$0xff] }
 0x1f0   : > { %v3151_v25 = vmul.f32 %v3050_v59, %v3050_v59  ;;  %v4235_v28 = vpop.f32.mrf.mxu1  ;;  %v4283_v39 = vpop.f32.mrf.mxu0 }
 0x1f1   : > { %3087 = vst [vmem:[%s5808_s17 + $0x90] sm:$0xff] %v3055_v30  ;;  %v3053_v11 = vadd.f32 %v2974_v0, %v2794_v1  ;;  %v2797_v58 = vadd.f32 %v4235_v28, %v2537_v4  ;;  %v3114_v38 = vadd.f32 %v3113_v2, %v3051_v26  ;;  %v6062_v4 = vld [vmem:[#allocation28_spill] sm:$0xff]  ;;  %v6064_v0 = vld [vmem:[#allocation31_spill] sm:$0xff]  ;;  %v6066_v1 = vld [vmem:[#allocation33_spill] sm:$0xff] }
 0x1f2   : > { %v3182_v24 = vadd.f32 %v3181_v48, %v3151_v25  ;;  %v2718_v41 = vpop.f32.mrf.mxu1  ;;  %v2977_v52 = vpop.f32.mrf.mxu0  ;;  %v2539_v59 = vadd.f32 %v6062_v4, %v2280_v29  ;;  %v2283_v51 = vadd.f32 %v6064_v0, %v6063_v33  ;;  %v6065_v48 = vld [vmem:[#allocation7_spill] sm:$0xff]  ;;  %v3156_v25 = vmul.f32 %v3055_v30, %v3055_v30 }
 0x1f3   : > { %3085 = vst [vmem:[%s5808_s17 + $0x80] sm:$0xff] %v3053_v11  ;;  %v3056_v40 = vadd.f32 %v4283_v39, %v2797_v58  ;;  %v2795_v60 = vadd.f32 %v2718_v41, %v2535_v8  ;;  %v3115_v49 = vadd.f32 %v3114_v38, %v3052_v9  ;;  %v3154_v43 = vmul.f32 %v3053_v11, %v3053_v11  ;;  %v6061_v9 = vld [vmem:[#allocation29_spill] sm:$0xff]  ;;  %v6068_v38 = vld [vmem:[#allocation32_spill] sm:$0xff] }
 0x1f4   : > { %v3183_v7 = vadd.f32 %v3182_v24, %v3152_v56  ;;  %v4238_v17 = vpop.f32.mrf.mxu1  ;;  %v4286_v10 = vpop.f32.mrf.mxu0  ;;  %v2285_v53 = vadd.f32 %v6061_v9, %v6060_v63  ;;  %v2286_v2 = vadd.f32 %v6066_v1, %v6065_v48  ;;  %v2542_v24 = vadd.f32 %v6068_v38, %v2283_v51  ;;  %v6069_v41 = vld [vmem:[#allocation12_spill] sm:$0xff] }
 0x1f5   : > { %3088 = vst [vmem:[%s5808_s17 + $0x98] sm:$0xff] %v3056_v40  ;;  %v3054_v26 = vadd.f32 %v2977_v52, %v2795_v60  ;;  %v2800_v12 = vadd.f32 %v4238_v17, %v2540_v23  ;;  %v3116_v47 = vadd.f32 %v3115_v49, %v3053_v11  ;;  %v3157_v58 = vmul.f32 %v3056_v40, %v3056_v40  ;;  %v6070_v52 = vld [vmem:[#allocation35_spill] sm:$0xff]  ;;  %v6071_v60 = vld [vmem:[#allocation34_spill] sm:$0xff] }
 0x1f6   : > { %v3184_v36 = vadd.f32 %v3183_v7, %v3153_v21  ;;  %v2731_v45 = vpop.f32.mrf.mxu1  ;;  %v2990_v16 = vpop.f32.mrf.mxu0  ;;  %v2544_v15 = vadd.f32 %v6067_v37, %v2285_v53  ;;  %v2284_v19 = vadd.f32 %v6070_v52, %v6069_v41  ;;  %v2545_v21 = vadd.f32 %v6071_v60, %v2286_v2  ;;  %v6082_v52 = vld [vmem:[#allocation42_spill] sm:$0xff] }
 0x1f7   : > { %3086 = vst [vmem:[%s5808_s17 + $0x88] sm:$0xff] %v3054_v26  ;;  %v3155_v42 = vmul.f32 %v3054_v26, %v3054_v26  ;;  %v3059_v22 = vadd.f32 %v4286_v10, %v2800_v12  ;;  %v2798_v5 = vadd.f32 %v2731_v45, %v2538_v62  ;;  %v3117_v27 = vadd.f32 %v3116_v47, %v3054_v26  ;;  %v6072_v62 = vld [vmem:[#allocation4_spill] sm:$0xff]  ;;  %v6075_v45 = vld [vmem:[#allocation13_spill] sm:$0xff] }
 0x1f8   : > { %v3185_v50 = vadd.f32 %v3184_v36, %v3154_v43  ;;  %v4239_v6 = vpop.f32.mrf.mxu1  ;;  %v4287_v57 = vpop.f32.mrf.mxu0  ;;  %v6074_v43 = vld [vmem:[#allocation36_spill] sm:$0xff] }
 0x1f9   : > { %3091 = vst [vmem:[%s5808_s17 + $0xb0] sm:$0xff] %v3059_v22  ;;  %v3057_v20 = vadd.f32 %v2990_v16, %v2798_v5  ;;  %v2801_v35 = vadd.f32 %v4239_v6, %v2541_v46  ;;  %v3118_v28 = vadd.f32 %v3117_v27, %v3055_v30  ;;  %v2543_v36 = vadd.f32 %v6074_v43, %v2284_v19  ;;  %v6076_v16 = vld [vmem:[#allocation39_spill] sm:$0xff] }
 0x1fa   : > { %v3186_v39 = vadd.f32 %v3185_v50, %v3155_v42  ;;  %v2734_v44 = vpop.f32.mrf.mxu1  ;;  %v2993_v8 = vpop.f32.mrf.mxu0  ;;  %v2287_v63 = vadd.f32 %v6076_v16, %v6075_v45  ;;  %v3160_v42 = vmul.f32 %v3059_v22, %v3059_v22 }
 0x1fb   : > { %3089 = vst [vmem:[%s5808_s17 + $0xa0] sm:$0xff] %v3057_v20  ;;  %v3060_v13 = vadd.f32 %v4287_v57, %v2801_v35  ;;  %v2799_v11 = vadd.f32 %v2734_v44, %v2539_v59  ;;  %v3119_v61 = vadd.f32 %v3118_v28, %v3056_v40  ;;  %v3158_v49 = vmul.f32 %v3057_v20, %v3057_v20  ;;  %v6073_v40 = vld [vmem:[#allocation37_spill] sm:$0xff]  ;;  %v6077_v57 = vld [vmem:[#allocation38_spill] sm:$0xff]  ;;  %v6080_v28 = vld [vmem:[#allocation15_spill] sm:$0xff] }
 0x1fc   : > { %v3187_v55 = vadd.f32 %v3186_v39, %v3156_v25  ;;  %v4242_v14 = vpop.f32.mrf.mxu1  ;;  %v4290_v56 = vpop.f32.mrf.mxu0  ;;  %v2289_v54 = vadd.f32 %v6073_v40, %v6072_v62  ;;  %v6078_v59 = vld [vmem:[#allocation14_spill] sm:$0xff]  ;;  %v6079_v25 = vld [vmem:[#allocation40_spill] sm:$0xff]  ;;  %v2288_v39 = vadd.f32 %v5793_v3, %v6080_v28 }
 0x1fd   : > { %3092 = vst [vmem:[%s5808_s17 + $0xb8] sm:$0xff] %v3060_v13  ;;  %v3058_v30 = vadd.f32 %v2993_v8, %v2799_v11  ;;  %v2804_v23 = vadd.f32 %v4242_v14, %v2544_v15  ;;  %v3120_v7 = vadd.f32 %v3119_v61, %v3057_v20  ;;  %v2290_v33 = vadd.f32 %v5788_v34, %v6078_v59 }
 0x1fe   : > { %v3188_v17 = vadd.f32 %v3187_v55, %v3157_v58  ;;  %v2747_v10 = vpop.f32.mrf.mxu1  ;;  %v3006_v32 = vpop.f32.mrf.mxu0  ;;  %v2548_v4 = vadd.f32 %v6077_v57, %v2289_v54  ;;  %v3161_v20 = vmul.f32 %v3060_v13, %v3060_v13  ;;  %v6081_v55 = vld [vmem:[#allocation41_spill] sm:$0xff]  ;;  %v2547_v19 = vadd.f32 %v6082_v52, %v2288_v39 }
 0x1ff   : > { %3090 = vst [vmem:[%s5808_s17 + $0xa8] sm:$0xff] %v3058_v30  ;;  %v3159_v18 = vmul.f32 %v3058_v30, %v3058_v30  ;;  %v3063_v29 = vadd.f32 %v4290_v56, %v2804_v23  ;;  %v2802_v26 = vadd.f32 %v2747_v10, %v2542_v24  ;;  %v3121_v31 = vadd.f32 %v3120_v7, %v3058_v30 }
 0x200   : > { %v3189_v12 = vadd.f32 %v3188_v17, %v3158_v49  ;;  %v4243_v46 = vpop.f32.mrf.mxu1  ;;  %v4291_v47 = vpop.f32.mrf.mxu0  ;;  %v2549_v61 = vadd.f32 %v6081_v55, %v2290_v33 }
 0x201   : > { %3095 = vst [vmem:[%s5808_s17 + $0xd0] sm:$0xff] %v3063_v29  ;;  %v3061_v9 = vadd.f32 %v3006_v32, %v2802_v26  ;;  %v2805_v53 = vadd.f32 %v4243_v46, %v2545_v21  ;;  %v3122_v5 = vadd.f32 %v3121_v31, %v3059_v22  ;;  %v2546_v22 = vadd.f32 %v6079_v25, %v2287_v63 }
 0x202   : > { %v3190_v50 = vadd.f32 %v3189_v12, %v3159_v18  ;;  %v2750_v27 = vpop.f32.mrf.mxu1  ;;  %v3009_v6 = vpop.f32.mrf.mxu0  ;;  %v3164_v60 = vmul.f32 %v3063_v29, %v3063_v29 }
 0x203   : > { %3093 = vst [vmem:[%s5808_s17 + $0xc0] sm:$0xff] %v3061_v9  ;;  %v3064_v0 = vadd.f32 %v4291_v47, %v2805_v53  ;;  %v2803_v51 = vadd.f32 %v2750_v27, %v2543_v36  ;;  %v3123_v48 = vadd.f32 %v3122_v5, %v3060_v13  ;;  %v3162_v34 = vmul.f32 %v3061_v9, %v3061_v9 }
 0x204   : > { %v3191_v35 = vadd.f32 %v3190_v50, %v3160_v42  ;;  %v4246_v1 = vpop.f32.mrf.mxu1  ;;  %v4294_v2 = vpop.f32.mrf.mxu0 }
 0x205   : > { %3096 = vst [vmem:[%s5808_s17 + $0xd8] sm:$0xff] %v3064_v0  ;;  %v3062_v44 = vadd.f32 %v3009_v6, %v2803_v51  ;;  %v2808_v8 = vadd.f32 %v4246_v1, %v2548_v4  ;;  %v3124_v37 = vadd.f32 %v3123_v48, %v3061_v9  ;;  %v3165_v32 = vmul.f32 %v3064_v0, %v3064_v0 }
 0x206   : > { %v3192_v15 = vadd.f32 %v3191_v35, %v3161_v20  ;;  %v2763_v11 = vpop.f32.mrf.mxu1  ;;  %v3022_v58 = vpop.f32.mrf.mxu0 }
 0x207   : > { %3094 = vst [vmem:[%s5808_s17 + $0xc8] sm:$0xff] %v3062_v44  ;;  %v3163_v13 = vmul.f32 %v3062_v44, %v3062_v44  ;;  %v3067_v14 = vadd.f32 %v4294_v2, %v2808_v8  ;;  %v2806_v56 = vadd.f32 %v2763_v11, %v2546_v22  ;;  %v3125_v24 = vadd.f32 %v3124_v37, %v3062_v44 }
 0x208   : > { %v3193_v38 = vadd.f32 %v3192_v15, %v3162_v34  ;;  %v4247_v41 = vpop.f32.mrf.mxu1  ;;  %v4295_v3 = vpop.f32.mrf.mxu0 }
 0x209   : > { %3099 = vst [vmem:[%s5808_s17 + $0xf0] sm:$0xff] %v3067_v14  ;;  %v3065_v30 = vadd.f32 %v3022_v58, %v2806_v56  ;;  %v2809_v23 = vadd.f32 %v4247_v41, %v2549_v61  ;;  %v3126_v21 = vadd.f32 %v3125_v24, %v3063_v29  ;;  %v3168_v36 = vmul.f32 %v3067_v14, %v3067_v14 }
 0x20a   : > { %v3194_v7 = vadd.f32 %v3193_v38, %v3163_v13  ;;  %v2766_v49 = vpop.f32.mrf.mxu1  ;;  %v3025_v54 = vpop.f32.mrf.mxu0 }
 0x20b   : > { %3097 = vst [vmem:[%s5808_s17 + $0xe0] sm:$0xff] %v3065_v30  ;;  %v3068_v17 = vadd.f32 %v4295_v3, %v2809_v23  ;;  %v2807_v10 = vadd.f32 %v2766_v49, %v2547_v19  ;;  %v3127_v40 = vadd.f32 %v3126_v21, %v3064_v0  ;;  %v3166_v12 = vmul.f32 %v3065_v30, %v3065_v30 }
 0x20c   : > { %v3195_v62 = vadd.f32 %v3194_v7, %v3164_v60 }
 0x20d   : > { %3100 = vst [vmem:[%s5808_s17 + $0xf8] sm:$0xff] %v3068_v17  ;;  %v3066_v18 = vadd.f32 %v3025_v54, %v2807_v10  ;;  %v3128_v26 = vadd.f32 %v3127_v40, %v3065_v30  ;;  %v3169_v16 = vmul.f32 %v3068_v17, %v3068_v17 }
 0x20e   : > { %v3196_v31 = vadd.f32 %v3195_v62, %v3165_v32 }
 0x20f   : > { %3098 = vst [vmem:[%s5808_s17 + $0xe8] sm:$0xff] %v3066_v18  ;;  %v3167_v46 = vmul.f32 %v3066_v18, %v3066_v18  ;;  %v3129_v43 = vadd.f32 %v3128_v26, %v3066_v18 }
 0x210   : > { %v3197_v47 = vadd.f32 %v3196_v31, %v3166_v12 }
 0x211   : > { %v3130_v29 = vadd.f32 %v3129_v43, %v3067_v14 }
 0x212   : > { %v3198_v45 = vadd.f32 %v3197_v47, %v3167_v46 }
 0x213   : > { %v3131_v63 = vadd.f32 %v3130_v29, %v3068_v17 }
 0x214   : > { %v3199_v9 = vadd.f32 %v3198_v45, %v3168_v36 }
 0x215   : > { %v3132_v53 = vrot.slane %v3131_v63, 4 }
 0x216   : > { %v3200_v42 = vadd.f32 %v3199_v9, %v3169_v16 }
 0x217   : > { %v3133_v5 = vadd.f32 %v3132_v53, %v3131_v63 }
 0x218   : > { %v3201_v50 = vrot.slane %v3200_v42, 4 }
 0x219   : > { %v3134_v27 = vrot.slane %v3133_v5, 2 }
 0x21a   : > { %v3202_v6 = vadd.f32 %v3201_v50, %v3200_v42 }
 0x21b   : > { %v3135_v57 = vadd.f32 %v3134_v27, %v3133_v5 }
 0x21c   : > { %v3203_v4 = vrot.slane %v3202_v6, 2 }
 0x21d   : > { %v3136_v59 = vrot.slane %v3135_v57, 1 }
 0x21e   : > { %v3204_v33 = vadd.f32 %v3203_v4, %v3202_v6 }
 0x21f   : > { %v3137_v51 = vadd.f32 %v3136_v59, %v3135_v57 }
 0x220   : > { %v3205_v0 = vrot.slane %v3204_v33, 1 }
 0x222   : > { %v3206_v20 = vadd.f32 %v3205_v0, %v3204_v33 }
 0x224   : > { %v3208_v35 = vsel %vm544_vm8, %v3137_v51, %v3206_v20 }
 0x225   : > { %v3210_v48 = vsel %vm3209_vm2, %v3208_v35, 0.0 }
 0x226   : > { %3211 = vst [vmem:[%s235_s22] sm:$0xff] %v3210_v48 }
 0x227 PF: > { %s16_s18 = sadd.s32 1, %s4401_s18  }
 0x228   : > { %p13_p4 = scmp.ge.s32.totalorder %s16_s18, 4  }
 0x22a   :  { %15 = sbr.rel (!%p13_p4) target bundleno = 1 (0x1), region = 86 }

</bundles_post_ra>
